<compile_context>
chip_gen: v7x
topology: tpu7x:2x2x1
jax: 0.10.0
libtpu: 0.0.40
codegen_flags: <defaults>
</compile_context>

<pallas_src>
import numpy as np

import jax
import jax.numpy as jnp
from jax.experimental import pallas as pl
from jax.experimental.pallas import tpu as pltpu

BN_EPS = 1e-5
_HI = jax.lax.Precision.HIGHEST


# -----------------------------------------------------------------------------
# In-kernel helpers (all shapes static; fully unrolled)
# -----------------------------------------------------------------------------
def _bn_norm(y, row_mask, seg_mean, gamma, beta):
    """Training-mode BatchNorm1d on a (N_pad, Cout*Lout) slab.

    row_mask : (N_pad, 1)  1.0 for real rows, 0.0 for batch padding
    seg_mean : (K, K)      block-diag ones / (N*Lout): per-channel mean,
                           broadcast back to every lane of the channel group
    gamma/beta : (1, K)    per-channel affine, pre-broadcast over lanes
    """
    ym = y * row_mask
    s1 = jnp.sum(ym, axis=0, keepdims=True)                       # (1, K)
    s2 = jnp.sum(ym * ym, axis=0, keepdims=True)                  # (1, K)
    mu = jnp.dot(s1, seg_mean, preferred_element_type=jnp.float32)
    ex2 = jnp.dot(s2, seg_mean, preferred_element_type=jnp.float32)
    var = jnp.maximum(ex2 - mu * mu, 0.0)                         # biased variance
    return gamma * ((y - mu) * jax.lax.rsqrt(var + BN_EPS)) + beta


def _cnn_fused_kernel(x_ref, mask_ref, *rest):
    """Whole CNN forward in one kernel.

    rest = [wm1, wm2, wms, seg_mean, bn  for each of the 5 blocks]
           + [w6_row, b6, o_ref]
    """
    o_ref, b6_ref, w6_ref = rest[-1], rest[-2], rest[-3]
    blocks = [rest[5 * i: 5 * i + 5] for i in range(5)]

    mask = mask_ref[...]                                          # (N_pad, 1)
    h = x_ref[...]                                                # (N_pad, 20)

    for wm1_ref, wm2_ref, wms_ref, seg_ref, bn_ref in blocks:
        seg = seg_ref[...]
        bn = bn_ref[...]                                          # (6, Cout*Lout)

        # conv1 and the 1x1 skip conv both consume h (independent MXU work;
        # LLO scheduler overlaps them with the following BN reductions).
        y1 = jnp.dot(h, wm1_ref[...], preferred_element_type=jnp.float32)
        ys = jnp.dot(h, wms_ref[...], preferred_element_type=jnp.float32)

        a1 = jnp.maximum(_bn_norm(y1, mask, seg, bn[0:1], bn[1:2]), 0.0)
        y2 = jnp.dot(a1, wm2_ref[...], preferred_element_type=jnp.float32)

        main = _bn_norm(y2, mask, seg, bn[2:3], bn[3:4])
        skip = _bn_norm(ys, mask, seg, bn[4:5], bn[5:6])
        h = jnp.maximum(main + skip, 0.0)

    # Linear head, lane-dense: (1,40) x (N_pad,40)^T -> (1, N_pad)
    out = jax.lax.dot_general(w6_ref[...], h, (((1,), (1,)), ((), ())),
                              preferred_element_type=jnp.float32)
    o_ref[...] = out + b6_ref[...]


# -----------------------------------------------------------------------------
# Trace-time constant / weight-matrix builders (batch-size independent)
# -----------------------------------------------------------------------------
def _tap_select(lin, lout, stride, pad, k):
    """(k, lin, lout) 0/1 tap-placement tensor for a Conv1d."""
    s = np.zeros((k, lin, lout), np.float32)
    for o in range(lout):
        for kk in range(k):
            i = o * stride + kk - pad
            if 0 <= i < lin:
                s[kk, i, o] = 1.0
    return jnp.asarray(s)


def _conv_as_matrix(w, lin, lout, stride, pad):
    """(Cout, Cin, K) conv weight -> dense (Cin*Lin, Cout*Lout) matrix."""
    cout, cin, k = w.shape
    sel = _tap_select(lin, lout, stride, pad, k)
    m = jnp.einsum('cqk,kio->qico', w.astype(jnp.float32), sel, precision=_HI)
    return m.reshape(cin * lin, cout * lout)


# -----------------------------------------------------------------------------
# Wrapper: packs parameters and calls the single fused kernel
# -----------------------------------------------------------------------------
def cnn_forward(x, params):
    """x: (N, 20) -> (N, 1); mirrors the PyTorch CNN.forward (train-mode BN)."""
    N, L = x.shape
    assert L == 20, "Linear(8*5, 1) head requires L == 20"
    n_pad = max(8, -(-N // 8) * 8)

    x_pad = jnp.pad(x.astype(jnp.float32), ((0, n_pad - N), (0, 0)))
    row_mask = jnp.asarray(
        np.concatenate([np.ones((N, 1), np.float32),
                        np.zeros((n_pad - N, 1), np.float32)], axis=0))

    # (lin, lout, stride) per ResBlock
    geom = [(20, 20, 1), (20, 10, 2), (10, 5, 2), (5, 5, 1), (5, 5, 1)]

    args = [x_pad, row_mask]
    for p, (lin, lout, stride) in zip(params["blocks"], geom):
        cout = p["w1"].shape[0]
        wm1 = _conv_as_matrix(p["w1"], lin, lout, stride, 1)      # conv1 (K=3)
        wm2 = _conv_as_matrix(p["w2"], lout, lout, 1, 1)          # conv2 (K=3,s=1)
        wms = _conv_as_matrix(p["ws"], lin, lout, stride, 0)      # skip  (K=1)
        seg = jnp.asarray(np.kron(
            np.eye(cout, dtype=np.float32),
            np.full((lout, lout), 1.0 / (N * lout), np.float32)))
        rep = lambda v: jnp.repeat(v.astype(jnp.float32), lout)
        bn = jnp.stack([rep(p["g1"]), rep(p["be1"]),
                        rep(p["g2"]), rep(p["be2"]),
                        rep(p["gs"]), rep(p["bes"])], axis=0)     # (6, cout*lout)
        # conv biases intentionally NOT passed: batch-stat BN cancels them.
        args += [wm1, wm2, wms, seg, bn]

    args += [params["w6"].astype(jnp.float32).reshape(1, 40),     # flatten c*5+l
             params["b6"].astype(jnp.float32).reshape(1, 1)]

    out_row = pl.pallas_call(
        _cnn_fused_kernel,
        out_shape=jax.ShapeDtypeStruct((1, n_pad), jnp.float32),
        in_specs=[pl.BlockSpec(memory_space=pltpu.MemorySpace.VMEM)] * len(args),
        out_specs=pl.BlockSpec(memory_space=pltpu.MemorySpace.VMEM),
        compiler_params=pltpu.CompilerParams(vmem_limit_bytes=32 * 1024 * 1024),
    )(*args)
    return out_row[0, :N].reshape(N, 1)


# -----------------------------------------------------------------------------
# Pure-JAX reference (training-mode BN, conv biases included)
# -----------------------------------------------------------------------------
def cnn_reference(x, params):
    N, L = x.shape
    h = x.astype(jnp.float32).reshape(N, 1, L)
    strides = [1, 2, 2, 1, 1]

    def conv(y, w, b, stride, pad):
        out = jax.lax.conv_general_dilated(
            y, w.astype(jnp.float32), window_strides=(stride,),
            padding=[(pad, pad)], dimension_numbers=('NCH', 'OIH', 'NCH'),
            precision=_HI)
        return out + b.reshape(1, -1, 1)

    def bn(y, g, b):
        mu = jnp.mean(y, axis=(0, 2), keepdims=True)
        var = jnp.mean((y - mu) ** 2, axis=(0, 2), keepdims=True)
        return (g.reshape(1, -1, 1) * (y - mu) * jax.lax.rsqrt(var + BN_EPS)
                + b.reshape(1, -1, 1))

    for p, s in zip(params["blocks"], strides):
        main = conv(h, p["w1"], p["b1"], s, 1)
        main = jnp.maximum(bn(main, p["g1"], p["be1"]), 0.0)
        main = conv(main, p["w2"], p["b2"], 1, 1)
        main = bn(main, p["g2"], p["be2"])
        skip = bn(conv(h, p["ws"], p["bs"], s, 0), p["gs"], p["bes"])
        h = jnp.maximum(main + skip, 0.0)

    flat = h.reshape(N, -1)
    return jnp.dot(flat, params["w6"].T, precision=_HI) + params["b6"]


# -----------------------------------------------------------------------------
# Deterministic parameter initialization (shapes from the PyTorch __init__)
# -----------------------------------------------------------------------------
def _conv_init(key, cout, cin, k):
    kw, kb = jax.random.split(key)
    bound = 1.0 / (cin * k) ** 0.5
    w = jax.random.uniform(kw, (cout, cin, k), jnp.float32, -bound, bound)
    b = jax.random.uniform(kb, (cout,), jnp.float32, -bound, bound)
    return w, b


def _bn_init(key, c):
    kg, kb = jax.random.split(key)
    g = 1.0 + 0.1 * jax.random.normal(kg, (c,), jnp.float32)
    be = 0.1 * jax.random.normal(kb, (c,), jnp.float32)
    return g, be


def _resblock_init(key, cin, cout):
    ks = jax.random.split(key, 6)
    w1, b1 = _conv_init(ks[0], cout, cin, 3)
    g1, be1 = _bn_init(ks[1], cout)
    w2, b2 = _conv_init(ks[2], cout, cout, 3)
    g2, be2 = _bn_init(ks[3], cout)
    ws, bs = _conv_init(ks[4], cout, cin, 1)
    gs, bes = _bn_init(ks[5], cout)
    return dict(w1=w1, b1=b1, g1=g1, be1=be1,
                w2=w2, b2=b2, g2=g2, be2=be2,
                ws=ws, bs=bs, gs=gs, bes=bes)


def init_cnn_params(key):
    ks = jax.random.split(key, 6)
    channels = [(1, 8), (8, 16), (16, 24), (24, 16), (16, 8)]
    blocks = [_resblock_init(k, ci, co) for k, (ci, co) in zip(ks[:5], channels)]
    kw, kb = jax.random.split(ks[5])
    bound = 1.0 / (40 ** 0.5)
    w6 = jax.random.uniform(kw, (1, 40), jnp.float32, -bound, bound)  # Linear(40,1)
    b6 = jax.random.uniform(kb, (1,), jnp.float32, -bound, bound)
    return dict(blocks=blocks, w6=w6, b6=b6)


# -----------------------------------------------------------------------------
if __name__ == "__main__":
    # L must be 20 so the two stride-2 blocks give length 5 -> 8*5 = 40 features
    # feeding Linear(40, 1), exactly as the PyTorch module assumes.
    N, L = 2, 20
    x = jax.random.normal(jax.random.PRNGKey(0), (N, L), jnp.float32)
    params = init_cnn_params(jax.random.PRNGKey(1))

    out = jax.jit(cnn_forward)(x, params)
    out = jax.block_until_ready(out)

    assert out.shape == (N, 1) and out.dtype == jnp.float32
    assert bool(jnp.all(jnp.isfinite(out)))

    ref = cnn_reference(x, params)
    assert bool(jnp.allclose(out, ref, rtol=5e-3, atol=5e-3)), (out, ref)
    print("KERNEL_OK")
</pallas_src>

<mosaic_0001>
module attributes {stable_mosaic.version = 11 : i64} {
  func.func @_cnn_fused_kernel(%arg0: memref<8x20xf32, #tpu.memory_space<vmem>>, %arg1: memref<8x1xf32, #tpu.memory_space<vmem>>, %arg2: memref<20x160xf32, #tpu.memory_space<vmem>>, %arg3: memref<160x160xf32, #tpu.memory_space<vmem>>, %arg4: memref<20x160xf32, #tpu.memory_space<vmem>>, %arg5: memref<160x160xf32, #tpu.memory_space<vmem>>, %arg6: memref<6x160xf32, #tpu.memory_space<vmem>>, %arg7: memref<160x160xf32, #tpu.memory_space<vmem>>, %arg8: memref<160x160xf32, #tpu.memory_space<vmem>>, %arg9: memref<160x160xf32, #tpu.memory_space<vmem>>, %arg10: memref<160x160xf32, #tpu.memory_space<vmem>>, %arg11: memref<6x160xf32, #tpu.memory_space<vmem>>, %arg12: memref<160x120xf32, #tpu.memory_space<vmem>>, %arg13: memref<120x120xf32, #tpu.memory_space<vmem>>, %arg14: memref<160x120xf32, #tpu.memory_space<vmem>>, %arg15: memref<120x120xf32, #tpu.memory_space<vmem>>, %arg16: memref<6x120xf32, #tpu.memory_space<vmem>>, %arg17: memref<120x80xf32, #tpu.memory_space<vmem>>, %arg18: memref<80x80xf32, #tpu.memory_space<vmem>>, %arg19: memref<120x80xf32, #tpu.memory_space<vmem>>, %arg20: memref<80x80xf32, #tpu.memory_space<vmem>>, %arg21: memref<6x80xf32, #tpu.memory_space<vmem>>, %arg22: memref<80x40xf32, #tpu.memory_space<vmem>>, %arg23: memref<40x40xf32, #tpu.memory_space<vmem>>, %arg24: memref<80x40xf32, #tpu.memory_space<vmem>>, %arg25: memref<40x40xf32, #tpu.memory_space<vmem>>, %arg26: memref<6x40xf32, #tpu.memory_space<vmem>>, %arg27: memref<1x40xf32, #tpu.memory_space<vmem>>, %arg28: memref<1x1xf32, #tpu.memory_space<vmem>>, %arg29: memref<1x8xf32, #tpu.memory_space<vmem>>) attributes {dimension_semantics = [], scalar_prefetch = 0 : i64, scratch_operands = 0 : i64, tpu.core_type = #tpu.core_type<tc>} {
    %c0 = arith.constant 0 : index
    %c0_0 = arith.constant 0 : index
    %0 = vector.load %arg1[%c0, %c0_0] : memref<8x1xf32, #tpu.memory_space<vmem>>, vector<8x1xf32>
    %c0_1 = arith.constant 0 : index
    %c0_2 = arith.constant 0 : index
    %1 = vector.load %arg0[%c0_1, %c0_2] : memref<8x20xf32, #tpu.memory_space<vmem>>, vector<8x20xf32>
    %c0_3 = arith.constant 0 : index
    %c0_4 = arith.constant 0 : index
    %2 = vector.load %arg5[%c0_3, %c0_4] : memref<160x160xf32, #tpu.memory_space<vmem>>, vector<160x160xf32>
    %c0_5 = arith.constant 0 : index
    %c0_6 = arith.constant 0 : index
    %3 = vector.load %arg6[%c0_5, %c0_6] : memref<6x160xf32, #tpu.memory_space<vmem>>, vector<6x160xf32>
    %c0_7 = arith.constant 0 : index
    %c0_8 = arith.constant 0 : index
    %4 = vector.load %arg2[%c0_7, %c0_8] : memref<20x160xf32, #tpu.memory_space<vmem>>, vector<20x160xf32>
    %cst = arith.constant dense<0.000000e+00> : vector<8x160xf32>
    %5 = tpu.matmul %1, %4, %cst {dimension_numbers = #tpu.dot_dimension_numbers<[1], [0], [0], [1], [0, 0, 1, 1], [], []>} : vector<8x20xf32>, vector<20x160xf32>, vector<8x160xf32> -> vector<8x160xf32>
    %c0_9 = arith.constant 0 : index
    %c0_10 = arith.constant 0 : index
    %6 = vector.load %arg4[%c0_9, %c0_10] : memref<20x160xf32, #tpu.memory_space<vmem>>, vector<20x160xf32>
    %cst_11 = arith.constant dense<0.000000e+00> : vector<8x160xf32>
    %7 = tpu.matmul %1, %6, %cst_11 {dimension_numbers = #tpu.dot_dimension_numbers<[1], [0], [0], [1], [0, 0, 1, 1], [], []>} : vector<8x20xf32>, vector<20x160xf32>, vector<8x160xf32> -> vector<8x160xf32>
    %8 = vector.extract_strided_slice %3 {offsets = [0, 0], sizes = [1, 160], strides = [1, 1]} : vector<6x160xf32> to vector<1x160xf32>
    %9 = vector.extract_strided_slice %3 {offsets = [1, 0], sizes = [1, 160], strides = [1, 1]} : vector<6x160xf32> to vector<1x160xf32>
    %10 = vector.broadcast %0 : vector<8x1xf32> to vector<8x160xf32>
    %11 = arith.mulf %5, %10 : vector<8x160xf32>
    %cst_12 = arith.constant dense<0.000000e+00> : vector<160xf32>
    %12 = vector.multi_reduction <add>, %11, %cst_12 [0] : vector<8x160xf32> to vector<160xf32>
    %13 = vector.shape_cast %12 : vector<160xf32> to vector<1x160xf32>
    %14 = arith.mulf %11, %11 : vector<8x160xf32>
    %cst_13 = arith.constant dense<0.000000e+00> : vector<160xf32>
    %15 = vector.multi_reduction <add>, %14, %cst_13 [0] : vector<8x160xf32> to vector<160xf32>
    %16 = vector.shape_cast %15 : vector<160xf32> to vector<1x160xf32>
    %cst_14 = arith.constant dense<0.000000e+00> : vector<1x160xf32>
    %17 = tpu.matmul %13, %2, %cst_14 {dimension_numbers = #tpu.dot_dimension_numbers<[1], [0], [0], [1], [0, 0, 1, 1], [], []>} : vector<1x160xf32>, vector<160x160xf32>, vector<1x160xf32> -> vector<1x160xf32>
    %cst_15 = arith.constant dense<0.000000e+00> : vector<1x160xf32>
    %18 = tpu.matmul %16, %2, %cst_15 {dimension_numbers = #tpu.dot_dimension_numbers<[1], [0], [0], [1], [0, 0, 1, 1], [], []>} : vector<1x160xf32>, vector<160x160xf32>, vector<1x160xf32> -> vector<1x160xf32>
    %19 = arith.mulf %17, %17 : vector<1x160xf32>
    %20 = arith.subf %18, %19 : vector<1x160xf32>
    %cst_16 = arith.constant 0.000000e+00 : f32
    %21 = vector.broadcast %cst_16 : f32 to vector<1x160xf32>
    %22 = arith.maximumf %20, %21 : vector<1x160xf32>
    %23 = vector.broadcast %17 : vector<1x160xf32> to vector<8x160xf32>
    %24 = arith.subf %5, %23 : vector<8x160xf32>
    %cst_17 = arith.constant 9.99999974E-6 : f32
    %25 = vector.broadcast %cst_17 : f32 to vector<1x160xf32>
    %26 = arith.addf %22, %25 : vector<1x160xf32>
    %27 = math.rsqrt %26 : vector<1x160xf32>
    %28 = vector.broadcast %27 : vector<1x160xf32> to vector<8x160xf32>
    %29 = arith.mulf %24, %28 : vector<8x160xf32>
    %30 = vector.broadcast %8 : vector<1x160xf32> to vector<8x160xf32>
    %31 = arith.mulf %30, %29 : vector<8x160xf32>
    %32 = vector.broadcast %9 : vector<1x160xf32> to vector<8x160xf32>
    %33 = arith.addf %31, %32 : vector<8x160xf32>
    %cst_18 = arith.constant 0.000000e+00 : f32
    %34 = vector.broadcast %cst_18 : f32 to vector<8x160xf32>
    %35 = arith.maximumf %33, %34 : vector<8x160xf32>
    %c0_19 = arith.constant 0 : index
    %c0_20 = arith.constant 0 : index
    %36 = vector.load %arg3[%c0_19, %c0_20] : memref<160x160xf32, #tpu.memory_space<vmem>>, vector<160x160xf32>
    %cst_21 = arith.constant dense<0.000000e+00> : vector<8x160xf32>
    %37 = tpu.matmul %35, %36, %cst_21 {dimension_numbers = #tpu.dot_dimension_numbers<[1], [0], [0], [1], [0, 0, 1, 1], [], []>} : vector<8x160xf32>, vector<160x160xf32>, vector<8x160xf32> -> vector<8x160xf32>
    %38 = vector.extract_strided_slice %3 {offsets = [2, 0], sizes = [1, 160], strides = [1, 1]} : vector<6x160xf32> to vector<1x160xf32>
    %39 = vector.extract_strided_slice %3 {offsets = [3, 0], sizes = [1, 160], strides = [1, 1]} : vector<6x160xf32> to vector<1x160xf32>
    %40 = vector.broadcast %0 : vector<8x1xf32> to vector<8x160xf32>
    %41 = arith.mulf %37, %40 : vector<8x160xf32>
    %cst_22 = arith.constant dense<0.000000e+00> : vector<160xf32>
    %42 = vector.multi_reduction <add>, %41, %cst_22 [0] : vector<8x160xf32> to vector<160xf32>
    %43 = vector.shape_cast %42 : vector<160xf32> to vector<1x160xf32>
    %44 = arith.mulf %41, %41 : vector<8x160xf32>
    %cst_23 = arith.constant dense<0.000000e+00> : vector<160xf32>
    %45 = vector.multi_reduction <add>, %44, %cst_23 [0] : vector<8x160xf32> to vector<160xf32>
    %46 = vector.shape_cast %45 : vector<160xf32> to vector<1x160xf32>
    %cst_24 = arith.constant dense<0.000000e+00> : vector<1x160xf32>
    %47 = tpu.matmul %43, %2, %cst_24 {dimension_numbers = #tpu.dot_dimension_numbers<[1], [0], [0], [1], [0, 0, 1, 1], [], []>} : vector<1x160xf32>, vector<160x160xf32>, vector<1x160xf32> -> vector<1x160xf32>
    %cst_25 = arith.constant dense<0.000000e+00> : vector<1x160xf32>
    %48 = tpu.matmul %46, %2, %cst_25 {dimension_numbers = #tpu.dot_dimension_numbers<[1], [0], [0], [1], [0, 0, 1, 1], [], []>} : vector<1x160xf32>, vector<160x160xf32>, vector<1x160xf32> -> vector<1x160xf32>
    %49 = arith.mulf %47, %47 : vector<1x160xf32>
    %50 = arith.subf %48, %49 : vector<1x160xf32>
    %cst_26 = arith.constant 0.000000e+00 : f32
    %51 = vector.broadcast %cst_26 : f32 to vector<1x160xf32>
    %52 = arith.maximumf %50, %51 : vector<1x160xf32>
    %53 = vector.broadcast %47 : vector<1x160xf32> to vector<8x160xf32>
    %54 = arith.subf %37, %53 : vector<8x160xf32>
    %cst_27 = arith.constant 9.99999974E-6 : f32
    %55 = vector.broadcast %cst_27 : f32 to vector<1x160xf32>
    %56 = arith.addf %52, %55 : vector<1x160xf32>
    %57 = math.rsqrt %56 : vector<1x160xf32>
    %58 = vector.broadcast %57 : vector<1x160xf32> to vector<8x160xf32>
    %59 = arith.mulf %54, %58 : vector<8x160xf32>
    %60 = vector.broadcast %38 : vector<1x160xf32> to vector<8x160xf32>
    %61 = arith.mulf %60, %59 : vector<8x160xf32>
    %62 = vector.broadcast %39 : vector<1x160xf32> to vector<8x160xf32>
    %63 = arith.addf %61, %62 : vector<8x160xf32>
    %64 = vector.extract_strided_slice %3 {offsets = [4, 0], sizes = [1, 160], strides = [1, 1]} : vector<6x160xf32> to vector<1x160xf32>
    %65 = vector.extract_strided_slice %3 {offsets = [5, 0], sizes = [1, 160], strides = [1, 1]} : vector<6x160xf32> to vector<1x160xf32>
    %66 = vector.broadcast %0 : vector<8x1xf32> to vector<8x160xf32>
    %67 = arith.mulf %7, %66 : vector<8x160xf32>
    %cst_28 = arith.constant dense<0.000000e+00> : vector<160xf32>
    %68 = vector.multi_reduction <add>, %67, %cst_28 [0] : vector<8x160xf32> to vector<160xf32>
    %69 = vector.shape_cast %68 : vector<160xf32> to vector<1x160xf32>
    %70 = arith.mulf %67, %67 : vector<8x160xf32>
    %cst_29 = arith.constant dense<0.000000e+00> : vector<160xf32>
    %71 = vector.multi_reduction <add>, %70, %cst_29 [0] : vector<8x160xf32> to vector<160xf32>
    %72 = vector.shape_cast %71 : vector<160xf32> to vector<1x160xf32>
    %cst_30 = arith.constant dense<0.000000e+00> : vector<1x160xf32>
    %73 = tpu.matmul %69, %2, %cst_30 {dimension_numbers = #tpu.dot_dimension_numbers<[1], [0], [0], [1], [0, 0, 1, 1], [], []>} : vector<1x160xf32>, vector<160x160xf32>, vector<1x160xf32> -> vector<1x160xf32>
    %cst_31 = arith.constant dense<0.000000e+00> : vector<1x160xf32>
    %74 = tpu.matmul %72, %2, %cst_31 {dimension_numbers = #tpu.dot_dimension_numbers<[1], [0], [0], [1], [0, 0, 1, 1], [], []>} : vector<1x160xf32>, vector<160x160xf32>, vector<1x160xf32> -> vector<1x160xf32>
    %75 = arith.mulf %73, %73 : vector<1x160xf32>
    %76 = arith.subf %74, %75 : vector<1x160xf32>
    %cst_32 = arith.constant 0.000000e+00 : f32
    %77 = vector.broadcast %cst_32 : f32 to vector<1x160xf32>
    %78 = arith.maximumf %76, %77 : vector<1x160xf32>
    %79 = vector.broadcast %73 : vector<1x160xf32> to vector<8x160xf32>
    %80 = arith.subf %7, %79 : vector<8x160xf32>
    %cst_33 = arith.constant 9.99999974E-6 : f32
    %81 = vector.broadcast %cst_33 : f32 to vector<1x160xf32>
    %82 = arith.addf %78, %81 : vector<1x160xf32>
    %83 = math.rsqrt %82 : vector<1x160xf32>
    %84 = vector.broadcast %83 : vector<1x160xf32> to vector<8x160xf32>
    %85 = arith.mulf %80, %84 : vector<8x160xf32>
    %86 = vector.broadcast %64 : vector<1x160xf32> to vector<8x160xf32>
    %87 = arith.mulf %86, %85 : vector<8x160xf32>
    %88 = vector.broadcast %65 : vector<1x160xf32> to vector<8x160xf32>
    %89 = arith.addf %87, %88 : vector<8x160xf32>
    %90 = arith.addf %63, %89 : vector<8x160xf32>
    %cst_34 = arith.constant 0.000000e+00 : f32
    %91 = vector.broadcast %cst_34 : f32 to vector<8x160xf32>
    %92 = arith.maximumf %90, %91 : vector<8x160xf32>
    %c0_35 = arith.constant 0 : index
    %c0_36 = arith.constant 0 : index
    %93 = vector.load %arg10[%c0_35, %c0_36] : memref<160x160xf32, #tpu.memory_space<vmem>>, vector<160x160xf32>
    %c0_37 = arith.constant 0 : index
    %c0_38 = arith.constant 0 : index
    %94 = vector.load %arg11[%c0_37, %c0_38] : memref<6x160xf32, #tpu.memory_space<vmem>>, vector<6x160xf32>
    %c0_39 = arith.constant 0 : index
    %c0_40 = arith.constant 0 : index
    %95 = vector.load %arg7[%c0_39, %c0_40] : memref<160x160xf32, #tpu.memory_space<vmem>>, vector<160x160xf32>
    %cst_41 = arith.constant dense<0.000000e+00> : vector<8x160xf32>
    %96 = tpu.matmul %92, %95, %cst_41 {dimension_numbers = #tpu.dot_dimension_numbers<[1], [0], [0], [1], [0, 0, 1, 1], [], []>} : vector<8x160xf32>, vector<160x160xf32>, vector<8x160xf32> -> vector<8x160xf32>
    %c0_42 = arith.constant 0 : index
    %c0_43 = arith.constant 0 : index
    %97 = vector.load %arg9[%c0_42, %c0_43] : memref<160x160xf32, #tpu.memory_space<vmem>>, vector<160x160xf32>
    %cst_44 = arith.constant dense<0.000000e+00> : vector<8x160xf32>
    %98 = tpu.matmul %92, %97, %cst_44 {dimension_numbers = #tpu.dot_dimension_numbers<[1], [0], [0], [1], [0, 0, 1, 1], [], []>} : vector<8x160xf32>, vector<160x160xf32>, vector<8x160xf32> -> vector<8x160xf32>
    %99 = vector.extract_strided_slice %94 {offsets = [0, 0], sizes = [1, 160], strides = [1, 1]} : vector<6x160xf32> to vector<1x160xf32>
    %100 = vector.extract_strided_slice %94 {offsets = [1, 0], sizes = [1, 160], strides = [1, 1]} : vector<6x160xf32> to vector<1x160xf32>
    %101 = vector.broadcast %0 : vector<8x1xf32> to vector<8x160xf32>
    %102 = arith.mulf %96, %101 : vector<8x160xf32>
    %cst_45 = arith.constant dense<0.000000e+00> : vector<160xf32>
    %103 = vector.multi_reduction <add>, %102, %cst_45 [0] : vector<8x160xf32> to vector<160xf32>
    %104 = vector.shape_cast %103 : vector<160xf32> to vector<1x160xf32>
    %105 = arith.mulf %102, %102 : vector<8x160xf32>
    %cst_46 = arith.constant dense<0.000000e+00> : vector<160xf32>
    %106 = vector.multi_reduction <add>, %105, %cst_46 [0] : vector<8x160xf32> to vector<160xf32>
    %107 = vector.shape_cast %106 : vector<160xf32> to vector<1x160xf32>
    %cst_47 = arith.constant dense<0.000000e+00> : vector<1x160xf32>
    %108 = tpu.matmul %104, %93, %cst_47 {dimension_numbers = #tpu.dot_dimension_numbers<[1], [0], [0], [1], [0, 0, 1, 1], [], []>} : vector<1x160xf32>, vector<160x160xf32>, vector<1x160xf32> -> vector<1x160xf32>
    %cst_48 = arith.constant dense<0.000000e+00> : vector<1x160xf32>
    %109 = tpu.matmul %107, %93, %cst_48 {dimension_numbers = #tpu.dot_dimension_numbers<[1], [0], [0], [1], [0, 0, 1, 1], [], []>} : vector<1x160xf32>, vector<160x160xf32>, vector<1x160xf32> -> vector<1x160xf32>
    %110 = arith.mulf %108, %108 : vector<1x160xf32>
    %111 = arith.subf %109, %110 : vector<1x160xf32>
    %cst_49 = arith.constant 0.000000e+00 : f32
    %112 = vector.broadcast %cst_49 : f32 to vector<1x160xf32>
    %113 = arith.maximumf %111, %112 : vector<1x160xf32>
    %114 = vector.broadcast %108 : vector<1x160xf32> to vector<8x160xf32>
    %115 = arith.subf %96, %114 : vector<8x160xf32>
    %cst_50 = arith.constant 9.99999974E-6 : f32
    %116 = vector.broadcast %cst_50 : f32 to vector<1x160xf32>
    %117 = arith.addf %113, %116 : vector<1x160xf32>
    %118 = math.rsqrt %117 : vector<1x160xf32>
    %119 = vector.broadcast %118 : vector<1x160xf32> to vector<8x160xf32>
    %120 = arith.mulf %115, %119 : vector<8x160xf32>
    %121 = vector.broadcast %99 : vector<1x160xf32> to vector<8x160xf32>
    %122 = arith.mulf %121, %120 : vector<8x160xf32>
    %123 = vector.broadcast %100 : vector<1x160xf32> to vector<8x160xf32>
    %124 = arith.addf %122, %123 : vector<8x160xf32>
    %cst_51 = arith.constant 0.000000e+00 : f32
    %125 = vector.broadcast %cst_51 : f32 to vector<8x160xf32>
    %126 = arith.maximumf %124, %125 : vector<8x160xf32>
    %c0_52 = arith.constant 0 : index
    %c0_53 = arith.constant 0 : index
    %127 = vector.load %arg8[%c0_52, %c0_53] : memref<160x160xf32, #tpu.memory_space<vmem>>, vector<160x160xf32>
    %cst_54 = arith.constant dense<0.000000e+00> : vector<8x160xf32>
    %128 = tpu.matmul %126, %127, %cst_54 {dimension_numbers = #tpu.dot_dimension_numbers<[1], [0], [0], [1], [0, 0, 1, 1], [], []>} : vector<8x160xf32>, vector<160x160xf32>, vector<8x160xf32> -> vector<8x160xf32>
    %129 = vector.extract_strided_slice %94 {offsets = [2, 0], sizes = [1, 160], strides = [1, 1]} : vector<6x160xf32> to vector<1x160xf32>
    %130 = vector.extract_strided_slice %94 {offsets = [3, 0], sizes = [1, 160], strides = [1, 1]} : vector<6x160xf32> to vector<1x160xf32>
    %131 = vector.broadcast %0 : vector<8x1xf32> to vector<8x160xf32>
    %132 = arith.mulf %128, %131 : vector<8x160xf32>
    %cst_55 = arith.constant dense<0.000000e+00> : vector<160xf32>
    %133 = vector.multi_reduction <add>, %132, %cst_55 [0] : vector<8x160xf32> to vector<160xf32>
    %134 = vector.shape_cast %133 : vector<160xf32> to vector<1x160xf32>
    %135 = arith.mulf %132, %132 : vector<8x160xf32>
    %cst_56 = arith.constant dense<0.000000e+00> : vector<160xf32>
    %136 = vector.multi_reduction <add>, %135, %cst_56 [0] : vector<8x160xf32> to vector<160xf32>
    %137 = vector.shape_cast %136 : vector<160xf32> to vector<1x160xf32>
    %cst_57 = arith.constant dense<0.000000e+00> : vector<1x160xf32>
    %138 = tpu.matmul %134, %93, %cst_57 {dimension_numbers = #tpu.dot_dimension_numbers<[1], [0], [0], [1], [0, 0, 1, 1], [], []>} : vector<1x160xf32>, vector<160x160xf32>, vector<1x160xf32> -> vector<1x160xf32>
    %cst_58 = arith.constant dense<0.000000e+00> : vector<1x160xf32>
    %139 = tpu.matmul %137, %93, %cst_58 {dimension_numbers = #tpu.dot_dimension_numbers<[1], [0], [0], [1], [0, 0, 1, 1], [], []>} : vector<1x160xf32>, vector<160x160xf32>, vector<1x160xf32> -> vector<1x160xf32>
    %140 = arith.mulf %138, %138 : vector<1x160xf32>
    %141 = arith.subf %139, %140 : vector<1x160xf32>
    %cst_59 = arith.constant 0.000000e+00 : f32
    %142 = vector.broadcast %cst_59 : f32 to vector<1x160xf32>
    %143 = arith.maximumf %141, %142 : vector<1x160xf32>
    %144 = vector.broadcast %138 : vector<1x160xf32> to vector<8x160xf32>
    %145 = arith.subf %128, %144 : vector<8x160xf32>
    %cst_60 = arith.constant 9.99999974E-6 : f32
    %146 = vector.broadcast %cst_60 : f32 to vector<1x160xf32>
    %147 = arith.addf %143, %146 : vector<1x160xf32>
    %148 = math.rsqrt %147 : vector<1x160xf32>
    %149 = vector.broadcast %148 : vector<1x160xf32> to vector<8x160xf32>
    %150 = arith.mulf %145, %149 : vector<8x160xf32>
    %151 = vector.broadcast %129 : vector<1x160xf32> to vector<8x160xf32>
    %152 = arith.mulf %151, %150 : vector<8x160xf32>
    %153 = vector.broadcast %130 : vector<1x160xf32> to vector<8x160xf32>
    %154 = arith.addf %152, %153 : vector<8x160xf32>
    %155 = vector.extract_strided_slice %94 {offsets = [4, 0], sizes = [1, 160], strides = [1, 1]} : vector<6x160xf32> to vector<1x160xf32>
    %156 = vector.extract_strided_slice %94 {offsets = [5, 0], sizes = [1, 160], strides = [1, 1]} : vector<6x160xf32> to vector<1x160xf32>
    %157 = vector.broadcast %0 : vector<8x1xf32> to vector<8x160xf32>
    %158 = arith.mulf %98, %157 : vector<8x160xf32>
    %cst_61 = arith.constant dense<0.000000e+00> : vector<160xf32>
    %159 = vector.multi_reduction <add>, %158, %cst_61 [0] : vector<8x160xf32> to vector<160xf32>
    %160 = vector.shape_cast %159 : vector<160xf32> to vector<1x160xf32>
    %161 = arith.mulf %158, %158 : vector<8x160xf32>
    %cst_62 = arith.constant dense<0.000000e+00> : vector<160xf32>
    %162 = vector.multi_reduction <add>, %161, %cst_62 [0] : vector<8x160xf32> to vector<160xf32>
    %163 = vector.shape_cast %162 : vector<160xf32> to vector<1x160xf32>
    %cst_63 = arith.constant dense<0.000000e+00> : vector<1x160xf32>
    %164 = tpu.matmul %160, %93, %cst_63 {dimension_numbers = #tpu.dot_dimension_numbers<[1], [0], [0], [1], [0, 0, 1, 1], [], []>} : vector<1x160xf32>, vector<160x160xf32>, vector<1x160xf32> -> vector<1x160xf32>
    %cst_64 = arith.constant dense<0.000000e+00> : vector<1x160xf32>
    %165 = tpu.matmul %163, %93, %cst_64 {dimension_numbers = #tpu.dot_dimension_numbers<[1], [0], [0], [1], [0, 0, 1, 1], [], []>} : vector<1x160xf32>, vector<160x160xf32>, vector<1x160xf32> -> vector<1x160xf32>
    %166 = arith.mulf %164, %164 : vector<1x160xf32>
    %167 = arith.subf %165, %166 : vector<1x160xf32>
    %cst_65 = arith.constant 0.000000e+00 : f32
    %168 = vector.broadcast %cst_65 : f32 to vector<1x160xf32>
    %169 = arith.maximumf %167, %168 : vector<1x160xf32>
    %170 = vector.broadcast %164 : vector<1x160xf32> to vector<8x160xf32>
    %171 = arith.subf %98, %170 : vector<8x160xf32>
    %cst_66 = arith.constant 9.99999974E-6 : f32
    %172 = vector.broadcast %cst_66 : f32 to vector<1x160xf32>
    %173 = arith.addf %169, %172 : vector<1x160xf32>
    %174 = math.rsqrt %173 : vector<1x160xf32>
    %175 = vector.broadcast %174 : vector<1x160xf32> to vector<8x160xf32>
    %176 = arith.mulf %171, %175 : vector<8x160xf32>
    %177 = vector.broadcast %155 : vector<1x160xf32> to vector<8x160xf32>
    %178 = arith.mulf %177, %176 : vector<8x160xf32>
    %179 = vector.broadcast %156 : vector<1x160xf32> to vector<8x160xf32>
    %180 = arith.addf %178, %179 : vector<8x160xf32>
    %181 = arith.addf %154, %180 : vector<8x160xf32>
    %cst_67 = arith.constant 0.000000e+00 : f32
    %182 = vector.broadcast %cst_67 : f32 to vector<8x160xf32>
    %183 = arith.maximumf %181, %182 : vector<8x160xf32>
    %c0_68 = arith.constant 0 : index
    %c0_69 = arith.constant 0 : index
    %184 = vector.load %arg15[%c0_68, %c0_69] : memref<120x120xf32, #tpu.memory_space<vmem>>, vector<120x120xf32>
    %c0_70 = arith.constant 0 : index
    %c0_71 = arith.constant 0 : index
    %185 = vector.load %arg16[%c0_70, %c0_71] : memref<6x120xf32, #tpu.memory_space<vmem>>, vector<6x120xf32>
    %c0_72 = arith.constant 0 : index
    %c0_73 = arith.constant 0 : index
    %186 = vector.load %arg12[%c0_72, %c0_73] : memref<160x120xf32, #tpu.memory_space<vmem>>, vector<160x120xf32>
    %cst_74 = arith.constant dense<0.000000e+00> : vector<8x120xf32>
    %187 = tpu.matmul %183, %186, %cst_74 {dimension_numbers = #tpu.dot_dimension_numbers<[1], [0], [0], [1], [0, 0, 1, 1], [], []>} : vector<8x160xf32>, vector<160x120xf32>, vector<8x120xf32> -> vector<8x120xf32>
    %c0_75 = arith.constant 0 : index
    %c0_76 = arith.constant 0 : index
    %188 = vector.load %arg14[%c0_75, %c0_76] : memref<160x120xf32, #tpu.memory_space<vmem>>, vector<160x120xf32>
    %cst_77 = arith.constant dense<0.000000e+00> : vector<8x120xf32>
    %189 = tpu.matmul %183, %188, %cst_77 {dimension_numbers = #tpu.dot_dimension_numbers<[1], [0], [0], [1], [0, 0, 1, 1], [], []>} : vector<8x160xf32>, vector<160x120xf32>, vector<8x120xf32> -> vector<8x120xf32>
    %190 = vector.extract_strided_slice %185 {offsets = [0, 0], sizes = [1, 120], strides = [1, 1]} : vector<6x120xf32> to vector<1x120xf32>
    %191 = vector.extract_strided_slice %185 {offsets = [1, 0], sizes = [1, 120], strides = [1, 1]} : vector<6x120xf32> to vector<1x120xf32>
    %192 = vector.broadcast %0 : vector<8x1xf32> to vector<8x120xf32>
    %193 = arith.mulf %187, %192 : vector<8x120xf32>
    %cst_78 = arith.constant dense<0.000000e+00> : vector<120xf32>
    %194 = vector.multi_reduction <add>, %193, %cst_78 [0] : vector<8x120xf32> to vector<120xf32>
    %195 = vector.shape_cast %194 : vector<120xf32> to vector<1x120xf32>
    %196 = arith.mulf %193, %193 : vector<8x120xf32>
    %cst_79 = arith.constant dense<0.000000e+00> : vector<120xf32>
    %197 = vector.multi_reduction <add>, %196, %cst_79 [0] : vector<8x120xf32> to vector<120xf32>
    %198 = vector.shape_cast %197 : vector<120xf32> to vector<1x120xf32>
    %cst_80 = arith.constant dense<0.000000e+00> : vector<1x120xf32>
    %199 = tpu.matmul %195, %184, %cst_80 {dimension_numbers = #tpu.dot_dimension_numbers<[1], [0], [0], [1], [0, 0, 1, 1], [], []>} : vector<1x120xf32>, vector<120x120xf32>, vector<1x120xf32> -> vector<1x120xf32>
    %cst_81 = arith.constant dense<0.000000e+00> : vector<1x120xf32>
    %200 = tpu.matmul %198, %184, %cst_81 {dimension_numbers = #tpu.dot_dimension_numbers<[1], [0], [0], [1], [0, 0, 1, 1], [], []>} : vector<1x120xf32>, vector<120x120xf32>, vector<1x120xf32> -> vector<1x120xf32>
    %201 = arith.mulf %199, %199 : vector<1x120xf32>
    %202 = arith.subf %200, %201 : vector<1x120xf32>
    %cst_82 = arith.constant 0.000000e+00 : f32
    %203 = vector.broadcast %cst_82 : f32 to vector<1x120xf32>
    %204 = arith.maximumf %202, %203 : vector<1x120xf32>
    %205 = vector.broadcast %199 : vector<1x120xf32> to vector<8x120xf32>
    %206 = arith.subf %187, %205 : vector<8x120xf32>
    %cst_83 = arith.constant 9.99999974E-6 : f32
    %207 = vector.broadcast %cst_83 : f32 to vector<1x120xf32>
    %208 = arith.addf %204, %207 : vector<1x120xf32>
    %209 = math.rsqrt %208 : vector<1x120xf32>
    %210 = vector.broadcast %209 : vector<1x120xf32> to vector<8x120xf32>
    %211 = arith.mulf %206, %210 : vector<8x120xf32>
    %212 = vector.broadcast %190 : vector<1x120xf32> to vector<8x120xf32>
    %213 = arith.mulf %212, %211 : vector<8x120xf32>
    %214 = vector.broadcast %191 : vector<1x120xf32> to vector<8x120xf32>
    %215 = arith.addf %213, %214 : vector<8x120xf32>
    %cst_84 = arith.constant 0.000000e+00 : f32
    %216 = vector.broadcast %cst_84 : f32 to vector<8x120xf32>
    %217 = arith.maximumf %215, %216 : vector<8x120xf32>
    %c0_85 = arith.constant 0 : index
    %c0_86 = arith.constant 0 : index
    %218 = vector.load %arg13[%c0_85, %c0_86] : memref<120x120xf32, #tpu.memory_space<vmem>>, vector<120x120xf32>
    %cst_87 = arith.constant dense<0.000000e+00> : vector<8x120xf32>
    %219 = tpu.matmul %217, %218, %cst_87 {dimension_numbers = #tpu.dot_dimension_numbers<[1], [0], [0], [1], [0, 0, 1, 1], [], []>} : vector<8x120xf32>, vector<120x120xf32>, vector<8x120xf32> -> vector<8x120xf32>
    %220 = vector.extract_strided_slice %185 {offsets = [2, 0], sizes = [1, 120], strides = [1, 1]} : vector<6x120xf32> to vector<1x120xf32>
    %221 = vector.extract_strided_slice %185 {offsets = [3, 0], sizes = [1, 120], strides = [1, 1]} : vector<6x120xf32> to vector<1x120xf32>
    %222 = vector.broadcast %0 : vector<8x1xf32> to vector<8x120xf32>
    %223 = arith.mulf %219, %222 : vector<8x120xf32>
    %cst_88 = arith.constant dense<0.000000e+00> : vector<120xf32>
    %224 = vector.multi_reduction <add>, %223, %cst_88 [0] : vector<8x120xf32> to vector<120xf32>
    %225 = vector.shape_cast %224 : vector<120xf32> to vector<1x120xf32>
    %226 = arith.mulf %223, %223 : vector<8x120xf32>
    %cst_89 = arith.constant dense<0.000000e+00> : vector<120xf32>
    %227 = vector.multi_reduction <add>, %226, %cst_89 [0] : vector<8x120xf32> to vector<120xf32>
    %228 = vector.shape_cast %227 : vector<120xf32> to vector<1x120xf32>
    %cst_90 = arith.constant dense<0.000000e+00> : vector<1x120xf32>
    %229 = tpu.matmul %225, %184, %cst_90 {dimension_numbers = #tpu.dot_dimension_numbers<[1], [0], [0], [1], [0, 0, 1, 1], [], []>} : vector<1x120xf32>, vector<120x120xf32>, vector<1x120xf32> -> vector<1x120xf32>
    %cst_91 = arith.constant dense<0.000000e+00> : vector<1x120xf32>
    %230 = tpu.matmul %228, %184, %cst_91 {dimension_numbers = #tpu.dot_dimension_numbers<[1], [0], [0], [1], [0, 0, 1, 1], [], []>} : vector<1x120xf32>, vector<120x120xf32>, vector<1x120xf32> -> vector<1x120xf32>
    %231 = arith.mulf %229, %229 : vector<1x120xf32>
    %232 = arith.subf %230, %231 : vector<1x120xf32>
    %cst_92 = arith.constant 0.000000e+00 : f32
    %233 = vector.broadcast %cst_92 : f32 to vector<1x120xf32>
    %234 = arith.maximumf %232, %233 : vector<1x120xf32>
    %235 = vector.broadcast %229 : vector<1x120xf32> to vector<8x120xf32>
    %236 = arith.subf %219, %235 : vector<8x120xf32>
    %cst_93 = arith.constant 9.99999974E-6 : f32
    %237 = vector.broadcast %cst_93 : f32 to vector<1x120xf32>
    %238 = arith.addf %234, %237 : vector<1x120xf32>
    %239 = math.rsqrt %238 : vector<1x120xf32>
    %240 = vector.broadcast %239 : vector<1x120xf32> to vector<8x120xf32>
    %241 = arith.mulf %236, %240 : vector<8x120xf32>
    %242 = vector.broadcast %220 : vector<1x120xf32> to vector<8x120xf32>
    %243 = arith.mulf %242, %241 : vector<8x120xf32>
    %244 = vector.broadcast %221 : vector<1x120xf32> to vector<8x120xf32>
    %245 = arith.addf %243, %244 : vector<8x120xf32>
    %246 = vector.extract_strided_slice %185 {offsets = [4, 0], sizes = [1, 120], strides = [1, 1]} : vector<6x120xf32> to vector<1x120xf32>
    %247 = vector.extract_strided_slice %185 {offsets = [5, 0], sizes = [1, 120], strides = [1, 1]} : vector<6x120xf32> to vector<1x120xf32>
    %248 = vector.broadcast %0 : vector<8x1xf32> to vector<8x120xf32>
    %249 = arith.mulf %189, %248 : vector<8x120xf32>
    %cst_94 = arith.constant dense<0.000000e+00> : vector<120xf32>
    %250 = vector.multi_reduction <add>, %249, %cst_94 [0] : vector<8x120xf32> to vector<120xf32>
    %251 = vector.shape_cast %250 : vector<120xf32> to vector<1x120xf32>
    %252 = arith.mulf %249, %249 : vector<8x120xf32>
    %cst_95 = arith.constant dense<0.000000e+00> : vector<120xf32>
    %253 = vector.multi_reduction <add>, %252, %cst_95 [0] : vector<8x120xf32> to vector<120xf32>
    %254 = vector.shape_cast %253 : vector<120xf32> to vector<1x120xf32>
    %cst_96 = arith.constant dense<0.000000e+00> : vector<1x120xf32>
    %255 = tpu.matmul %251, %184, %cst_96 {dimension_numbers = #tpu.dot_dimension_numbers<[1], [0], [0], [1], [0, 0, 1, 1], [], []>} : vector<1x120xf32>, vector<120x120xf32>, vector<1x120xf32> -> vector<1x120xf32>
    %cst_97 = arith.constant dense<0.000000e+00> : vector<1x120xf32>
    %256 = tpu.matmul %254, %184, %cst_97 {dimension_numbers = #tpu.dot_dimension_numbers<[1], [0], [0], [1], [0, 0, 1, 1], [], []>} : vector<1x120xf32>, vector<120x120xf32>, vector<1x120xf32> -> vector<1x120xf32>
    %257 = arith.mulf %255, %255 : vector<1x120xf32>
    %258 = arith.subf %256, %257 : vector<1x120xf32>
    %cst_98 = arith.constant 0.000000e+00 : f32
    %259 = vector.broadcast %cst_98 : f32 to vector<1x120xf32>
    %260 = arith.maximumf %258, %259 : vector<1x120xf32>
    %261 = vector.broadcast %255 : vector<1x120xf32> to vector<8x120xf32>
    %262 = arith.subf %189, %261 : vector<8x120xf32>
    %cst_99 = arith.constant 9.99999974E-6 : f32
    %263 = vector.broadcast %cst_99 : f32 to vector<1x120xf32>
    %264 = arith.addf %260, %263 : vector<1x120xf32>
    %265 = math.rsqrt %264 : vector<1x120xf32>
    %266 = vector.broadcast %265 : vector<1x120xf32> to vector<8x120xf32>
    %267 = arith.mulf %262, %266 : vector<8x120xf32>
    %268 = vector.broadcast %246 : vector<1x120xf32> to vector<8x120xf32>
    %269 = arith.mulf %268, %267 : vector<8x120xf32>
    %270 = vector.broadcast %247 : vector<1x120xf32> to vector<8x120xf32>
    %271 = arith.addf %269, %270 : vector<8x120xf32>
    %272 = arith.addf %245, %271 : vector<8x120xf32>
    %cst_100 = arith.constant 0.000000e+00 : f32
    %273 = vector.broadcast %cst_100 : f32 to vector<8x120xf32>
    %274 = arith.maximumf %272, %273 : vector<8x120xf32>
    %c0_101 = arith.constant 0 : index
    %c0_102 = arith.constant 0 : index
    %275 = vector.load %arg20[%c0_101, %c0_102] : memref<80x80xf32, #tpu.memory_space<vmem>>, vector<80x80xf32>
    %c0_103 = arith.constant 0 : index
    %c0_104 = arith.constant 0 : index
    %276 = vector.load %arg21[%c0_103, %c0_104] : memref<6x80xf32, #tpu.memory_space<vmem>>, vector<6x80xf32>
    %c0_105 = arith.constant 0 : index
    %c0_106 = arith.constant 0 : index
    %277 = vector.load %arg17[%c0_105, %c0_106] : memref<120x80xf32, #tpu.memory_space<vmem>>, vector<120x80xf32>
    %cst_107 = arith.constant dense<0.000000e+00> : vector<8x80xf32>
    %278 = tpu.matmul %274, %277, %cst_107 {dimension_numbers = #tpu.dot_dimension_numbers<[1], [0], [0], [1], [0, 0, 1, 1], [], []>} : vector<8x120xf32>, vector<120x80xf32>, vector<8x80xf32> -> vector<8x80xf32>
    %c0_108 = arith.constant 0 : index
    %c0_109 = arith.constant 0 : index
    %279 = vector.load %arg19[%c0_108, %c0_109] : memref<120x80xf32, #tpu.memory_space<vmem>>, vector<120x80xf32>
    %cst_110 = arith.constant dense<0.000000e+00> : vector<8x80xf32>
    %280 = tpu.matmul %274, %279, %cst_110 {dimension_numbers = #tpu.dot_dimension_numbers<[1], [0], [0], [1], [0, 0, 1, 1], [], []>} : vector<8x120xf32>, vector<120x80xf32>, vector<8x80xf32> -> vector<8x80xf32>
    %281 = vector.extract_strided_slice %276 {offsets = [0, 0], sizes = [1, 80], strides = [1, 1]} : vector<6x80xf32> to vector<1x80xf32>
    %282 = vector.extract_strided_slice %276 {offsets = [1, 0], sizes = [1, 80], strides = [1, 1]} : vector<6x80xf32> to vector<1x80xf32>
    %283 = vector.broadcast %0 : vector<8x1xf32> to vector<8x80xf32>
    %284 = arith.mulf %278, %283 : vector<8x80xf32>
    %cst_111 = arith.constant dense<0.000000e+00> : vector<80xf32>
    %285 = vector.multi_reduction <add>, %284, %cst_111 [0] : vector<8x80xf32> to vector<80xf32>
    %286 = vector.shape_cast %285 : vector<80xf32> to vector<1x80xf32>
    %287 = arith.mulf %284, %284 : vector<8x80xf32>
    %cst_112 = arith.constant dense<0.000000e+00> : vector<80xf32>
    %288 = vector.multi_reduction <add>, %287, %cst_112 [0] : vector<8x80xf32> to vector<80xf32>
    %289 = vector.shape_cast %288 : vector<80xf32> to vector<1x80xf32>
    %cst_113 = arith.constant dense<0.000000e+00> : vector<1x80xf32>
    %290 = tpu.matmul %286, %275, %cst_113 {dimension_numbers = #tpu.dot_dimension_numbers<[1], [0], [0], [1], [0, 0, 1, 1], [], []>} : vector<1x80xf32>, vector<80x80xf32>, vector<1x80xf32> -> vector<1x80xf32>
    %cst_114 = arith.constant dense<0.000000e+00> : vector<1x80xf32>
    %291 = tpu.matmul %289, %275, %cst_114 {dimension_numbers = #tpu.dot_dimension_numbers<[1], [0], [0], [1], [0, 0, 1, 1], [], []>} : vector<1x80xf32>, vector<80x80xf32>, vector<1x80xf32> -> vector<1x80xf32>
    %292 = arith.mulf %290, %290 : vector<1x80xf32>
    %293 = arith.subf %291, %292 : vector<1x80xf32>
    %cst_115 = arith.constant 0.000000e+00 : f32
    %294 = vector.broadcast %cst_115 : f32 to vector<1x80xf32>
    %295 = arith.maximumf %293, %294 : vector<1x80xf32>
    %296 = vector.broadcast %290 : vector<1x80xf32> to vector<8x80xf32>
    %297 = arith.subf %278, %296 : vector<8x80xf32>
    %cst_116 = arith.constant 9.99999974E-6 : f32
    %298 = vector.broadcast %cst_116 : f32 to vector<1x80xf32>
    %299 = arith.addf %295, %298 : vector<1x80xf32>
    %300 = math.rsqrt %299 : vector<1x80xf32>
    %301 = vector.broadcast %300 : vector<1x80xf32> to vector<8x80xf32>
    %302 = arith.mulf %297, %301 : vector<8x80xf32>
    %303 = vector.broadcast %281 : vector<1x80xf32> to vector<8x80xf32>
    %304 = arith.mulf %303, %302 : vector<8x80xf32>
    %305 = vector.broadcast %282 : vector<1x80xf32> to vector<8x80xf32>
    %306 = arith.addf %304, %305 : vector<8x80xf32>
    %cst_117 = arith.constant 0.000000e+00 : f32
    %307 = vector.broadcast %cst_117 : f32 to vector<8x80xf32>
    %308 = arith.maximumf %306, %307 : vector<8x80xf32>
    %c0_118 = arith.constant 0 : index
    %c0_119 = arith.constant 0 : index
    %309 = vector.load %arg18[%c0_118, %c0_119] : memref<80x80xf32, #tpu.memory_space<vmem>>, vector<80x80xf32>
    %cst_120 = arith.constant dense<0.000000e+00> : vector<8x80xf32>
    %310 = tpu.matmul %308, %309, %cst_120 {dimension_numbers = #tpu.dot_dimension_numbers<[1], [0], [0], [1], [0, 0, 1, 1], [], []>} : vector<8x80xf32>, vector<80x80xf32>, vector<8x80xf32> -> vector<8x80xf32>
    %311 = vector.extract_strided_slice %276 {offsets = [2, 0], sizes = [1, 80], strides = [1, 1]} : vector<6x80xf32> to vector<1x80xf32>
    %312 = vector.extract_strided_slice %276 {offsets = [3, 0], sizes = [1, 80], strides = [1, 1]} : vector<6x80xf32> to vector<1x80xf32>
    %313 = vector.broadcast %0 : vector<8x1xf32> to vector<8x80xf32>
    %314 = arith.mulf %310, %313 : vector<8x80xf32>
    %cst_121 = arith.constant dense<0.000000e+00> : vector<80xf32>
    %315 = vector.multi_reduction <add>, %314, %cst_121 [0] : vector<8x80xf32> to vector<80xf32>
    %316 = vector.shape_cast %315 : vector<80xf32> to vector<1x80xf32>
    %317 = arith.mulf %314, %314 : vector<8x80xf32>
    %cst_122 = arith.constant dense<0.000000e+00> : vector<80xf32>
    %318 = vector.multi_reduction <add>, %317, %cst_122 [0] : vector<8x80xf32> to vector<80xf32>
    %319 = vector.shape_cast %318 : vector<80xf32> to vector<1x80xf32>
    %cst_123 = arith.constant dense<0.000000e+00> : vector<1x80xf32>
    %320 = tpu.matmul %316, %275, %cst_123 {dimension_numbers = #tpu.dot_dimension_numbers<[1], [0], [0], [1], [0, 0, 1, 1], [], []>} : vector<1x80xf32>, vector<80x80xf32>, vector<1x80xf32> -> vector<1x80xf32>
    %cst_124 = arith.constant dense<0.000000e+00> : vector<1x80xf32>
    %321 = tpu.matmul %319, %275, %cst_124 {dimension_numbers = #tpu.dot_dimension_numbers<[1], [0], [0], [1], [0, 0, 1, 1], [], []>} : vector<1x80xf32>, vector<80x80xf32>, vector<1x80xf32> -> vector<1x80xf32>
    %322 = arith.mulf %320, %320 : vector<1x80xf32>
    %323 = arith.subf %321, %322 : vector<1x80xf32>
    %cst_125 = arith.constant 0.000000e+00 : f32
    %324 = vector.broadcast %cst_125 : f32 to vector<1x80xf32>
    %325 = arith.maximumf %323, %324 : vector<1x80xf32>
    %326 = vector.broadcast %320 : vector<1x80xf32> to vector<8x80xf32>
    %327 = arith.subf %310, %326 : vector<8x80xf32>
    %cst_126 = arith.constant 9.99999974E-6 : f32
    %328 = vector.broadcast %cst_126 : f32 to vector<1x80xf32>
    %329 = arith.addf %325, %328 : vector<1x80xf32>
    %330 = math.rsqrt %329 : vector<1x80xf32>
    %331 = vector.broadcast %330 : vector<1x80xf32> to vector<8x80xf32>
    %332 = arith.mulf %327, %331 : vector<8x80xf32>
    %333 = vector.broadcast %311 : vector<1x80xf32> to vector<8x80xf32>
    %334 = arith.mulf %333, %332 : vector<8x80xf32>
    %335 = vector.broadcast %312 : vector<1x80xf32> to vector<8x80xf32>
    %336 = arith.addf %334, %335 : vector<8x80xf32>
    %337 = vector.extract_strided_slice %276 {offsets = [4, 0], sizes = [1, 80], strides = [1, 1]} : vector<6x80xf32> to vector<1x80xf32>
    %338 = vector.extract_strided_slice %276 {offsets = [5, 0], sizes = [1, 80], strides = [1, 1]} : vector<6x80xf32> to vector<1x80xf32>
    %339 = vector.broadcast %0 : vector<8x1xf32> to vector<8x80xf32>
    %340 = arith.mulf %280, %339 : vector<8x80xf32>
    %cst_127 = arith.constant dense<0.000000e+00> : vector<80xf32>
    %341 = vector.multi_reduction <add>, %340, %cst_127 [0] : vector<8x80xf32> to vector<80xf32>
    %342 = vector.shape_cast %341 : vector<80xf32> to vector<1x80xf32>
    %343 = arith.mulf %340, %340 : vector<8x80xf32>
    %cst_128 = arith.constant dense<0.000000e+00> : vector<80xf32>
    %344 = vector.multi_reduction <add>, %343, %cst_128 [0] : vector<8x80xf32> to vector<80xf32>
    %345 = vector.shape_cast %344 : vector<80xf32> to vector<1x80xf32>
    %cst_129 = arith.constant dense<0.000000e+00> : vector<1x80xf32>
    %346 = tpu.matmul %342, %275, %cst_129 {dimension_numbers = #tpu.dot_dimension_numbers<[1], [0], [0], [1], [0, 0, 1, 1], [], []>} : vector<1x80xf32>, vector<80x80xf32>, vector<1x80xf32> -> vector<1x80xf32>
    %cst_130 = arith.constant dense<0.000000e+00> : vector<1x80xf32>
    %347 = tpu.matmul %345, %275, %cst_130 {dimension_numbers = #tpu.dot_dimension_numbers<[1], [0], [0], [1], [0, 0, 1, 1], [], []>} : vector<1x80xf32>, vector<80x80xf32>, vector<1x80xf32> -> vector<1x80xf32>
    %348 = arith.mulf %346, %346 : vector<1x80xf32>
    %349 = arith.subf %347, %348 : vector<1x80xf32>
    %cst_131 = arith.constant 0.000000e+00 : f32
    %350 = vector.broadcast %cst_131 : f32 to vector<1x80xf32>
    %351 = arith.maximumf %349, %350 : vector<1x80xf32>
    %352 = vector.broadcast %346 : vector<1x80xf32> to vector<8x80xf32>
    %353 = arith.subf %280, %352 : vector<8x80xf32>
    %cst_132 = arith.constant 9.99999974E-6 : f32
    %354 = vector.broadcast %cst_132 : f32 to vector<1x80xf32>
    %355 = arith.addf %351, %354 : vector<1x80xf32>
    %356 = math.rsqrt %355 : vector<1x80xf32>
    %357 = vector.broadcast %356 : vector<1x80xf32> to vector<8x80xf32>
    %358 = arith.mulf %353, %357 : vector<8x80xf32>
    %359 = vector.broadcast %337 : vector<1x80xf32> to vector<8x80xf32>
    %360 = arith.mulf %359, %358 : vector<8x80xf32>
    %361 = vector.broadcast %338 : vector<1x80xf32> to vector<8x80xf32>
    %362 = arith.addf %360, %361 : vector<8x80xf32>
    %363 = arith.addf %336, %362 : vector<8x80xf32>
    %cst_133 = arith.constant 0.000000e+00 : f32
    %364 = vector.broadcast %cst_133 : f32 to vector<8x80xf32>
    %365 = arith.maximumf %363, %364 : vector<8x80xf32>
    %c0_134 = arith.constant 0 : index
    %c0_135 = arith.constant 0 : index
    %366 = vector.load %arg25[%c0_134, %c0_135] : memref<40x40xf32, #tpu.memory_space<vmem>>, vector<40x40xf32>
    %c0_136 = arith.constant 0 : index
    %c0_137 = arith.constant 0 : index
    %367 = vector.load %arg26[%c0_136, %c0_137] : memref<6x40xf32, #tpu.memory_space<vmem>>, vector<6x40xf32>
    %c0_138 = arith.constant 0 : index
    %c0_139 = arith.constant 0 : index
    %368 = vector.load %arg22[%c0_138, %c0_139] : memref<80x40xf32, #tpu.memory_space<vmem>>, vector<80x40xf32>
    %cst_140 = arith.constant dense<0.000000e+00> : vector<8x40xf32>
    %369 = tpu.matmul %365, %368, %cst_140 {dimension_numbers = #tpu.dot_dimension_numbers<[1], [0], [0], [1], [0, 0, 1, 1], [], []>} : vector<8x80xf32>, vector<80x40xf32>, vector<8x40xf32> -> vector<8x40xf32>
    %c0_141 = arith.constant 0 : index
    %c0_142 = arith.constant 0 : index
    %370 = vector.load %arg24[%c0_141, %c0_142] : memref<80x40xf32, #tpu.memory_space<vmem>>, vector<80x40xf32>
    %cst_143 = arith.constant dense<0.000000e+00> : vector<8x40xf32>
    %371 = tpu.matmul %365, %370, %cst_143 {dimension_numbers = #tpu.dot_dimension_numbers<[1], [0], [0], [1], [0, 0, 1, 1], [], []>} : vector<8x80xf32>, vector<80x40xf32>, vector<8x40xf32> -> vector<8x40xf32>
    %372 = vector.extract_strided_slice %367 {offsets = [0, 0], sizes = [1, 40], strides = [1, 1]} : vector<6x40xf32> to vector<1x40xf32>
    %373 = vector.extract_strided_slice %367 {offsets = [1, 0], sizes = [1, 40], strides = [1, 1]} : vector<6x40xf32> to vector<1x40xf32>
    %374 = vector.broadcast %0 : vector<8x1xf32> to vector<8x40xf32>
    %375 = arith.mulf %369, %374 : vector<8x40xf32>
    %cst_144 = arith.constant dense<0.000000e+00> : vector<40xf32>
    %376 = vector.multi_reduction <add>, %375, %cst_144 [0] : vector<8x40xf32> to vector<40xf32>
    %377 = vector.shape_cast %376 : vector<40xf32> to vector<1x40xf32>
    %378 = arith.mulf %375, %375 : vector<8x40xf32>
    %cst_145 = arith.constant dense<0.000000e+00> : vector<40xf32>
    %379 = vector.multi_reduction <add>, %378, %cst_145 [0] : vector<8x40xf32> to vector<40xf32>
    %380 = vector.shape_cast %379 : vector<40xf32> to vector<1x40xf32>
    %cst_146 = arith.constant dense<0.000000e+00> : vector<1x40xf32>
    %381 = tpu.matmul %377, %366, %cst_146 {dimension_numbers = #tpu.dot_dimension_numbers<[1], [0], [0], [1], [0, 0, 1, 1], [], []>} : vector<1x40xf32>, vector<40x40xf32>, vector<1x40xf32> -> vector<1x40xf32>
    %cst_147 = arith.constant dense<0.000000e+00> : vector<1x40xf32>
    %382 = tpu.matmul %380, %366, %cst_147 {dimension_numbers = #tpu.dot_dimension_numbers<[1], [0], [0], [1], [0, 0, 1, 1], [], []>} : vector<1x40xf32>, vector<40x40xf32>, vector<1x40xf32> -> vector<1x40xf32>
    %383 = arith.mulf %381, %381 : vector<1x40xf32>
    %384 = arith.subf %382, %383 : vector<1x40xf32>
    %cst_148 = arith.constant 0.000000e+00 : f32
    %385 = vector.broadcast %cst_148 : f32 to vector<1x40xf32>
    %386 = arith.maximumf %384, %385 : vector<1x40xf32>
    %387 = vector.broadcast %381 : vector<1x40xf32> to vector<8x40xf32>
    %388 = arith.subf %369, %387 : vector<8x40xf32>
    %cst_149 = arith.constant 9.99999974E-6 : f32
    %389 = vector.broadcast %cst_149 : f32 to vector<1x40xf32>
    %390 = arith.addf %386, %389 : vector<1x40xf32>
    %391 = math.rsqrt %390 : vector<1x40xf32>
    %392 = vector.broadcast %391 : vector<1x40xf32> to vector<8x40xf32>
    %393 = arith.mulf %388, %392 : vector<8x40xf32>
    %394 = vector.broadcast %372 : vector<1x40xf32> to vector<8x40xf32>
    %395 = arith.mulf %394, %393 : vector<8x40xf32>
    %396 = vector.broadcast %373 : vector<1x40xf32> to vector<8x40xf32>
    %397 = arith.addf %395, %396 : vector<8x40xf32>
    %cst_150 = arith.constant 0.000000e+00 : f32
    %398 = vector.broadcast %cst_150 : f32 to vector<8x40xf32>
    %399 = arith.maximumf %397, %398 : vector<8x40xf32>
    %c0_151 = arith.constant 0 : index
    %c0_152 = arith.constant 0 : index
    %400 = vector.load %arg23[%c0_151, %c0_152] : memref<40x40xf32, #tpu.memory_space<vmem>>, vector<40x40xf32>
    %cst_153 = arith.constant dense<0.000000e+00> : vector<8x40xf32>
    %401 = tpu.matmul %399, %400, %cst_153 {dimension_numbers = #tpu.dot_dimension_numbers<[1], [0], [0], [1], [0, 0, 1, 1], [], []>} : vector<8x40xf32>, vector<40x40xf32>, vector<8x40xf32> -> vector<8x40xf32>
    %402 = vector.extract_strided_slice %367 {offsets = [2, 0], sizes = [1, 40], strides = [1, 1]} : vector<6x40xf32> to vector<1x40xf32>
    %403 = vector.extract_strided_slice %367 {offsets = [3, 0], sizes = [1, 40], strides = [1, 1]} : vector<6x40xf32> to vector<1x40xf32>
    %404 = vector.broadcast %0 : vector<8x1xf32> to vector<8x40xf32>
    %405 = arith.mulf %401, %404 : vector<8x40xf32>
    %cst_154 = arith.constant dense<0.000000e+00> : vector<40xf32>
    %406 = vector.multi_reduction <add>, %405, %cst_154 [0] : vector<8x40xf32> to vector<40xf32>
    %407 = vector.shape_cast %406 : vector<40xf32> to vector<1x40xf32>
    %408 = arith.mulf %405, %405 : vector<8x40xf32>
    %cst_155 = arith.constant dense<0.000000e+00> : vector<40xf32>
    %409 = vector.multi_reduction <add>, %408, %cst_155 [0] : vector<8x40xf32> to vector<40xf32>
    %410 = vector.shape_cast %409 : vector<40xf32> to vector<1x40xf32>
    %cst_156 = arith.constant dense<0.000000e+00> : vector<1x40xf32>
    %411 = tpu.matmul %407, %366, %cst_156 {dimension_numbers = #tpu.dot_dimension_numbers<[1], [0], [0], [1], [0, 0, 1, 1], [], []>} : vector<1x40xf32>, vector<40x40xf32>, vector<1x40xf32> -> vector<1x40xf32>
    %cst_157 = arith.constant dense<0.000000e+00> : vector<1x40xf32>
    %412 = tpu.matmul %410, %366, %cst_157 {dimension_numbers = #tpu.dot_dimension_numbers<[1], [0], [0], [1], [0, 0, 1, 1], [], []>} : vector<1x40xf32>, vector<40x40xf32>, vector<1x40xf32> -> vector<1x40xf32>
    %413 = arith.mulf %411, %411 : vector<1x40xf32>
    %414 = arith.subf %412, %413 : vector<1x40xf32>
    %cst_158 = arith.constant 0.000000e+00 : f32
    %415 = vector.broadcast %cst_158 : f32 to vector<1x40xf32>
    %416 = arith.maximumf %414, %415 : vector<1x40xf32>
    %417 = vector.broadcast %411 : vector<1x40xf32> to vector<8x40xf32>
    %418 = arith.subf %401, %417 : vector<8x40xf32>
    %cst_159 = arith.constant 9.99999974E-6 : f32
    %419 = vector.broadcast %cst_159 : f32 to vector<1x40xf32>
    %420 = arith.addf %416, %419 : vector<1x40xf32>
    %421 = math.rsqrt %420 : vector<1x40xf32>
    %422 = vector.broadcast %421 : vector<1x40xf32> to vector<8x40xf32>
    %423 = arith.mulf %418, %422 : vector<8x40xf32>
    %424 = vector.broadcast %402 : vector<1x40xf32> to vector<8x40xf32>
    %425 = arith.mulf %424, %423 : vector<8x40xf32>
    %426 = vector.broadcast %403 : vector<1x40xf32> to vector<8x40xf32>
    %427 = arith.addf %425, %426 : vector<8x40xf32>
    %428 = vector.extract_strided_slice %367 {offsets = [4, 0], sizes = [1, 40], strides = [1, 1]} : vector<6x40xf32> to vector<1x40xf32>
    %429 = vector.extract_strided_slice %367 {offsets = [5, 0], sizes = [1, 40], strides = [1, 1]} : vector<6x40xf32> to vector<1x40xf32>
    %430 = vector.broadcast %0 : vector<8x1xf32> to vector<8x40xf32>
    %431 = arith.mulf %371, %430 : vector<8x40xf32>
    %cst_160 = arith.constant dense<0.000000e+00> : vector<40xf32>
    %432 = vector.multi_reduction <add>, %431, %cst_160 [0] : vector<8x40xf32> to vector<40xf32>
    %433 = vector.shape_cast %432 : vector<40xf32> to vector<1x40xf32>
    %434 = arith.mulf %431, %431 : vector<8x40xf32>
    %cst_161 = arith.constant dense<0.000000e+00> : vector<40xf32>
    %435 = vector.multi_reduction <add>, %434, %cst_161 [0] : vector<8x40xf32> to vector<40xf32>
    %436 = vector.shape_cast %435 : vector<40xf32> to vector<1x40xf32>
    %cst_162 = arith.constant dense<0.000000e+00> : vector<1x40xf32>
    %437 = tpu.matmul %433, %366, %cst_162 {dimension_numbers = #tpu.dot_dimension_numbers<[1], [0], [0], [1], [0, 0, 1, 1], [], []>} : vector<1x40xf32>, vector<40x40xf32>, vector<1x40xf32> -> vector<1x40xf32>
    %cst_163 = arith.constant dense<0.000000e+00> : vector<1x40xf32>
    %438 = tpu.matmul %436, %366, %cst_163 {dimension_numbers = #tpu.dot_dimension_numbers<[1], [0], [0], [1], [0, 0, 1, 1], [], []>} : vector<1x40xf32>, vector<40x40xf32>, vector<1x40xf32> -> vector<1x40xf32>
    %439 = arith.mulf %437, %437 : vector<1x40xf32>
    %440 = arith.subf %438, %439 : vector<1x40xf32>
    %cst_164 = arith.constant 0.000000e+00 : f32
    %441 = vector.broadcast %cst_164 : f32 to vector<1x40xf32>
    %442 = arith.maximumf %440, %441 : vector<1x40xf32>
    %443 = vector.broadcast %437 : vector<1x40xf32> to vector<8x40xf32>
    %444 = arith.subf %371, %443 : vector<8x40xf32>
    %cst_165 = arith.constant 9.99999974E-6 : f32
    %445 = vector.broadcast %cst_165 : f32 to vector<1x40xf32>
    %446 = arith.addf %442, %445 : vector<1x40xf32>
    %447 = math.rsqrt %446 : vector<1x40xf32>
    %448 = vector.broadcast %447 : vector<1x40xf32> to vector<8x40xf32>
    %449 = arith.mulf %444, %448 : vector<8x40xf32>
    %450 = vector.broadcast %428 : vector<1x40xf32> to vector<8x40xf32>
    %451 = arith.mulf %450, %449 : vector<8x40xf32>
    %452 = vector.broadcast %429 : vector<1x40xf32> to vector<8x40xf32>
    %453 = arith.addf %451, %452 : vector<8x40xf32>
    %454 = arith.addf %427, %453 : vector<8x40xf32>
    %cst_166 = arith.constant 0.000000e+00 : f32
    %455 = vector.broadcast %cst_166 : f32 to vector<8x40xf32>
    %456 = arith.maximumf %454, %455 : vector<8x40xf32>
    %c0_167 = arith.constant 0 : index
    %c0_168 = arith.constant 0 : index
    %457 = vector.load %arg27[%c0_167, %c0_168] : memref<1x40xf32, #tpu.memory_space<vmem>>, vector<1x40xf32>
    %cst_169 = arith.constant dense<0.000000e+00> : vector<1x8xf32>
    %458 = tpu.matmul %457, %456, %cst_169 {dimension_numbers = #tpu.dot_dimension_numbers<[1], [1], [0], [0], [0, 0, 1, 0], [], []>} : vector<1x40xf32>, vector<8x40xf32>, vector<1x8xf32> -> vector<1x8xf32>
    %c0_170 = arith.constant 0 : index
    %c0_171 = arith.constant 0 : index
    %459 = vector.load %arg28[%c0_170, %c0_171] : memref<1x1xf32, #tpu.memory_space<vmem>>, vector<1x1xf32>
    %460 = vector.broadcast %459 : vector<1x1xf32> to vector<1x8xf32>
    %461 = arith.addf %458, %460 : vector<1x8xf32>
    %c0_172 = arith.constant 0 : index
    %c0_173 = arith.constant 0 : index
    %462 = vector.load %arg29[%c0_172, %c0_173] : memref<1x8xf32, #tpu.memory_space<vmem>>, vector<1x8xf32>
    tpu.vector_store %arg29[%c0_172, %c0_173], %461 {strides = array<i32>} : memref<1x8xf32, #tpu.memory_space<vmem>>, vector<1x8xf32>,
    return
  }
}

</mosaic_0001>

<bundles_post_ra>
// kernel: cnn_forward.1
= control target key start
LH: loop header
LB: loop body
LE: loop exit
PB: predicated region body
PF: predicated region fallthrough
CT: control target
= control target key end

     0   :  { %s6926_s3 = smov 2   ;;  %v6927_v0 = vmov 0.0   ;;  %v6928_v1 = vmov 0   ;;  %s6929_s7 = smov 5   ;;  %vm178_vm0 = vcmask 1043456   ;;  %vm174_vm1 = vcmask 162816   ;;  %s8464_s0 = inlined_call_operand.smem [shape: u32[30], index: -1, kind: input, shape index: {}] }
   0x1   :  { %s4810_s6 = sld [smem:[%s8464_s0 + %s6926_s3]]   ;;  %249 = vmatprep.mubr.f32.mxu0 %v6927_v0  ;;  %332 = vmatprep.mubr.f32.mxu1 %v6927_v0  ;;  %s6930_s11 = smov 4   ;;  %vm352_vm2 = vcmask 261120   ;;  %vm6944_vm3 = vmmov 0   ;;  %vm2420_vm4 = vcmask 982016   ;;  %vm3257_vm5 = vcmask 654336  }
   0x2   :  { %6883 = vset.pattern.permute.xlu0 %v6928_v1  ;;  %s6972_s10 = sld [smem:[%s8464_s0 + %s6929_s7]]   ;;  %s6931_s18 = smov 1   ;;  %vm4074_vm6 = vcmask 326656   ;;  %vm4803_vm7 = vcmask 57344  }
   0x3   :  { %s6977_s14 = sld [smem:[%s8464_s0 + %s6930_s11]]   ;;  %s6932_s22 = smov 28  }
   0x4   :  { %s1_s17 = sld [smem:[%s8464_s0]]   ;;  %s6933_s26 = smov 3  }
   0x5   :  { %s4809_s21 = sld [smem:[%s8464_s0 + %s6931_s18]]   ;;  %s6934_s30 = smov 6  }
   0x6   :  { %s4836_s25 = sld [smem:[%s8464_s0 + %s6932_s22]]   ;;  %s6935_s4 = smov 7  }
   0x7   :  { %v169_v2 = vld [vmem:[%s4810_s6 + $0x8] sm:$0xff]  ;;  %v171_v3 = vld [vmem:[%s4810_s6 + $0x18] sm:$0xff]  ;;  %v168_v4 = vld [vmem:[%s4810_s6] sm:$0xff]  ;;  %s7097_s29 = sld [smem:[%s8464_s0 + %s6933_s26]]   ;;  %s6936_s8 = smov 9  }
   0x8   :  { %v5776_v5 = vpack.c.bf16 %v171_v3, %v169_v2  ;;  %v170_v6 = vld [vmem:[%s4810_s6 + $0x10] sm:$0xff]  ;;  %v173_v8 = vld [vmem:[%s4810_s6 + $0x28] sm:$0xf]  ;;  %v129_v10 = vld [vmem:[%s6972_s10 + $0x18] sm:$0xff]  ;;  %s4814_s3 = sld [smem:[%s8464_s0 + %s6934_s30]]   ;;  %s6937_s12 = smov 10  }
   0x9   :  { %v5778_v7 = vpack.c.bf16 %v170_v6, %v168_v4  ;;  %v127_v9 = vld [vmem:[%s6972_s10 + $0x8] sm:$0xff]  ;;  %v172_v11 = vld [vmem:[%s4810_s6 + $0x20] sm:$0xf]  ;;  %v128_v14 = vld [vmem:[%s6972_s10 + $0x10] sm:$0xff]  ;;  %s7316_s7 = sld [smem:[%s8464_s0 + %s6935_s4]]   ;;  %s6938_s16 = smov 8  }
   0xa   :  { %5777 = vmatprep.subr.bf16.mxu0 %v5776_v5  ;;  %v6991_v12 = vpack.c.bf16 %v129_v10, %v127_v9  ;;  %v126_v13 = vld [vmem:[%s6972_s10] sm:$0xff]  ;;  %v131_v15 = vld [vmem:[%s6972_s10 + $0x28] sm:$0xff]  ;;  %v133_v16 = vld [vmem:[%s6972_s10 + $0x38] sm:$0xff]  ;;  %s7321_s11 = sld [smem:[%s8464_s0 + %s6936_s8]]   ;;  %s6939_s20 = smov 11  }
   0xb   :  { %5779 = vmatpush1.bf16.msra.mxu0 %v5778_v7  ;;  %v257_v17 = vld [vmem:[%s6977_s14 + $0x8] sm:$0xff]  ;;  %v259_v18 = vld [vmem:[%s6977_s14 + $0x18] sm:$0xff]  ;;  %v256_v19 = vld [vmem:[%s6977_s14] sm:$0xff]  ;;  %v7003_v22 = vpack.c.bf16 %v128_v14, %v126_v13  ;;  %v7006_v27 = vpack.c.bf16 %v133_v16, %v131_v15  ;;  %s7395_s15 = sld [smem:[%s8464_s0 + %s6937_s12]]   ;;  %s6940_s24 = smov 12  }
   0xc   :  { %4838 = vmatprep.subr.msk.mxu0 %vm178_vm0, %v173_v8  ;;  %v5780_v20 = vpack.c.bf16 %v259_v18, %v257_v17  ;;  %v258_v21 = vld [vmem:[%s6977_s14 + $0x10] sm:$0xff]  ;;  %v261_v24 = vld [vmem:[%s6977_s14 + $0x28] sm:$0xf]  ;;  %v125_v25 = vld [vmem:[%s1_s17] sm:$0xff]  ;;  %v64_v28 = vstv %s4836_s25  ;;  %s7555_s19 = sld [smem:[%s8464_s0 + %s6938_s16]]   ;;  %s6941_s28 = smov 14  }
   0xd   :  { %v5782_v23 = vpack.c.bf16 %v258_v21, %v256_v19  ;;  %v124_v26 = vld [vmem:[%s4809_s21] sm:$0xff]  ;;  %v132_v30 = vld [vmem:[%s6972_s10 + $0x30] sm:$0xff]  ;;  %65 = vst [vmem:[#allocation2] sm:$0x1] %v64_v28  ;;  %v135_v31 = vld [vmem:[%s6972_s10 + $0x48] sm:$0xff]  ;;  %s4819_s23 = sld [smem:[%s8464_s0 + %s6939_s20]]   ;;  %s6943_s2 = smov 15  }
   0xe   :  { %5781 = vmatprep.subr.bf16.mxu1 %v5780_v20  ;;  %v130_v29 = vld [vmem:[%s6972_s10 + $0x20] sm:$0xff]  ;;  %341 = vperm.xlu0 %6883, %v124_v26   ;;  %v137_v32 = vld [vmem:[%s6972_s10 + $0x58] sm:$0xff]  ;;  %v136_v37 = vld [vmem:[%s6972_s10 + $0x50] sm:$0xff]  ;;  %s7756_s27 = sld [smem:[%s8464_s0 + %s6940_s24]]   ;;  %s6945_s6 = smov 13  }
   0xf   :  { %4839 = vmatpush1.msk.msra.mxu0 %vm178_vm0, %v172_v11  ;;  %5783 = vmatpush1.bf16.msra.mxu1 %v5782_v23  ;;  %v260_v33 = vld [vmem:[%s6977_s14 + $0x20] sm:$0xf]  ;;  %v7017_v34 = vpack.c.bf16 %v132_v30, %v130_v29  ;;  %v7019_v35 = vpack.c.bf16 %v137_v32, %v135_v31  ;;  %v139_v38 = vld [vmem:[%s6972_s10 + $0x68] sm:$0xff]  ;;  %v141_v39 = vld [vmem:[%s6972_s10 + $0x78] sm:$0xff]  ;;  %s7761_s1 = sld [smem:[%s8464_s0 + %s6941_s28]]   ;;  %s6947_s14 = smov 17  }
  0x10   :  { %5785 = vmatprep.subr.bf16.mxu0 %v6991_v12  ;;  %4840 = vmatmul.mubr.msk.f32.vlgmr.msra.gmra.mrb[0].mxu0 %vm174_vm1, %v125_v25  ;;  %v134_v36 = vld [vmem:[%s6972_s10 + $0x40] sm:$0xff]  ;;  %v7034_v42 = vpack.c.bf16 %v141_v39, %v139_v38  ;;  %v140_v44 = vld [vmem:[%s6972_s10 + $0x70] sm:$0xff]  ;;  %v143_v45 = vld [vmem:[%s6972_s10 + $0x88] sm:$0xff]  ;;  %s7845_s5 = sld [smem:[%s8464_s0 + %s6943_s2]]   ;;  %s6948_s18 = smov 19  }
  0x11   :  { %4841 = vmatprep.subr.msk.mxu1 %vm178_vm0, %v261_v24  ;;  %5787 = vmatpush1.bf16.msra.mxu0 %v7003_v22  ;;  %v7030_v40 = vpack.c.bf16 %v136_v37, %v134_v36  ;;  %v138_v43 = vld [vmem:[%s6972_s10 + $0x60] sm:$0xff]  ;;  %v145_v46 = vld [vmem:[%s6972_s10 + $0x98] sm:$0xff]  ;;  %v144_v50 = vld [vmem:[%s6972_s10 + $0x90] sm:$0xff]  ;;  %s7960_s9 = sld [smem:[%s8464_s0 + %s6945_s6]]   ;;  %s6949_s22 = smov 20  }
  0x12   :  { %5789 = vmatprep.subr.bf16.mxu0 %v7006_v27  ;;  %v7042_v47 = vpack.c.bf16 %v140_v44, %v138_v43  ;;  %v7046_v48 = vpack.c.bf16 %v145_v46, %v143_v45  ;;  %v142_v49 = vld [vmem:[%s6972_s10 + $0x80] sm:$0xff]  ;;  %v147_v51 = vld [vmem:[%s6972_s10 + $0xa8] sm:$0xff]  ;;  %v149_v52 = vld [vmem:[%s6972_s10 + $0xb8] sm:$0xff]  ;;  %s8073_s17 = sld [smem:[%s8464_s0 + %s6947_s14]]   ;;  %s6950_s26 = smov 18  }
  0x13   :  { %4842 = vmatpush1.msk.msra.mxu1 %vm178_vm0, %v260_v33  ;;  %v7054_v53 = vpack.c.bf16 %v144_v50, %v142_v49  ;;  %v7058_v54 = vpack.c.bf16 %v149_v52, %v147_v51  ;;  %v146_v55 = vld [vmem:[%s6972_s10 + $0xa0] sm:$0xff]  ;;  %v148_v56 = vld [vmem:[%s6972_s10 + $0xb0] sm:$0xff]  ;;  %v151_v58 = vld [vmem:[%s6972_s10 + $0xc8] sm:$0xff]  ;;  %s8078_s21 = sld [smem:[%s8464_s0 + %s6948_s18]]   ;;  %s6951_s30 = smov 21  }
  0x14   :  { %4843 = vmatmul.mubr.msk.f32.vlgmr.msra.gmra.mrb[0].mxu1 %vm174_vm1, %v125_v25  ;;  %5825 = vmatprep.subr.bf16.mxu1 %v6991_v12  ;;  %v4717_v41 = vld [vmem:[#allocation2] sm:$0x1]  ;;  %v7064_v57 = vpack.c.bf16 %v148_v56, %v146_v55  ;;  %v153_v59 = vld [vmem:[%s6972_s10 + $0xd8] sm:$0xff]  ;;  %v152_v62 = vld [vmem:[%s6972_s10 + $0xd0] sm:$0xff]  ;;  %s8136_s25 = sld [smem:[%s8464_s0 + %s6949_s22]]   ;;  %s6952_s4 = smov 22  }
  0x15   :  { %5827 = vmatpush1.bf16.msra.mxu1 %v7003_v22  ;;  %5791 = vmatpush1.bf16.msra.mxu0 %v7017_v34  ;;  %v7074_v60 = vpack.c.bf16 %v153_v59, %v151_v58  ;;  %v150_v61 = vld [vmem:[%s6972_s10 + $0xc0] sm:$0xff]  ;;  %v155_v1 = vld [vmem:[%s6972_s10 + $0xe8] sm:$0xff]  ;;  %v157_v2 = vld [vmem:[%s6972_s10 + $0xf8] sm:$0xff]  ;;  %s6953_s8 = smov 24   ;;  %s6954_s12 = smov 25  }
  0x16   :  { %5829 = vmatprep.subr.bf16.mxu1 %v7006_v27  ;;  %5793 = vmatprep.subr.bf16.mxu0 %v7019_v35  ;;  %v7078_v63 = vpack.c.bf16 %v152_v62, %v150_v61  ;;  %v7086_v3 = vpack.c.bf16 %v157_v2, %v155_v1  ;;  %v154_v4 = vld [vmem:[%s6972_s10 + $0xe0] sm:$0xff]  ;;  %v156_v5 = vld [vmem:[%s6972_s10 + $0xf0] sm:$0xff]  ;;  %v159_v7 = vld [vmem:[%s6972_s10 + $0x108] sm:$0xff]  ;;  %s6955_s16 = smov 23   ;;  %s6956_s20 = smov 26  }
  0x17   :  { %4720 = vperm.xlu0 %6883, %v4717_v41   ;;  %v7090_v6 = vpack.c.bf16 %v156_v5, %v154_v4  ;;  %v161_v8 = vld [vmem:[%s6972_s10 + $0x118] sm:$0xff]  ;;  %v158_v10 = vld [vmem:[%s6972_s10 + $0x100] sm:$0xff]  ;;  %v160_v11 = vld [vmem:[%s6972_s10 + $0x110] sm:$0xff]  ;;  %s6957_s24 = smov 27   ;;  %s6958_s28 = smov 29  }
  0x18   :  { %v7103_v9 = vpack.c.bf16 %v161_v8, %v159_v7  ;;  %v7107_v13 = vpack.c.bf16 %v160_v11, %v158_v10  ;;  %v163_v14 = vld [vmem:[%s6972_s10 + $0x128] sm:$0xff]  ;;  %v165_v15 = vld [vmem:[%s6972_s10 + $0x138] sm:$0xff]  ;;  %v162_v17 = vld [vmem:[%s6972_s10 + $0x120] sm:$0xff] }
  0x19   :  { %5831 = vmatpush1.bf16.msra.mxu1 %v7017_v34  ;;  %5795 = vmatpush1.bf16.msra.mxu0 %v7030_v40  ;;  %v7115_v16 = vpack.c.bf16 %v165_v15, %v163_v14  ;;  %v164_v18 = vld [vmem:[%s6972_s10 + $0x130] sm:$0xff]  ;;  %v576_v20 = vld [vmem:[%s7097_s29 + $0x8] sm:$0xff]  ;;  %v578_v21 = vld [vmem:[%s7097_s29 + $0x18] sm:$0xff]  ;;  %s6946_s10 = smov 16  }
  0x1a   :  { %5833 = vmatprep.subr.bf16.mxu1 %v7019_v35  ;;  %5797 = vmatprep.subr.bf16.mxu0 %v7034_v42  ;;  %v7119_v19 = vpack.c.bf16 %v164_v18, %v162_v17  ;;  %v5864_v23 = vpack.c.bf16 %v578_v21, %v576_v20  ;;  %v575_v62 = vld [vmem:[%s7097_s29] sm:$0xff]  ;;  %v577_v1 = vld [vmem:[%s7097_s29 + $0x10] sm:$0xff]  ;;  %v580_v5 = vld [vmem:[%s7097_s29 + $0x28] sm:$0xff]  ;;  %s4824_s13 = sld [smem:[%s8464_s0 + %s6946_s10]]  }
  0x1b   :  { %v582_v7 = vld [vmem:[%s7097_s29 + $0x38] sm:$0xff]  ;;  %v5866_v14 = vpack.c.bf16 %v577_v1, %v575_v62  ;;  %v579_v18 = vld [vmem:[%s7097_s29 + $0x20] sm:$0xff]  ;;  %v581_v20 = vld [vmem:[%s7097_s29 + $0x30] sm:$0xff] }
  0x1c   :  { %v5868_v17 = vpack.c.bf16 %v582_v7, %v580_v5  ;;  %v595_v62 = vld [vmem:[%s7097_s29 + $0xa0] sm:$0xff]  ;;  %v597_v1 = vld [vmem:[%s7097_s29 + $0xb0] sm:$0xff]  ;;  %v602_v5 = vld [vmem:[%s7097_s29 + $0xd8] sm:$0xff] }
  0x1d   :  { %5835 = vmatpush1.bf16.msra.mxu1 %v7030_v40  ;;  %5799 = vmatpush1.bf16.msra.mxu0 %v7042_v47 }
  0x1e   :  { %5837 = vmatprep.subr.bf16.mxu1 %v7034_v42  ;;  %5801 = vmatprep.subr.bf16.mxu0 %v7046_v48 }
  0x21   :  { %5839 = vmatpush1.bf16.msra.mxu1 %v7042_v47  ;;  %5803 = vmatpush1.bf16.msra.mxu0 %v7054_v53 }
  0x22   :  { %5841 = vmatprep.subr.bf16.mxu1 %v7046_v48  ;;  %5805 = vmatprep.subr.bf16.mxu0 %v7058_v54 }
  0x25   :  { %5843 = vmatpush1.bf16.msra.mxu1 %v7054_v53  ;;  %5807 = vmatpush1.bf16.msra.mxu0 %v7064_v57 }
  0x26   :  { %5845 = vmatprep.subr.bf16.mxu1 %v7058_v54  ;;  %5809 = vmatprep.subr.bf16.mxu0 %v7074_v60 }
  0x29   :  { %5847 = vmatpush1.bf16.msra.mxu1 %v7064_v57  ;;  %5811 = vmatpush1.bf16.msra.mxu0 %v7078_v63 }
  0x2a   :  { %5849 = vmatprep.subr.bf16.mxu1 %v7074_v60  ;;  %5813 = vmatprep.subr.bf16.mxu0 %v7086_v3 }
  0x2d   :  { %5851 = vmatpush1.bf16.msra.mxu1 %v7078_v63  ;;  %5815 = vmatpush1.bf16.msra.mxu0 %v7090_v6 }
  0x2e   :  { %5853 = vmatprep.subr.bf16.mxu1 %v7086_v3  ;;  %5817 = vmatprep.subr.bf16.mxu0 %v7103_v9 }
  0x31   :  { %5855 = vmatpush1.bf16.msra.mxu1 %v7090_v6  ;;  %5819 = vmatpush1.bf16.msra.mxu0 %v7107_v13 }
  0x32   :  { %5857 = vmatprep.subr.bf16.mxu1 %v7103_v9  ;;  %5821 = vmatprep.subr.bf16.mxu0 %v7115_v16 }
  0x35   :  { %5859 = vmatpush1.bf16.msra.mxu1 %v7107_v13  ;;  %5823 = vmatpush1.bf16.msra.mxu0 %v7119_v19 }
  0x36   :  { %5861 = vmatprep.subr.bf16.mxu1 %v7115_v16  ;;  %5865 = vmatprep.subr.bf16.mxu0 %v5864_v23 }
  0x39   :  { %5863 = vmatpush1.bf16.msra.mxu1 %v7119_v19 }
  0x3a   :  { %5905 = vmatprep.subr.bf16.mxu1 %v6991_v12 }
  0x8d   :  { %v7128_v24 = vpop.permute.xlu0 %341 }
  0xe3   :  { %v7130_v25 = vpop.f32.mrb[0].mxu0 }
  0xe4   :  { %v344_v26 = vmul.f32 %v7128_v24, %v7130_v25  ;;  %v7134_v28 = vpop.f32.mrb[1].mxu0 }
  0xe5   :  { %v345_v29 = vmul.f32 %v7128_v24, %v7134_v28 }
  0xe6   :  { %v346_v30 = vrot.slane %v344_v26, 4  ;;  %v360_v31 = vmul.f32 %v344_v26, %v344_v26 }
  0xe7   :  { %v353_v32 = vsel %vm352_vm2, %v345_v29, 0.0  ;;  %v361_v33 = vmul.f32 %v345_v29, %v345_v29  ;;  %v7139_v39 = vpop.f32.mrb[0].mxu1  ;;  %v584_v29 = vld [vmem:[%s7097_s29 + $0x48] sm:$0xff] }
  0xe8   :  { %v347_v36 = vadd.f32 %v346_v30, %v344_v26  ;;  %v362_v37 = vrot.slane %v360_v31, 4  ;;  %v354_v38 = vrot.slane %v353_v32, 4  ;;  %v7142_v46 = vpop.f32.mrb[1].mxu1  ;;  %v5870_v26 = vpack.c.bf16 %v581_v20, %v579_v18  ;;  %v586_v30 = vld [vmem:[%s7097_s29 + $0x58] sm:$0xff]  ;;  %v605_v20 = vld [vmem:[%s7097_s29 + $0xf0] sm:$0xff] }
  0xe9   :  { %v368_v41 = vsel %vm352_vm2, %v361_v33, 0.0  ;;  %v585_v33 = vld [vmem:[%s7097_s29 + $0x50] sm:$0xff] }
  0xea   :  { %v348_v43 = vrot.slane %v347_v36, 2  ;;  %v363_v44 = vadd.f32 %v362_v37, %v360_v31  ;;  %v355_v45 = vadd.f32 %v354_v38, %v353_v32  ;;  %v369_v49 = vrot.slane %v368_v41, 4  ;;  %v583_v32 = vld [vmem:[%s7097_s29 + $0x40] sm:$0xff]  ;;  %v588_v37 = vld [vmem:[%s7097_s29 + $0x68] sm:$0xff]  ;;  %v590_v38 = vld [vmem:[%s7097_s29 + $0x78] sm:$0xff] }
  0xeb   :  { %v5872_v31 = vpack.c.bf16 %v586_v30, %v584_v29  ;;  %v607_v30 = vld [vmem:[%s7097_s29 + $0x100] sm:$0xff] }
  0xec   :  { %v349_v50 = vadd.f32 %v348_v43, %v347_v36  ;;  %v364_v51 = vrot.slane %v363_v44, 2  ;;  %v356_v52 = vrot.slane %v355_v45, 2  ;;  %v370_v55 = vadd.f32 %v369_v49, %v368_v41  ;;  %v587_v43 = vld [vmem:[%s7097_s29 + $0x60] sm:$0xff]  ;;  %v592_v49 = vld [vmem:[%s7097_s29 + $0x88] sm:$0xff] }
  0xed   :  { %v5874_v36 = vpack.c.bf16 %v585_v33, %v583_v32  ;;  %v5876_v41 = vpack.c.bf16 %v590_v38, %v588_v37  ;;  %v612_v32 = vld [vmem:[%s7097_s29 + $0x128] sm:$0xff]  ;;  %v614_v33 = vld [vmem:[%s7097_s29 + $0x138] sm:$0xff]  ;;  %v611_v38 = vld [vmem:[%s7097_s29 + $0x120] sm:$0xff] }
  0xee   :  { %v357_v56 = vadd.f32 %v356_v52, %v355_v45  ;;  %v371_v58 = vrot.slane %v370_v55, 2  ;;  %v365_v59 = vadd.f32 %v364_v51, %v363_v44  ;;  %v350_v61 = vrot.slane %v349_v50, 1  ;;  %v589_v44 = vld [vmem:[%s7097_s29 + $0x70] sm:$0xff]  ;;  %v591_v52 = vld [vmem:[%s7097_s29 + $0x80] sm:$0xff] }
  0xef   :  { %v5878_v45 = vpack.c.bf16 %v589_v44, %v587_v43  ;;  %v5900_v37 = vpack.c.bf16 %v614_v33, %v612_v32  ;;  %v529_v44 = vlaneseq }
  0xf0   :  { %v358_v2 = vrot.slane %v357_v56, 1  ;;  %v372_v4 = vadd.f32 %v371_v58, %v370_v55  ;;  %v366_v8 = vrot.slane %v365_v59, 1  ;;  %v351_v15 = vadd.f32 %v350_v61, %v349_v50  ;;  %v594_v50 = vld [vmem:[%s7097_s29 + $0x98] sm:$0xff]  ;;  %v593_v55 = vld [vmem:[%s7097_s29 + $0x90] sm:$0xff]  ;;  %v596_v58 = vld [vmem:[%s7097_s29 + $0xa8] sm:$0xff] }
  0xf1   :  { %v5880_v51 = vpack.c.bf16 %v594_v50, %v592_v49 }
  0xf2   :  { %v359_v10 = vadd.f32 %v358_v2, %v357_v56  ;;  %v373_v11 = vrot.slane %v372_v4, 1  ;;  %v367_v23 = vadd.f32 %v366_v8, %v365_v59  ;;  %v5882_v56 = vpack.c.bf16 %v593_v55, %v591_v52  ;;  %v598_v59 = vld [vmem:[%s7097_s29 + $0xb8] sm:$0xff]  ;;  %v599_v8 = vld [vmem:[%s7097_s29 + $0xc0] sm:$0xff] }
  0xf3   :  { %v5884_v61 = vpack.c.bf16 %v598_v59, %v596_v58  ;;  %v5886_v2 = vpack.c.bf16 %v597_v1, %v595_v62 }
  0xf4   :  { %4844 = vmatprep.mubr.msk.f32.mxu0 %vm352_vm2, %v359_v10  ;;  %v374_v21 = vadd.f32 %v373_v11, %v372_v4  ;;  %v600_v4 = vld [vmem:[%s7097_s29 + $0xc8] sm:$0xff]  ;;  %v601_v10 = vld [vmem:[%s7097_s29 + $0xd0] sm:$0xff] }
  0xf5   :  { %443 = vmatmul.mubr.f32.vlgmr.msra.gmra.mrb[2].mxu0 %v351_v15  ;;  %v5888_v7 = vpack.c.bf16 %v602_v5, %v600_v4  ;;  %v5890_v11 = vpack.c.bf16 %v601_v10, %v599_v8  ;;  %v606_v15 = vld [vmem:[%s7097_s29 + $0xf8] sm:$0xff] }
  0xf6   :  { %4845 = vmatprep.mubr.msk.f32.mxu1 %vm352_vm2, %v374_v21  ;;  %5867 = vmatpush1.bf16.msra.mxu0 %v5866_v14  ;;  %v604_v14 = vld [vmem:[%s7097_s29 + $0xe8] sm:$0xff] }
  0xf7   :  { %517 = vmatmul.mubr.f32.vlgmr.msra.gmra.mrb[2].mxu1 %v367_v23  ;;  %5869 = vmatprep.subr.bf16.mxu0 %v5868_v17  ;;  %v603_v17 = vld [vmem:[%s7097_s29 + $0xe0] sm:$0xff]  ;;  %v5892_v18 = vpack.c.bf16 %v606_v15, %v604_v14  ;;  %v608_v21 = vld [vmem:[%s7097_s29 + $0x108] sm:$0xff]  ;;  %v610_v23 = vld [vmem:[%s7097_s29 + $0x118] sm:$0xff] }
  0xf8   :  { %5907 = vmatpush1.bf16.msra.mxu1 %v7003_v22  ;;  %v5896_v29 = vpack.c.bf16 %v610_v23, %v608_v21  ;;  %v7219_v14 = vld [vmem:[%s4814_s3 + $0x8] sm:$0x3f] }
  0xf9   :  { %5909 = vmatprep.subr.bf16.mxu1 %v7006_v27 }
  0xfa   :  { %5871 = vmatpush1.bf16.msra.mxu0 %v5870_v26  ;;  %v5894_v26 = vpack.c.bf16 %v605_v20, %v603_v17 }
  0xfb   :  { %5873 = vmatprep.subr.bf16.mxu0 %v5872_v31  ;;  %v609_v31 = vld [vmem:[%s7097_s29 + $0x110] sm:$0xff] }
  0xfc   :  { %5911 = vmatpush1.bf16.msra.mxu1 %v7017_v34 }
  0xfd   :  { %5913 = vmatprep.subr.bf16.mxu1 %v7019_v35 }
  0xfe   :  { %5875 = vmatpush1.bf16.msra.mxu0 %v5874_v36  ;;  %v5898_v36 = vpack.c.bf16 %v609_v31, %v607_v30 }
  0xff   :  { %5877 = vmatprep.subr.bf16.mxu0 %v5876_v41  ;;  %v613_v41 = vld [vmem:[%s7097_s29 + $0x130] sm:$0xff]  ;;  %s4826_s29 = sld [smem:[%s8464_s0 + %s6950_s26]]  }
 0x100   :  { %5915 = vmatpush1.bf16.msra.mxu1 %v7030_v40  ;;  %v5902_v43 = vpack.c.bf16 %v613_v41, %v611_v38  ;;  %v918_v41 = vmul.f32 %v7128_v24, %v7142_v46 }
 0x101   :  { %5917 = vmatprep.subr.bf16.mxu1 %v7034_v42 }
 0x102   :  { %5879 = vmatpush1.bf16.msra.mxu0 %v5878_v45  ;;  %v7205_v45 = vshrl.u32 %v529_v44, 7  ;;  %v925_v44 = vsel %vm352_vm2, %v918_v41, 0.0 }
 0x103   :  { %5881 = vmatprep.subr.bf16.mxu0 %v5880_v51 }
 0x104   :  { %5919 = vmatpush1.bf16.msra.mxu1 %v7042_v47  ;;  %v7208_v49 = vsub.s32 0, %v7205_v45 }
 0x105   :  { %5921 = vmatprep.subr.bf16.mxu1 %v7046_v48 }
 0x106   :  { %5883 = vmatpush1.bf16.msra.mxu0 %v5882_v56  ;;  %v560_v21 = vrot.slane %v7219_v14, %v7208_v49 }
 0x107   :  { %5885 = vmatprep.subr.bf16.mxu0 %v5884_v61 }
 0x108   :  { %5923 = vmatpush1.bf16.msra.mxu1 %v7054_v53 }
 0x109   :  { %5925 = vmatprep.subr.bf16.mxu1 %v7058_v54 }
 0x10a   :  { %5887 = vmatpush1.bf16.msra.mxu0 %v5886_v2 }
 0x10b   :  { %5889 = vmatprep.subr.bf16.mxu0 %v5888_v7 }
 0x10c   :  { %5927 = vmatpush1.bf16.msra.mxu1 %v7064_v57 }
 0x10d   :  { %5929 = vmatprep.subr.bf16.mxu1 %v7074_v60 }
 0x10e   :  { %5891 = vmatpush1.bf16.msra.mxu0 %v5890_v11  ;;  %v7217_v11 = vld [vmem:[%s4814_s3] sm:$0x3f]  ;;  %s4829_s3 = sld [smem:[%s8464_s0 + %s6951_s30]]  }
 0x10f   :  { %5893 = vmatprep.subr.bf16.mxu0 %v5892_v18  ;;  %v556_v18 = vrot.slane %v7217_v11, %v7208_v49 }
 0x110   :  { %5931 = vmatpush1.bf16.msra.mxu1 %v7078_v63 }
 0x111   :  { %5933 = vmatprep.subr.bf16.mxu1 %v7086_v3 }
 0x112   :  { %5895 = vmatpush1.bf16.msra.mxu0 %v5894_v26 }
 0x113   :  { %5897 = vmatprep.subr.bf16.mxu0 %v5896_v29 }
 0x114   :  { %5935 = vmatpush1.bf16.msra.mxu1 %v7090_v6 }
 0x115   :  { %5937 = vmatprep.subr.bf16.mxu1 %v7103_v9 }
 0x116   :  { %5899 = vmatpush1.bf16.msra.mxu0 %v5898_v36 }
 0x117   :  { %5901 = vmatprep.subr.bf16.mxu0 %v5900_v37 }
 0x118   :  { %5939 = vmatpush1.bf16.msra.mxu1 %v7107_v13 }
 0x119   :  { %5941 = vmatprep.subr.bf16.mxu1 %v7115_v16 }
 0x11a   :  { %5903 = vmatpush1.bf16.msra.mxu0 %v5902_v43  ;;  %v933_v43 = vmul.f32 %v918_v41, %v918_v41 }
 0x11b   :  { %5945 = vmatprep.subr.bf16.mxu0 %v6991_v12 }
 0x11c   :  { %5943 = vmatpush1.bf16.msra.mxu1 %v7119_v19 }
 0x11d   :  { %5985 = vmatprep.subr.bf16.mxu1 %v6991_v12 }
 0x1c8   :  { %v444_v50 = vpop.f32.mrb[2].mxu0 }
 0x1c9   :  { %v523_v51 = vmul.f32 %v444_v50, %v444_v50  ;;  %v532_v52 = vrot.slane %v444_v50, %v7208_v49  ;;  %v446_v55 = vpop.f32.mrb[3].mxu0  ;;  %v940_v50 = vsel %vm352_vm2, %v933_v43, 0.0 }
 0x1ca   :  { %v524_v56 = vmul.f32 %v446_v55, %v446_v55  ;;  %v536_v58 = vrot.slane %v446_v55, %v7208_v49  ;;  %v518_v59 = vpop.f32.mrb[2].mxu1 }
 0x1cb   :  { %v537_v61 = vsub.f32 %v7130_v25, %v532_v52  ;;  %v525_v62 = vsub.f32 %v518_v59, %v523_v51  ;;  %v520_v1 = vpop.f32.mrb[3].mxu1  ;;  %v7222_v25 = vsub.s32 1, %v7205_v45  ;;  %v926_v51 = vrot.slane %v925_v44, 4 }
 0x1cc   :  { %v538_v2 = vsub.f32 %v7134_v28, %v536_v58  ;;  %v526_v4 = vsub.f32 %v520_v1, %v524_v56  ;;  %v941_v52 = vrot.slane %v940_v50, 4 }
 0x1cd   :  { %v527_v5 = vmax.f32 %v525_v62, 0.0  ;;  %v566_v26 = vrot.slane %v7217_v11, %v7222_v25  ;;  %v570_v30 = vrot.slane %v7219_v14, %v7222_v25  ;;  %v927_v59 = vadd.f32 %v926_v51, %v925_v44 }
 0x1ce   :  { %v528_v7 = vmax.f32 %v526_v4, 0.0  ;;  %v942_v1 = vadd.f32 %v941_v52, %v940_v50 }
 0x1cf   :  { %v539_v8 = vadd.f32 1e-05, %v527_v5 }
 0x1d0   :  { %v540_v10 = vadd.f32 1e-05, %v528_v7 }
 0x1d1   :  { %6884 = vrsqrt.f32 %v539_v8 }
 0x1d2   :  { %6886 = vrsqrt.f32 %v540_v10  ;;  %v928_v10 = vrot.slane %v927_v59, 2 }
 0x1db   :  { %v6885_v28 = vpop.eup %6884 }
 0x1dc   :  { %v6887_v15 = vpop.eup %6886  ;;  %v546_v17 = vrot.slane %v6885_v28, %v7208_v49 }
 0x1dd   :  { %v550_v20 = vrot.slane %v6887_v15, %v7208_v49 }
 0x1de   :  { %v551_v23 = vmul.f32 %v546_v17, %v537_v61 }
 0x1df   :  { %v552_v29 = vmul.f32 %v550_v20, %v538_v2 }
 0x1e0   :  { %v561_v31 = vmul.f32 %v556_v18, %v551_v23 }
 0x1e1   :  { %v562_v32 = vmul.f32 %v560_v21, %v552_v29  ;;  %v943_v21 = vrot.slane %v942_v1, 2 }
 0x1e2   :  { %v571_v33 = vadd.f32 %v566_v26, %v561_v31  ;;  %v929_v31 = vadd.f32 %v928_v10, %v927_v59  ;;  %v1307_v10 = vld [vmem:[%s7321_s11 + $0x10] sm:$0xff] }
 0x1e3   :  { %v572_v36 = vadd.f32 %v570_v30, %v562_v32 }
 0x1e4   :  { %v573_v38 = vmax.f32 %v571_v33, 0.0  ;;  %v930_v44 = vrot.slane %v929_v31, 1 }
 0x1e5   :  { %v574_v37 = vmax.f32 %v572_v36, 0.0 }
 0x1e7   :  { %4846 = vmatprep.mubr.msk.f32.mxu0 %vm352_vm2, %v574_v37  ;;  %v944_v37 = vadd.f32 %v943_v21, %v942_v1  ;;  %v1191_v1 = vld [vmem:[%s7316_s7] sm:$0xff] }
 0x1e8   :  { %683 = vmatmul.mubr.f32.vlgmr.msra.gmra.mrb[4].mxu0 %v573_v38 }
 0x1e9   :  { %5947 = vmatpush1.bf16.msra.mxu0 %v7003_v22 }
 0x1ea   :  { %5949 = vmatprep.subr.bf16.mxu0 %v7006_v27 }
 0x1ed   :  { %5951 = vmatpush1.bf16.msra.mxu0 %v7017_v34 }
 0x1ee   :  { %5953 = vmatprep.subr.bf16.mxu0 %v7019_v35 }
 0x1f1   :  { %5955 = vmatpush1.bf16.msra.mxu0 %v7030_v40 }
 0x1f2   :  { %5957 = vmatprep.subr.bf16.mxu0 %v7034_v42 }
 0x1f5   :  { %5959 = vmatpush1.bf16.msra.mxu0 %v7042_v47 }
 0x1f6   :  { %5961 = vmatprep.subr.bf16.mxu0 %v7046_v48 }
 0x1f9   :  { %5963 = vmatpush1.bf16.msra.mxu0 %v7054_v53 }
 0x1fa   :  { %5965 = vmatprep.subr.bf16.mxu0 %v7058_v54 }
 0x1fd   :  { %5967 = vmatpush1.bf16.msra.mxu0 %v7064_v57 }
 0x1fe   :  { %5969 = vmatprep.subr.bf16.mxu0 %v7074_v60 }
 0x201   :  { %5971 = vmatpush1.bf16.msra.mxu0 %v7078_v63 }
 0x202   :  { %5973 = vmatprep.subr.bf16.mxu0 %v7086_v3 }
 0x205   :  { %5975 = vmatpush1.bf16.msra.mxu0 %v7090_v6 }
 0x206   :  { %5977 = vmatprep.subr.bf16.mxu0 %v7103_v9 }
 0x209   :  { %5979 = vmatpush1.bf16.msra.mxu0 %v7107_v13 }
 0x20a   :  { %5981 = vmatprep.subr.bf16.mxu0 %v7115_v16 }
 0x20d   :  { %5983 = vmatpush1.bf16.msra.mxu0 %v7119_v19 }
 0x20e   :  { %6025 = vmatprep.subr.bf16.mxu0 %v6991_v12 }
 0x2bb   :  { %v7259_v55 = vpop.f32.mrb[4].mxu0 }
 0x2bc   :  { %v689_v56 = vmul.f32 %v7259_v55, %v7128_v24  ;;  %v7263_v58 = vpop.f32.mrb[5].mxu0 }
 0x2bd   :  { %v690_v12 = vmul.f32 %v7263_v58, %v7128_v24 }
 0x2be   :  { %v691_v61 = vrot.slane %v689_v56, 4  ;;  %v704_v62 = vmul.f32 %v689_v56, %v689_v56 }
 0x2bf   :  { %v697_v2 = vsel %vm352_vm2, %v690_v12, 0.0  ;;  %v705_v4 = vmul.f32 %v690_v12, %v690_v12  ;;  %v945_v12 = vrot.slane %v944_v37, 1 }
 0x2c0   :  { %v692_v5 = vadd.f32 %v691_v61, %v689_v56  ;;  %v706_v7 = vrot.slane %v704_v62, 4  ;;  %v698_v8 = vrot.slane %v697_v2, 4 }
 0x2c1   :  { %v712_v28 = vsel %vm352_vm2, %v705_v4, 0.0  ;;  %v946_v59 = vadd.f32 %v945_v12, %v944_v37  ;;  %v1193_v4 = vld [vmem:[%s7316_s7 + $0x10] sm:$0xff]  ;;  %v1202_v37 = vld [vmem:[%s7316_s7 + $0x58] sm:$0xff] }
 0x2c2   :  { %v693_v15 = vrot.slane %v692_v5, 2  ;;  %v707_v17 = vadd.f32 %v706_v7, %v704_v62  ;;  %v699_v18 = vadd.f32 %v698_v8, %v697_v2  ;;  %v713_v20 = vrot.slane %v712_v28, 4  ;;  %v1305_v8 = vld [vmem:[%s7321_s11] sm:$0xff]  ;;  %v1315_v12 = vld [vmem:[%s7321_s11 + $0x50] sm:$0xff] }
 0x2c3   :  { %v931_v62 = vadd.f32 %v930_v44, %v929_v31  ;;  %v6066_v7 = vpack.c.bf16 %v1193_v4, %v1191_v1  ;;  %v1199_v44 = vld [vmem:[%s7316_s7 + $0x40] sm:$0xff]  ;;  %v1323_v1 = vld [vmem:[%s7321_s11 + $0x90] sm:$0xff] }
 0x2c4   :  { %v694_v23 = vadd.f32 %v693_v15, %v692_v5  ;;  %v708_v26 = vrot.slane %v707_v17, 2  ;;  %v700_v29 = vrot.slane %v699_v18, 2  ;;  %v714_v30 = vadd.f32 %v713_v20, %v712_v28  ;;  %v1196_v28 = vld [vmem:[%s7316_s7 + $0x28] sm:$0xff]  ;;  %v1312_v20 = vld [vmem:[%s7321_s11 + $0x38] sm:$0xff] }
 0x2c5   :  { %v6106_v15 = vpack.c.bf16 %v1307_v10, %v1305_v8  ;;  %v1326_v8 = vld [vmem:[%s7321_s11 + $0xa8] sm:$0xff] }
 0x2c6   :  { %v701_v32 = vadd.f32 %v700_v29, %v699_v18  ;;  %v715_v33 = vrot.slane %v714_v30, 2  ;;  %v709_v36 = vadd.f32 %v708_v26, %v707_v17  ;;  %v695_v38 = vrot.slane %v694_v23, 1  ;;  %v1198_v17 = vld [vmem:[%s7316_s7 + $0x38] sm:$0xff]  ;;  %v1310_v18 = vld [vmem:[%s7321_s11 + $0x28] sm:$0xff]  ;;  %v1195_v26 = vld [vmem:[%s7316_s7 + $0x20] sm:$0xff] }
 0x2c7   :  { %v6068_v21 = vpack.c.bf16 %v1198_v17, %v1196_v28  ;;  %v1197_v29 = vld [vmem:[%s7316_s7 + $0x30] sm:$0xff]  ;;  %v1328_v28 = vld [vmem:[%s7321_s11 + $0xb8] sm:$0xff] }
 0x2c8   :  { %v702_v41 = vrot.slane %v701_v32, 1  ;;  %v716_v43 = vadd.f32 %v715_v33, %v714_v30  ;;  %v710_v50 = vrot.slane %v709_v36, 1  ;;  %v696_v56 = vadd.f32 %v695_v38, %v694_v23  ;;  %v1309_v30 = vld [vmem:[%s7321_s11 + $0x20] sm:$0xff]  ;;  %v1314_v38 = vld [vmem:[%s7321_s11 + $0x48] sm:$0xff]  ;;  %v1213_v17 = vld [vmem:[%s7316_s7 + $0xb0] sm:$0xff] }
 0x2c9   :  { %v6108_v23 = vpack.c.bf16 %v1312_v20, %v1310_v18  ;;  %v6070_v31 = vpack.c.bf16 %v1197_v29, %v1195_v26  ;;  %v6124_v18 = vpack.c.bf16 %v1328_v28, %v1326_v8  ;;  %v1216_v29 = vld [vmem:[%s7316_s7 + $0xc8] sm:$0xff]  ;;  %v1343_v28 = vld [vmem:[%s7321_s11 + $0x130] sm:$0xff] }
 0x2ca   :  { %v703_v51 = vadd.f32 %v702_v41, %v701_v32  ;;  %v717_v52 = vrot.slane %v716_v43, 1  ;;  %v711_v2 = vadd.f32 %v710_v50, %v709_v36  ;;  %v1311_v32 = vld [vmem:[%s7321_s11 + $0x30] sm:$0xff]  ;;  %v1200_v36 = vld [vmem:[%s7316_s7 + $0x48] sm:$0xff] }
 0x2cb   :  { %v6110_v33 = vpack.c.bf16 %v1311_v32, %v1309_v30  ;;  %v6072_v41 = vpack.c.bf16 %v1202_v37, %v1200_v36  ;;  %v1201_v50 = vld [vmem:[%s7316_s7 + $0x50] sm:$0xff]  ;;  %v1218_v30 = vld [vmem:[%s7316_s7 + $0xd8] sm:$0xff]  ;;  %v1215_v36 = vld [vmem:[%s7316_s7 + $0xc0] sm:$0xff] }
 0x2cc   :  { %4847 = vmatprep.mubr.msk.f32.mxu1 %vm352_vm2, %v703_v51  ;;  %v718_v61 = vadd.f32 %v717_v52, %v716_v43  ;;  %v1316_v43 = vld [vmem:[%s7321_s11 + $0x58] sm:$0xff]  ;;  %v6074_v52 = vpack.c.bf16 %v1201_v50, %v1199_v44  ;;  %v6088_v32 = vpack.c.bf16 %v1218_v30, %v1216_v29  ;;  %v1217_v37 = vld [vmem:[%s7316_s7 + $0xd0] sm:$0xff]  ;;  %v1220_v50 = vld [vmem:[%s7316_s7 + $0xe8] sm:$0xff] }
 0x2cd   :  { %787 = vmatmul.mubr.f32.vlgmr.msra.gmra.mrb[4].mxu1 %v696_v56  ;;  %v6112_v51 = vpack.c.bf16 %v1316_v43, %v1314_v38  ;;  %v1313_v56 = vld [vmem:[%s7321_s11 + $0x40] sm:$0xff]  ;;  %v1331_v44 = vld [vmem:[%s7321_s11 + $0xd0] sm:$0xff] }
 0x2ce   :  { %5987 = vmatpush1.bf16.msra.mxu1 %v7003_v22  ;;  %4848 = vmatprep.mubr.msk.f32.mxu0 %vm352_vm2, %v718_v61  ;;  %v6114_v61 = vpack.c.bf16 %v1315_v12, %v1313_v56  ;;  %v1329_v43 = vld [vmem:[%s7321_s11 + $0xc0] sm:$0xff]  ;;  %v1334_v56 = vld [vmem:[%s7321_s11 + $0xe8] sm:$0xff]  ;;  %v1336_v12 = vld [vmem:[%s7321_s11 + $0xf8] sm:$0xff] }
 0x2cf   :  { %4849 = vmatprep.mubr.msk.f32.mxu1 %vm352_vm2, %v931_v62  ;;  %861 = vmatmul.mubr.f32.vlgmr.msra.gmra.mrb[6].mxu0 %v711_v2  ;;  %v1204_v62 = vld [vmem:[%s7316_s7 + $0x68] sm:$0xff]  ;;  %v1206_v2 = vld [vmem:[%s7316_s7 + $0x78] sm:$0xff] }
 0x2d0   :  { %6027 = vmatpush1.bf16.msra.mxu0 %v7003_v22  ;;  %5989 = vmatprep.subr.bf16.mxu1 %v7006_v27  ;;  %v917_v22 = vmul.f32 %v7128_v24, %v7139_v39 }
 0x2d1   :  { %4850 = vmatprep.mubr.msk.f32.mxu0 %vm352_vm2, %v946_v59  ;;  %6029 = vmatprep.subr.bf16.mxu0 %v7006_v27  ;;  %v1318_v59 = vld [vmem:[%s7321_s11 + $0x68] sm:$0xff] }
 0x2d2   :  { %5991 = vmatpush1.bf16.msra.mxu1 %v7017_v34  ;;  %v932_v27 = vmul.f32 %v917_v22, %v917_v22 }
 0x2d3   :  { %5993 = vmatprep.subr.bf16.mxu1 %v7019_v35 }
 0x2d4   :  { %6031 = vmatpush1.bf16.msra.mxu0 %v7017_v34  ;;  %v919_v34 = vrot.slane %v917_v22, 4 }
 0x2d5   :  { %6033 = vmatprep.subr.bf16.mxu0 %v7019_v35  ;;  %v934_v35 = vrot.slane %v932_v27, 4 }
 0x2d6   :  { %5995 = vmatpush1.bf16.msra.mxu1 %v7030_v40 }
 0x2d7   :  { %5997 = vmatprep.subr.bf16.mxu1 %v7034_v42 }
 0x2d8   :  { %6035 = vmatpush1.bf16.msra.mxu0 %v7030_v40  ;;  %v920_v40 = vadd.f32 %v919_v34, %v917_v22  ;;  %v6076_v22 = vpack.c.bf16 %v1206_v2, %v1204_v62  ;;  %v1203_v34 = vld [vmem:[%s7316_s7 + $0x60] sm:$0xff]  ;;  %v6132_v62 = vpack.c.bf16 %v1336_v12, %v1334_v56 }
 0x2d9   :  { %6037 = vmatprep.subr.bf16.mxu0 %v7034_v42  ;;  %v935_v42 = vadd.f32 %v934_v35, %v932_v27  ;;  %v1320_v27 = vld [vmem:[%s7321_s11 + $0x78] sm:$0xff]  ;;  %v1205_v35 = vld [vmem:[%s7316_s7 + $0x70] sm:$0xff]  ;;  %v1219_v2 = vld [vmem:[%s7316_s7 + $0xe0] sm:$0xff] }
 0x2da   :  { %5999 = vmatpush1.bf16.msra.mxu1 %v7042_v47 }
 0x2db   :  { %6001 = vmatprep.subr.bf16.mxu1 %v7046_v48 }
 0x2dc   :  { %6039 = vmatpush1.bf16.msra.mxu0 %v7042_v47  ;;  %v921_v47 = vrot.slane %v920_v40, 2 }
 0x2dd   :  { %6041 = vmatprep.subr.bf16.mxu0 %v7046_v48  ;;  %v936_v48 = vrot.slane %v935_v42, 2 }
 0x2de   :  { %6003 = vmatpush1.bf16.msra.mxu1 %v7054_v53 }
 0x2df   :  { %6005 = vmatprep.subr.bf16.mxu1 %v7058_v54 }
 0x2e0   :  { %6043 = vmatpush1.bf16.msra.mxu0 %v7054_v53  ;;  %v922_v53 = vadd.f32 %v921_v47, %v920_v40  ;;  %v6116_v40 = vpack.c.bf16 %v1320_v27, %v1318_v59  ;;  %v1317_v47 = vld [vmem:[%s7321_s11 + $0x60] sm:$0xff]  ;;  %v1221_v59 = vld [vmem:[%s7316_s7 + $0xf0] sm:$0xff] }
 0x2e1   :  { %6045 = vmatprep.subr.bf16.mxu0 %v7058_v54  ;;  %v937_v54 = vadd.f32 %v936_v48, %v935_v42  ;;  %v6078_v42 = vpack.c.bf16 %v1205_v35, %v1203_v34  ;;  %v1319_v48 = vld [vmem:[%s7321_s11 + $0x70] sm:$0xff]  ;;  %v6094_v27 = vpack.c.bf16 %v1221_v59, %v1219_v2  ;;  %v1224_v35 = vld [vmem:[%s7316_s7 + $0x108] sm:$0xff] }
 0x2e2   :  { %6007 = vmatpush1.bf16.msra.mxu1 %v7064_v57  ;;  %v1335_v34 = vld [vmem:[%s7321_s11 + $0xf0] sm:$0xff] }
 0x2e3   :  { %6009 = vmatprep.subr.bf16.mxu1 %v7074_v60 }
 0x2e4   :  { %6047 = vmatpush1.bf16.msra.mxu0 %v7064_v57  ;;  %v923_v57 = vrot.slane %v922_v53, 1 }
 0x2e5   :  { %6049 = vmatprep.subr.bf16.mxu0 %v7074_v60  ;;  %v938_v60 = vrot.slane %v937_v54, 1 }
 0x2e6   :  { %6011 = vmatpush1.bf16.msra.mxu1 %v7078_v63 }
 0x2e7   :  { %6013 = vmatprep.subr.bf16.mxu1 %v7086_v3 }
 0x2e8   :  { %6051 = vmatpush1.bf16.msra.mxu0 %v7078_v63  ;;  %v924_v63 = vadd.f32 %v923_v57, %v922_v53  ;;  %v6118_v53 = vpack.c.bf16 %v1319_v48, %v1317_v47  ;;  %v1210_v57 = vld [vmem:[%s7316_s7 + $0x98] sm:$0xff]  ;;  %v1338_v48 = vld [vmem:[%s7321_s11 + $0x108] sm:$0xff] }
 0x2e9   :  { %6053 = vmatprep.subr.bf16.mxu0 %v7086_v3  ;;  %v939_v3 = vadd.f32 %v938_v60, %v937_v54  ;;  %v1208_v54 = vld [vmem:[%s7316_s7 + $0x88] sm:$0xff] }
 0x2ea   :  { %6015 = vmatpush1.bf16.msra.mxu1 %v7090_v6  ;;  %v1322_v60 = vld [vmem:[%s7321_s11 + $0x88] sm:$0xff] }
 0x2eb   :  { %6017 = vmatprep.subr.bf16.mxu1 %v7103_v9 }
 0x2ec   :  { %6055 = vmatpush1.bf16.msra.mxu0 %v7090_v6  ;;  %v1192_v6 = vld [vmem:[%s7316_s7 + $0x8] sm:$0xff] }
 0x2ed   :  { %6057 = vmatprep.subr.bf16.mxu0 %v7103_v9  ;;  %v1194_v9 = vld [vmem:[%s7316_s7 + $0x18] sm:$0xff] }
 0x2ee   :  { %6019 = vmatpush1.bf16.msra.mxu1 %v7107_v13 }
 0x2ef   :  { %6021 = vmatprep.subr.bf16.mxu1 %v7115_v16 }
 0x2f0   :  { %6059 = vmatpush1.bf16.msra.mxu0 %v7107_v13  ;;  %v1306_v13 = vld [vmem:[%s7321_s11 + $0x8] sm:$0xff] }
 0x2f1   :  { %6061 = vmatprep.subr.bf16.mxu0 %v7115_v16  ;;  %v6064_v16 = vpack.c.bf16 %v1194_v9, %v1192_v6  ;;  %v1207_v6 = vld [vmem:[%s7316_s7 + $0x80] sm:$0xff]  ;;  %v1209_v9 = vld [vmem:[%s7316_s7 + $0x90] sm:$0xff] }
 0x2f2   :  { %6023 = vmatpush1.bf16.msra.mxu1 %v7119_v19 }
 0x2f3   :  { %6065 = vmatprep.subr.bf16.mxu1 %v6064_v16  ;;  %v6082_v16 = vpack.c.bf16 %v1209_v9, %v1207_v6  ;;  %v1228_v9 = vld [vmem:[%s7316_s7 + $0x128] sm:$0xff] }
 0x2f4   :  { %6063 = vmatpush1.bf16.msra.mxu0 %v7119_v19  ;;  %v1308_v19 = vld [vmem:[%s7321_s11 + $0x18] sm:$0xff] }
 0x2f5   :  { %1015 = vmatmul.mubr.f32.vlgmr.msra.gmra.mrb[6].mxu1 %v924_v63  ;;  %v6104_v5 = vpack.c.bf16 %v1308_v19, %v1306_v13  ;;  %v6080_v63 = vpack.c.bf16 %v1210_v57, %v1208_v54  ;;  %v1321_v19 = vld [vmem:[%s7321_s11 + $0x80] sm:$0xff] }
 0x2f6   :  { %6067 = vmatpush1.bf16.msra.mxu1 %v6066_v7  ;;  %v6122_v4 = vpack.c.bf16 %v1323_v1, %v1321_v19  ;;  %v1214_v7 = vld [vmem:[%s7316_s7 + $0xb8] sm:$0xff]  ;;  %v1223_v54 = vld [vmem:[%s7316_s7 + $0x100] sm:$0xff] }
 0x2f7   :  { %1089 = vmatmul.mubr.f32.vlgmr.msra.gmra.mrb[8].mxu0 %v939_v3  ;;  %6105 = vmatprep.subr.bf16.mxu0 %v6104_v5  ;;  %v1324_v3 = vld [vmem:[%s7321_s11 + $0x98] sm:$0xff]  ;;  %v1212_v5 = vld [vmem:[%s7316_s7 + $0xa8] sm:$0xff] }
 0x2f8   :  { %6107 = vmatpush1.bf16.msra.mxu0 %v6106_v15  ;;  %6069 = vmatprep.subr.bf16.mxu1 %v6068_v21  ;;  %v6120_v13 = vpack.c.bf16 %v1324_v3, %v1322_v60  ;;  %v6084_v10 = vpack.c.bf16 %v1214_v7, %v1212_v5  ;;  %v1211_v15 = vld [vmem:[%s7316_s7 + $0xa0] sm:$0xff]  ;;  %v1225_v60 = vld [vmem:[%s7316_s7 + $0x110] sm:$0xff] }
 0x2f9   :  { %6109 = vmatprep.subr.bf16.mxu0 %v6108_v23  ;;  %v6086_v20 = vpack.c.bf16 %v1213_v17, %v1211_v15  ;;  %v1325_v21 = vld [vmem:[%s7321_s11 + $0xa0] sm:$0xff]  ;;  %v1327_v23 = vld [vmem:[%s7321_s11 + $0xb0] sm:$0xff]  ;;  %v6098_v6 = vpack.c.bf16 %v1225_v60, %v1223_v54 }
 0x2fa   :  { %6071 = vmatpush1.bf16.msra.mxu1 %v6070_v31  ;;  %v6126_v26 = vpack.c.bf16 %v1327_v23, %v1325_v21  ;;  %v1330_v31 = vld [vmem:[%s7321_s11 + $0xc8] sm:$0xff]  ;;  %v1339_v3 = vld [vmem:[%s7321_s11 + $0x110] sm:$0xff]  ;;  %v1227_v5 = vld [vmem:[%s7316_s7 + $0x120] sm:$0xff] }
 0x2fb   :  { %6073 = vmatprep.subr.bf16.mxu1 %v6072_v41  ;;  %v6090_v41 = vpack.c.bf16 %v1217_v37, %v1215_v36  ;;  %v1229_v7 = vld [vmem:[%s7316_s7 + $0x130] sm:$0xff] }
 0x2fc   :  { %6111 = vmatpush1.bf16.msra.mxu0 %v6110_v33  ;;  %v1332_v33 = vld [vmem:[%s7321_s11 + $0xd8] sm:$0xff]  ;;  %v6102_v15 = vpack.c.bf16 %v1229_v7, %v1227_v5 }
 0x2fd   :  { %6113 = vmatprep.subr.bf16.mxu0 %v6112_v51  ;;  %v6128_v38 = vpack.c.bf16 %v1332_v33, %v1330_v31  ;;  %v6130_v51 = vpack.c.bf16 %v1331_v44, %v1329_v43 }
 0x2fe   :  { %6075 = vmatpush1.bf16.msra.mxu1 %v6074_v52  ;;  %v1222_v52 = vld [vmem:[%s7316_s7 + $0xf8] sm:$0xff] }
 0x2ff   :  { %6077 = vmatprep.subr.bf16.mxu1 %v6076_v22  ;;  %v1333_v22 = vld [vmem:[%s7321_s11 + $0xe0] sm:$0xff] }
 0x300   :  { %6115 = vmatpush1.bf16.msra.mxu0 %v6114_v61  ;;  %v6092_v61 = vpack.c.bf16 %v1222_v52, %v1220_v50 }
 0x301   :  { %6117 = vmatprep.subr.bf16.mxu0 %v6116_v40  ;;  %v1226_v40 = vld [vmem:[%s7316_s7 + $0x118] sm:$0xff] }
 0x302   :  { %6079 = vmatpush1.bf16.msra.mxu1 %v6078_v42  ;;  %v6134_v42 = vpack.c.bf16 %v1335_v34, %v1333_v22  ;;  %v6096_v47 = vpack.c.bf16 %v1226_v40, %v1224_v35 }
 0x303   :  { %6081 = vmatprep.subr.bf16.mxu1 %v6080_v63  ;;  %v1337_v63 = vld [vmem:[%s7321_s11 + $0x100] sm:$0xff] }
 0x304   :  { %6119 = vmatpush1.bf16.msra.mxu0 %v6118_v53  ;;  %v1340_v53 = vld [vmem:[%s7321_s11 + $0x118] sm:$0xff]  ;;  %v6138_v19 = vpack.c.bf16 %v1339_v3, %v1337_v63 }
 0x305   :  { %6121 = vmatprep.subr.bf16.mxu0 %v6120_v13  ;;  %v6136_v57 = vpack.c.bf16 %v1340_v53, %v1338_v48  ;;  %v1230_v13 = vld [vmem:[%s7316_s7 + $0x138] sm:$0xff]  ;;  %s8293_s7 = sld [smem:[%s8464_s0 + %s6952_s4]]  }
 0x306   :  { %6083 = vmatpush1.bf16.msra.mxu1 %v6082_v16  ;;  %v1342_v16 = vld [vmem:[%s7321_s11 + $0x128] sm:$0xff]  ;;  %v6100_v1 = vpack.c.bf16 %v1230_v13, %v1228_v9  ;;  %v7428_v9 = vsub.s32 4, %v7205_v45  ;;  %v7431_v13 = vsub.s32 3, %v7205_v45 }
 0x307   :  { %6085 = vmatprep.subr.bf16.mxu1 %v6084_v10  ;;  %v1341_v10 = vld [vmem:[%s7321_s11 + $0x120] sm:$0xff] }
 0x308   :  { %6123 = vmatpush1.bf16.msra.mxu0 %v6122_v4  ;;  %v1344_v4 = vld [vmem:[%s7321_s11 + $0x138] sm:$0xff]  ;;  %v6142_v17 = vpack.c.bf16 %v1343_v28, %v1341_v10  ;;  %v1128_v5 = vrot.slane %v7217_v11, %v7428_v9  ;;  %v910_v10 = vrot.slane %v7217_v11, %v7431_v13  ;;  %s8298_s11 = sld [smem:[%s8464_s0 + %s6953_s8]]  }
 0x309   :  { %6125 = vmatprep.subr.bf16.mxu0 %v6124_v18  ;;  %v6140_v8 = vpack.c.bf16 %v1344_v4, %v1342_v16  ;;  %v1150_v18 = vld [vmem:[%s7395_s15 + $0x8] sm:$0xff] }
 0x30a   :  { %6087 = vmatpush1.bf16.msra.mxu1 %v6086_v20  ;;  %v1152_v20 = vld [vmem:[%s7395_s15 + $0x18] sm:$0xff] }
 0x30b   :  { %6089 = vmatprep.subr.bf16.mxu1 %v6088_v32  ;;  %v7410_v21 = vpack.c.bf16 %v1152_v20, %v1150_v18  ;;  %v914_v18 = vrot.slane %v7219_v14, %v7431_v13 }
 0x30c   :  { %6127 = vmatpush1.bf16.msra.mxu0 %v6126_v26 }
 0x30d   :  { %6129 = vmatprep.subr.bf16.mxu0 %v6128_v38 }
 0x30e   :  { %6091 = vmatpush1.bf16.msra.mxu1 %v6090_v41 }
 0x30f   :  { %6093 = vmatprep.subr.bf16.mxu1 %v6092_v61 }
 0x310   :  { %6131 = vmatpush1.bf16.msra.mxu0 %v6130_v51 }
 0x311   :  { %6133 = vmatprep.subr.bf16.mxu0 %v6132_v62 }
 0x312   :  { %6095 = vmatpush1.bf16.msra.mxu1 %v6094_v27 }
 0x313   :  { %6097 = vmatprep.subr.bf16.mxu1 %v6096_v47 }
 0x314   :  { %6135 = vmatpush1.bf16.msra.mxu0 %v6134_v42 }
 0x315   :  { %6137 = vmatprep.subr.bf16.mxu0 %v6136_v57 }
 0x316   :  { %6099 = vmatpush1.bf16.msra.mxu1 %v6098_v6  ;;  %v7425_v6 = vsub.s32 2, %v7205_v45 }
 0x317   :  { %6101 = vmatprep.subr.bf16.mxu1 %v6100_v1 }
 0x318   :  { %6139 = vmatpush1.bf16.msra.mxu0 %v6138_v19  ;;  %v904_v19 = vrot.slane %v7219_v14, %v7425_v6 }
 0x319   :  { %6141 = vmatprep.subr.bf16.mxu0 %v6140_v8  ;;  %v1132_v8 = vrot.slane %v7219_v14, %v7428_v9 }
 0x31a   :  { %6103 = vmatpush1.bf16.msra.mxu1 %v6102_v15 }
 0x31b   :  { %6145 = vmatprep.subr.bf16.mxu1 %v7410_v21 }
 0x31c   :  { %6143 = vmatpush1.bf16.msra.mxu0 %v6142_v17 }
 0x31d   :  { %6185 = vmatprep.subr.bf16.mxu0 %v7410_v21 }
 0x3a0   :  { %v788_v23 = vpop.f32.mrb[4].mxu1 }
 0x3a1   :  { %v867_v26 = vmul.f32 %v788_v23, %v788_v23  ;;  %v876_v29 = vrot.slane %v788_v23, %v7208_v49  ;;  %v790_v30 = vpop.f32.mrb[5].mxu1 }
 0x3a2   :  { %v868_v31 = vmul.f32 %v790_v30, %v790_v30  ;;  %v880_v32 = vrot.slane %v790_v30, %v7208_v49  ;;  %v862_v33 = vpop.f32.mrb[6].mxu0 }
 0x3a3   :  { %v881_v36 = vsub.f32 %v7259_v55, %v876_v29  ;;  %v869_v37 = vsub.f32 %v862_v33, %v867_v26  ;;  %v864_v38 = vpop.f32.mrb[7].mxu0 }
 0x3a4   :  { %v882_v41 = vsub.f32 %v7263_v58, %v880_v32  ;;  %v870_v43 = vsub.f32 %v864_v38, %v868_v31 }
 0x3a5   :  { %v871_v44 = vmax.f32 %v869_v37, 0.0  ;;  %v1151_v37 = vld [vmem:[%s7395_s15 + $0x10] sm:$0xff] }
 0x3a6   :  { %v872_v50 = vmax.f32 %v870_v43, 0.0  ;;  %v1156_v43 = vld [vmem:[%s7395_s15 + $0x38] sm:$0xff] }
 0x3a7   :  { %v883_v51 = vadd.f32 1e-05, %v871_v44 }
 0x3a8   :  { %v884_v52 = vadd.f32 1e-05, %v872_v50 }
 0x3a9   :  { %6888 = vrsqrt.f32 %v883_v51 }
 0x3aa   :  { %6890 = vrsqrt.f32 %v884_v52  ;;  %v1153_v52 = vld [vmem:[%s7395_s15 + $0x20] sm:$0xff] }
 0x3b3   :  { %v6889_v56 = vpop.eup %6888 }
 0x3b4   :  { %v6891_v12 = vpop.eup %6890  ;;  %v890_v61 = vrot.slane %v6889_v56, %v7208_v49  ;;  %v1155_v56 = vld [vmem:[%s7395_s15 + $0x30] sm:$0xff] }
 0x3b5   :  { %v894_v62 = vrot.slane %v6891_v12, %v7208_v49  ;;  %v1158_v12 = vld [vmem:[%s7395_s15 + $0x48] sm:$0xff] }
 0x3b6   :  { %v895_v2 = vmul.f32 %v890_v61, %v881_v36  ;;  %v1149_v36 = vld [vmem:[%s7395_s15] sm:$0xff]  ;;  %v1160_v61 = vld [vmem:[%s7395_s15 + $0x58] sm:$0xff] }
 0x3b7   :  { %v896_v59 = vmul.f32 %v894_v62, %v882_v41  ;;  %v1154_v41 = vld [vmem:[%s7395_s15 + $0x28] sm:$0xff]  ;;  %v7458_v50 = vpack.c.bf16 %v1151_v37, %v1149_v36  ;;  %v7470_v62 = vpack.c.bf16 %v1155_v56, %v1153_v52  ;;  %v1188_v36 = vld [vmem:[%s7395_s15 + $0x138] sm:$0xff]  ;;  %v1185_v37 = vld [vmem:[%s7395_s15 + $0x120] sm:$0xff] }
 0x3b8   :  { %v7460_v51 = vpack.c.bf16 %v1156_v43, %v1154_v41  ;;  %v1187_v41 = vld [vmem:[%s7395_s15 + $0x130] sm:$0xff] }
 0x3b9   :  { %v906_v17 = vmul.f32 %v904_v19, %v896_v59  ;;  %v1157_v59 = vld [vmem:[%s7395_s15 + $0x40] sm:$0xff]  ;;  %v1171_v19 = vld [vmem:[%s7395_s15 + $0xb0] sm:$0xff]  ;;  %v7569_v43 = vpack.c.bf16 %v1187_v41, %v1185_v37  ;;  %v1653_v37 = vld [vmem:[%s7555_s19 + $0x38] sm:$0xff] }
 0x3bb   :  { %v916_v32 = vadd.f32 %v914_v18, %v906_v17  ;;  %v1177_v18 = vld [vmem:[%s7395_s15 + $0xe0] sm:$0xff] }
 0x3c8   :  { %v1016_v55 = vpop.f32.mrb[6].mxu1 }
 0x3c9   :  { %v1095_v22 = vmul.f32 %v1016_v55, %v1016_v55  ;;  %v1104_v27 = vrot.slane %v1016_v55, %v7208_v49  ;;  %v1018_v58 = vpop.f32.mrb[7].mxu1  ;;  %v1159_v55 = vld [vmem:[%s7395_s15 + $0x50] sm:$0xff] }
 0x3ca   :  { %v1096_v34 = vmul.f32 %v1018_v58, %v1018_v58  ;;  %v1108_v35 = vrot.slane %v1018_v58, %v7208_v49  ;;  %v1090_v40 = vpop.f32.mrb[8].mxu0  ;;  %v7482_v58 = vpack.c.bf16 %v1159_v55, %v1157_v59 }
 0x3cb   :  { %v1109_v42 = vsub.f32 %v7139_v39, %v1104_v27  ;;  %v1097_v47 = vsub.f32 %v1090_v40, %v1095_v22  ;;  %v1092_v48 = vpop.f32.mrb[9].mxu0  ;;  %v7434_v39 = vsub.s32 5, %v7205_v45  ;;  %v1162_v22 = vld [vmem:[%s7395_s15 + $0x68] sm:$0xff]  ;;  %v1164_v27 = vld [vmem:[%s7395_s15 + $0x78] sm:$0xff]  ;;  %v1163_v40 = vld [vmem:[%s7395_s15 + $0x70] sm:$0xff] }
 0x3cc   :  { %v1110_v53 = vsub.f32 %v7142_v46, %v1108_v35  ;;  %v1098_v54 = vsub.f32 %v1092_v48, %v1096_v34  ;;  %v900_v46 = vrot.slane %v7217_v11, %v7425_v6  ;;  %v7486_v34 = vpack.c.bf16 %v1164_v27, %v1162_v22  ;;  %v1161_v35 = vld [vmem:[%s7395_s15 + $0x60] sm:$0xff] }
 0x3cd   :  { %v1099_v57 = vmax.f32 %v1097_v47, 0.0  ;;  %v1138_v15 = vrot.slane %v7217_v11, %v7434_v39  ;;  %v1142_v23 = vrot.slane %v7219_v14, %v7434_v39  ;;  %v1168_v47 = vld [vmem:[%s7395_s15 + $0x98] sm:$0xff]  ;;  %v7494_v48 = vpack.c.bf16 %v1163_v40, %v1161_v35 }
 0x3ce   :  { %v1100_v60 = vmax.f32 %v1098_v54, 0.0  ;;  %v905_v45 = vmul.f32 %v900_v46, %v895_v2  ;;  %v7474_v2 = vpack.c.bf16 %v1160_v61, %v1158_v12  ;;  %v1165_v54 = vld [vmem:[%s7395_s15 + $0x80] sm:$0xff] }
 0x3cf   :  { %v1111_v63 = vadd.f32 1e-05, %v1099_v57  ;;  %v1167_v57 = vld [vmem:[%s7395_s15 + $0x90] sm:$0xff] }
 0x3d0   :  { %v1112_v3 = vadd.f32 1e-05, %v1100_v60  ;;  %v915_v30 = vadd.f32 %v910_v10, %v905_v45  ;;  %v1170_v60 = vld [vmem:[%s7395_s15 + $0xa8] sm:$0xff]  ;;  %v1175_v45 = vld [vmem:[%s7395_s15 + $0xd0] sm:$0xff] }
 0x3d1   :  { %6892 = vrsqrt.f32 %v1111_v63  ;;  %v1172_v63 = vld [vmem:[%s7395_s15 + $0xb8] sm:$0xff] }
 0x3d2   :  { %6894 = vrsqrt.f32 %v1112_v3  ;;  %v7506_v3 = vpack.c.bf16 %v1167_v57, %v1165_v54  ;;  %v7510_v46 = vpack.c.bf16 %v1172_v63, %v1170_v60 }
 0x3db   :  { %v6893_v16 = vpop.eup %6892 }
 0x3dc   :  { %v6895_v1 = vpop.eup %6894  ;;  %v1118_v4 = vrot.slane %v6893_v16, %v7208_v49  ;;  %v1169_v16 = vld [vmem:[%s7395_s15 + $0xa0] sm:$0xff] }
 0x3dd   :  { %v1122_v7 = vrot.slane %v6895_v1, %v7208_v49  ;;  %v7516_v1 = vpack.c.bf16 %v1171_v19, %v1169_v16 }
 0x3de   :  { %v1123_v28 = vmul.f32 %v1118_v4, %v1109_v42  ;;  %v1166_v42 = vld [vmem:[%s7395_s15 + $0x88] sm:$0xff] }
 0x3df   :  { %v1124_v20 = vmul.f32 %v1122_v7, %v1110_v53  ;;  %v7498_v53 = vpack.c.bf16 %v1168_v47, %v1166_v42  ;;  %v1174_v4 = vld [vmem:[%s7395_s15 + $0xc8] sm:$0xff] }
 0x3e0   :  { %v1133_v26 = vmul.f32 %v1128_v5, %v1123_v28  ;;  %v1176_v5 = vld [vmem:[%s7395_s15 + $0xd8] sm:$0xff]  ;;  %v1178_v28 = vld [vmem:[%s7395_s15 + $0xe8] sm:$0xff] }
 0x3e1   :  { %v1134_v29 = vmul.f32 %v1132_v8, %v1124_v20  ;;  %v7524_v7 = vpack.c.bf16 %v1176_v5, %v1174_v4  ;;  %v1173_v8 = vld [vmem:[%s7395_s15 + $0xc0] sm:$0xff]  ;;  %v1179_v20 = vld [vmem:[%s7395_s15 + $0xf0] sm:$0xff] }
 0x3e2   :  { %v1143_v31 = vadd.f32 %v1138_v15, %v1133_v26  ;;  %v7528_v10 = vpack.c.bf16 %v1175_v45, %v1173_v8  ;;  %v1180_v15 = vld [vmem:[%s7395_s15 + $0xf8] sm:$0xff]  ;;  %v1182_v26 = vld [vmem:[%s7395_s15 + $0x108] sm:$0xff] }
 0x3e3   :  { %v1144_v33 = vadd.f32 %v1142_v23, %v1134_v29  ;;  %v7536_v17 = vpack.c.bf16 %v1180_v15, %v1178_v28  ;;  %v7540_v23 = vpack.c.bf16 %v1179_v20, %v1177_v18  ;;  %v1184_v29 = vld [vmem:[%s7395_s15 + $0x118] sm:$0xff] }
 0x3e4   :  { %v1145_v11 = vadd.f32 %v1143_v31, %v915_v30  ;;  %v7548_v30 = vpack.c.bf16 %v1184_v29, %v1182_v26  ;;  %v1181_v31 = vld [vmem:[%s7395_s15 + $0x100] sm:$0xff] }
 0x3e5   :  { %v1146_v38 = vadd.f32 %v1144_v33, %v916_v32  ;;  %v1183_v32 = vld [vmem:[%s7395_s15 + $0x110] sm:$0xff]  ;;  %v1646_v29 = vld [vmem:[%s7555_s19] sm:$0xff] }
 0x3e6   :  { %v1147_v14 = vmax.f32 %v1145_v11, 0.0  ;;  %v7557_v33 = vpack.c.bf16 %v1183_v32, %v1181_v31  ;;  %v1186_v11 = vld [vmem:[%s7395_s15 + $0x128] sm:$0xff]  ;;  %v1648_v31 = vld [vmem:[%s7555_s19 + $0x10] sm:$0xff]  ;;  %s4833_s15 = sld [smem:[%s8464_s0 + %s6954_s12]]  }
 0x3e7   :  { %v1148_v44 = vmax.f32 %v1146_v38, 0.0  ;;  %v7566_v38 = vpack.c.bf16 %v1188_v36, %v1186_v11  ;;  %v1651_v36 = vld [vmem:[%s7555_s19 + $0x28] sm:$0xff] }
 0x3e9   :  { %4851 = vmatprep.mubr.msk.f32.mxu1 %vm352_vm2, %v1148_v44  ;;  %4852 = vmatprep.mubr.msk.f32.mxu0 %vm352_vm2, %v1148_v44  ;;  %v1647_v44 = vld [vmem:[%s7555_s19 + $0x8] sm:$0xff] }
 0x3ea   :  { %1299 = vmatmul.mubr.f32.vlgmr.msra.gmra.mrb[8].mxu1 %v1147_v14  ;;  %1410 = vmatmul.mubr.f32.vlgmr.msra.gmra.mrb[10].mxu0 %v1147_v14  ;;  %v1649_v14 = vld [vmem:[%s7555_s19 + $0x18] sm:$0xff] }
 0x3eb   :  { %6147 = vmatpush1.bf16.msra.mxu1 %v7458_v50  ;;  %6187 = vmatpush1.bf16.msra.mxu0 %v7458_v50  ;;  %v6224_v52 = vpack.c.bf16 %v1649_v14, %v1647_v44 }
 0x3ec   :  { %6149 = vmatprep.subr.bf16.mxu1 %v7460_v51  ;;  %6189 = vmatprep.subr.bf16.mxu0 %v7460_v51 }
 0x3ef   :  { %6151 = vmatpush1.bf16.msra.mxu1 %v7470_v62  ;;  %6191 = vmatpush1.bf16.msra.mxu0 %v7470_v62 }
 0x3f0   :  { %6153 = vmatprep.subr.bf16.mxu1 %v7474_v2  ;;  %6193 = vmatprep.subr.bf16.mxu0 %v7474_v2 }
 0x3f3   :  { %6155 = vmatpush1.bf16.msra.mxu1 %v7482_v58  ;;  %6195 = vmatpush1.bf16.msra.mxu0 %v7482_v58 }
 0x3f4   :  { %6157 = vmatprep.subr.bf16.mxu1 %v7486_v34  ;;  %6197 = vmatprep.subr.bf16.mxu0 %v7486_v34 }
 0x3f7   :  { %6159 = vmatpush1.bf16.msra.mxu1 %v7494_v48  ;;  %6199 = vmatpush1.bf16.msra.mxu0 %v7494_v48 }
 0x3f8   :  { %6161 = vmatprep.subr.bf16.mxu1 %v7498_v53  ;;  %6201 = vmatprep.subr.bf16.mxu0 %v7498_v53 }
 0x3fb   :  { %6163 = vmatpush1.bf16.msra.mxu1 %v7506_v3  ;;  %6203 = vmatpush1.bf16.msra.mxu0 %v7506_v3 }
 0x3fc   :  { %6165 = vmatprep.subr.bf16.mxu1 %v7510_v46  ;;  %6205 = vmatprep.subr.bf16.mxu0 %v7510_v46 }
 0x3ff   :  { %6167 = vmatpush1.bf16.msra.mxu1 %v7516_v1  ;;  %6207 = vmatpush1.bf16.msra.mxu0 %v7516_v1 }
 0x400   :  { %6169 = vmatprep.subr.bf16.mxu1 %v7524_v7  ;;  %6209 = vmatprep.subr.bf16.mxu0 %v7524_v7 }
 0x403   :  { %6171 = vmatpush1.bf16.msra.mxu1 %v7528_v10  ;;  %6211 = vmatpush1.bf16.msra.mxu0 %v7528_v10 }
 0x404   :  { %6173 = vmatprep.subr.bf16.mxu1 %v7536_v17  ;;  %6213 = vmatprep.subr.bf16.mxu0 %v7536_v17 }
 0x407   :  { %6175 = vmatpush1.bf16.msra.mxu1 %v7540_v23  ;;  %6215 = vmatpush1.bf16.msra.mxu0 %v7540_v23 }
 0x408   :  { %6177 = vmatprep.subr.bf16.mxu1 %v7548_v30  ;;  %6217 = vmatprep.subr.bf16.mxu0 %v7548_v30 }
 0x40b   :  { %6179 = vmatpush1.bf16.msra.mxu1 %v7557_v33  ;;  %6219 = vmatpush1.bf16.msra.mxu0 %v7557_v33 }
 0x40c   :  { %6181 = vmatprep.subr.bf16.mxu1 %v7566_v38  ;;  %6221 = vmatprep.subr.bf16.mxu0 %v7566_v38 }
 0x40f   :  { %6183 = vmatpush1.bf16.msra.mxu1 %v7569_v43  ;;  %6223 = vmatpush1.bf16.msra.mxu0 %v7569_v43 }
 0x410   :  { %6265 = vmatprep.subr.bf16.mxu0 %v7410_v21  ;;  %6225 = vmatprep.subr.bf16.mxu1 %v6224_v52  ;;  %v6226_v52 = vpack.c.bf16 %v1648_v31, %v1646_v29  ;;  %v1662_v29 = vld [vmem:[%s7555_s19 + $0x80] sm:$0xff]  ;;  %v1664_v31 = vld [vmem:[%s7555_s19 + $0x90] sm:$0xff] }
 0x4bd   :  { %v7578_v56 = vpop.f32.mrb[8].mxu1  ;;  %v7580_v12 = vpop.f32.mrb[10].mxu0 }
 0x4be   :  { %v1416_v61 = vmul.f32 %v7578_v56, %v7128_v24  ;;  %v7584_v59 = vpop.f32.mrb[9].mxu1  ;;  %v7586_v55 = vpop.f32.mrb[11].mxu0 }
 0x4bf   :  { %v1417_v22 = vmul.f32 %v7584_v59, %v7128_v24 }
 0x4c0   :  { %v1418_v27 = vrot.slane %v1416_v61, 4  ;;  %v1431_v35 = vmul.f32 %v1416_v61, %v1416_v61 }
 0x4c1   :  { %v1424_v40 = vsel %vm352_vm2, %v1417_v22, 0.0  ;;  %v1432_v42 = vmul.f32 %v1417_v22, %v1417_v22  ;;  %v6228_v22 = vpack.c.bf16 %v1653_v37, %v1651_v36  ;;  %v1669_v36 = vld [vmem:[%s7555_s19 + $0xb8] sm:$0xff] }
 0x4c2   :  { %v1419_v47 = vadd.f32 %v1418_v27, %v1416_v61  ;;  %v1433_v54 = vrot.slane %v1431_v35, 4  ;;  %v1425_v57 = vrot.slane %v1424_v40, 4  ;;  %v1650_v27 = vld [vmem:[%s7555_s19 + $0x20] sm:$0xff] }
 0x4c3   :  { %v1439_v60 = vsel %vm352_vm2, %v1432_v42, 0.0 }
 0x4c4   :  { %v1420_v63 = vrot.slane %v1419_v47, 2  ;;  %v1434_v16 = vadd.f32 %v1433_v54, %v1431_v35  ;;  %v1426_v19 = vadd.f32 %v1425_v57, %v1424_v40  ;;  %v1440_v4 = vrot.slane %v1439_v60, 4  ;;  %v1652_v35 = vld [vmem:[%s7555_s19 + $0x30] sm:$0xff]  ;;  %v1655_v54 = vld [vmem:[%s7555_s19 + $0x48] sm:$0xff]  ;;  %v1657_v57 = vld [vmem:[%s7555_s19 + $0x58] sm:$0xff] }
 0x4c6   :  { %v1421_v5 = vadd.f32 %v1420_v63, %v1419_v47  ;;  %v1435_v8 = vrot.slane %v1434_v16, 2  ;;  %v1427_v45 = vrot.slane %v1426_v19, 2  ;;  %v1441_v28 = vadd.f32 %v1440_v4, %v1439_v60  ;;  %v1654_v63 = vld [vmem:[%s7555_s19 + $0x40] sm:$0xff]  ;;  %v1659_v4 = vld [vmem:[%s7555_s19 + $0x68] sm:$0xff] }
 0x4c7   :  { %v6230_v47 = vpack.c.bf16 %v1652_v35, %v1650_v27  ;;  %v6232_v60 = vpack.c.bf16 %v1657_v57, %v1655_v54  ;;  %v1670_v27 = vld [vmem:[%s7555_s19 + $0xc0] sm:$0xff]  ;;  %v1672_v35 = vld [vmem:[%s7555_s19 + $0xd0] sm:$0xff] }
 0x4c8   :  { %v1436_v15 = vadd.f32 %v1435_v8, %v1434_v16  ;;  %v1428_v18 = vadd.f32 %v1427_v45, %v1426_v19  ;;  %v1442_v20 = vrot.slane %v1441_v28, 2  ;;  %v1422_v26 = vrot.slane %v1421_v5, 1  ;;  %v1656_v16 = vld [vmem:[%s7555_s19 + $0x50] sm:$0xff]  ;;  %v1658_v45 = vld [vmem:[%s7555_s19 + $0x60] sm:$0xff] }
 0x4c9   :  { %v6234_v19 = vpack.c.bf16 %v1656_v16, %v1654_v63  ;;  %v1674_v57 = vld [vmem:[%s7555_s19 + $0xe0] sm:$0xff]  ;;  %v1679_v63 = vld [vmem:[%s7555_s19 + $0x108] sm:$0xff] }
 0x4ca   :  { %v1429_v32 = vrot.slane %v1428_v18, 1  ;;  %v1443_v11 = vadd.f32 %v1442_v20, %v1441_v28  ;;  %v1437_v41 = vrot.slane %v1436_v15, 1  ;;  %v1423_v61 = vadd.f32 %v1422_v26, %v1421_v5  ;;  %v1661_v5 = vld [vmem:[%s7555_s19 + $0x78] sm:$0xff]  ;;  %v1660_v28 = vld [vmem:[%s7555_s19 + $0x70] sm:$0xff] }
 0x4cb   :  { %v6236_v8 = vpack.c.bf16 %v1661_v5, %v1659_v4  ;;  %v1665_v20 = vld [vmem:[%s7555_s19 + $0x98] sm:$0xff]  ;;  %v1678_v4 = vld [vmem:[%s7555_s19 + $0x100] sm:$0xff]  ;;  %v1680_v5 = vld [vmem:[%s7555_s19 + $0x110] sm:$0xff] }
 0x4cc   :  { %v1430_v44 = vadd.f32 %v1429_v32, %v1428_v18  ;;  %v1444_v14 = vrot.slane %v1443_v11, 1  ;;  %v1438_v42 = vadd.f32 %v1437_v41, %v1436_v15  ;;  %v6238_v15 = vpack.c.bf16 %v1660_v28, %v1658_v45  ;;  %v1663_v18 = vld [vmem:[%s7555_s19 + $0x88] sm:$0xff]  ;;  %v1666_v41 = vld [vmem:[%s7555_s19 + $0xa0] sm:$0xff]  ;;  %v1685_v28 = vld [vmem:[%s7555_s19 + $0x138] sm:$0xff] }
 0x4cd   :  { %v6240_v26 = vpack.c.bf16 %v1665_v20, %v1663_v18  ;;  %v6242_v32 = vpack.c.bf16 %v1664_v31, %v1662_v29  ;;  %v1683_v45 = vld [vmem:[%s7555_s19 + $0x128] sm:$0xff]  ;;  %v1682_v20 = vld [vmem:[%s7555_s19 + $0x120] sm:$0xff] }
 0x4ce   :  { %4853 = vmatprep.mubr.msk.f32.mxu1 %vm352_vm2, %v1430_v44  ;;  %v1445_v40 = vadd.f32 %v1444_v14, %v1443_v11  ;;  %v1667_v11 = vld [vmem:[%s7555_s19 + $0xa8] sm:$0xff]  ;;  %v1668_v44 = vld [vmem:[%s7555_s19 + $0xb0] sm:$0xff]  ;;  %v6260_v18 = vpack.c.bf16 %v1685_v28, %v1683_v45 }
 0x4cf   :  { %1514 = vmatmul.mubr.f32.vlgmr.msra.gmra.mrb[10].mxu1 %v1423_v61  ;;  %v6244_v37 = vpack.c.bf16 %v1669_v36, %v1667_v11  ;;  %v6246_v14 = vpack.c.bf16 %v1668_v44, %v1666_v41  ;;  %v1673_v61 = vld [vmem:[%s7555_s19 + $0xd8] sm:$0xff] }
 0x4d0   :  { %4854 = vmatprep.mubr.msk.f32.mxu0 %vm352_vm2, %v1445_v40  ;;  %6227 = vmatpush1.bf16.msra.mxu1 %v6226_v52  ;;  %v1671_v52 = vld [vmem:[%s7555_s19 + $0xc8] sm:$0xff]  ;;  %v6250_v40 = vpack.c.bf16 %v1672_v35, %v1670_v27 }
 0x4d1   :  { %1588 = vmatmul.mubr.f32.vlgmr.msra.gmra.mrb[12].mxu0 %v1438_v42  ;;  %6229 = vmatprep.subr.bf16.mxu1 %v6228_v22  ;;  %v6248_v22 = vpack.c.bf16 %v1673_v61, %v1671_v52  ;;  %v1675_v42 = vld [vmem:[%s7555_s19 + $0xe8] sm:$0xff] }
 0x4d2   :  { %6267 = vmatpush1.bf16.msra.mxu0 %v7458_v50 }
 0x4d3   :  { %6269 = vmatprep.subr.bf16.mxu0 %v7460_v51 }
 0x4d4   :  { %6231 = vmatpush1.bf16.msra.mxu1 %v6230_v47  ;;  %v1677_v47 = vld [vmem:[%s7555_s19 + $0xf8] sm:$0xff] }
 0x4d5   :  { %6233 = vmatprep.subr.bf16.mxu1 %v6232_v60  ;;  %v6252_v54 = vpack.c.bf16 %v1677_v47, %v1675_v42  ;;  %v1676_v60 = vld [vmem:[%s7555_s19 + $0xf0] sm:$0xff] }
 0x4d6   :  { %6271 = vmatpush1.bf16.msra.mxu0 %v7470_v62  ;;  %v6254_v16 = vpack.c.bf16 %v1676_v60, %v1674_v57  ;;  %v7662_v57 = vld [vmem:[%s4819_s23 + $0x8] sm:$0x3f] }
 0x4d7   :  { %6273 = vmatprep.subr.bf16.mxu0 %v7474_v2  ;;  %v1641_v45 = vrot.slane %v7662_v57, %v7222_v25 }
 0x4d8   :  { %6235 = vmatpush1.bf16.msra.mxu1 %v6234_v19  ;;  %v1681_v19 = vld [vmem:[%s7555_s19 + $0x118] sm:$0xff] }
 0x4d9   :  { %6237 = vmatprep.subr.bf16.mxu1 %v6236_v8  ;;  %v6256_v8 = vpack.c.bf16 %v1681_v19, %v1679_v63  ;;  %v1631_v19 = vrot.slane %v7662_v57, %v7208_v49 }
 0x4da   :  { %6275 = vmatpush1.bf16.msra.mxu0 %v7482_v58 }
 0x4db   :  { %6277 = vmatprep.subr.bf16.mxu0 %v7486_v34 }
 0x4dc   :  { %6239 = vmatpush1.bf16.msra.mxu1 %v6238_v15  ;;  %v6258_v15 = vpack.c.bf16 %v1680_v5, %v1678_v4 }
 0x4dd   :  { %6241 = vmatprep.subr.bf16.mxu1 %v6240_v26  ;;  %v1684_v26 = vld [vmem:[%s7555_s19 + $0x130] sm:$0xff]  ;;  %s4831_s19 = sld [smem:[%s8464_s0 + %s6955_s16]]  }
 0x4de   :  { %6279 = vmatpush1.bf16.msra.mxu0 %v7494_v48  ;;  %v6262_v29 = vpack.c.bf16 %v1684_v26, %v1682_v20 }
 0x4df   :  { %6281 = vmatprep.subr.bf16.mxu0 %v7498_v53 }
 0x4e0   :  { %6243 = vmatpush1.bf16.msra.mxu1 %v6242_v32 }
 0x4e1   :  { %6245 = vmatprep.subr.bf16.mxu1 %v6244_v37 }
 0x4e2   :  { %6283 = vmatpush1.bf16.msra.mxu0 %v7506_v3 }
 0x4e3   :  { %6285 = vmatprep.subr.bf16.mxu0 %v7510_v46 }
 0x4e4   :  { %6247 = vmatpush1.bf16.msra.mxu1 %v6246_v14 }
 0x4e5   :  { %6249 = vmatprep.subr.bf16.mxu1 %v6248_v22 }
 0x4e6   :  { %6287 = vmatpush1.bf16.msra.mxu0 %v7516_v1 }
 0x4e7   :  { %6289 = vmatprep.subr.bf16.mxu0 %v7524_v7 }
 0x4e8   :  { %6251 = vmatpush1.bf16.msra.mxu1 %v6250_v40 }
 0x4e9   :  { %6253 = vmatprep.subr.bf16.mxu1 %v6252_v54  ;;  %v7660_v54 = vld [vmem:[%s4819_s23] sm:$0x3f]  ;;  %s4834_s23 = sld [smem:[%s8464_s0 + %s6956_s20]]  }
 0x4ea   :  { %6291 = vmatpush1.bf16.msra.mxu0 %v7528_v10  ;;  %v1627_v63 = vrot.slane %v7660_v54, %v7208_v49  ;;  %v1637_v5 = vrot.slane %v7660_v54, %v7222_v25 }
 0x4eb   :  { %6293 = vmatprep.subr.bf16.mxu0 %v7536_v17 }
 0x4ec   :  { %6255 = vmatpush1.bf16.msra.mxu1 %v6254_v16 }
 0x4ed   :  { %6257 = vmatprep.subr.bf16.mxu1 %v6256_v8 }
 0x4ee   :  { %6295 = vmatpush1.bf16.msra.mxu0 %v7540_v23 }
 0x4ef   :  { %6297 = vmatprep.subr.bf16.mxu0 %v7548_v30 }
 0x4f0   :  { %6259 = vmatpush1.bf16.msra.mxu1 %v6258_v15 }
 0x4f1   :  { %6261 = vmatprep.subr.bf16.mxu1 %v6260_v18 }
 0x4f2   :  { %6299 = vmatpush1.bf16.msra.mxu0 %v7557_v33 }
 0x4f3   :  { %6301 = vmatprep.subr.bf16.mxu0 %v7566_v38 }
 0x4f4   :  { %6263 = vmatpush1.bf16.msra.mxu1 %v6262_v29 }
 0x4f5   :  { %6305 = vmatprep.subr.bf16.mxu1 %v7410_v21 }
 0x4f6   :  { %6303 = vmatpush1.bf16.msra.mxu0 %v7569_v43 }
 0x4f7   :  { %6345 = vmatprep.subr.bf16.mxu0 %v7410_v21 }
 0x5a2   :  { %v1515_v31 = vpop.f32.mrb[10].mxu1 }
 0x5a3   :  { %v1594_v32 = vmul.f32 %v1515_v31, %v1515_v31  ;;  %v1603_v11 = vrot.slane %v1515_v31, %v7208_v49  ;;  %v1517_v36 = vpop.f32.mrb[11].mxu1  ;;  %v1989_v31 = vmul.f32 %v7586_v55, %v7128_v24 }
 0x5a4   :  { %v1595_v37 = vmul.f32 %v1517_v36, %v1517_v36  ;;  %v1607_v41 = vrot.slane %v1517_v36, %v7208_v49  ;;  %v1589_v44 = vpop.f32.mrb[12].mxu0 }
 0x5a5   :  { %v1608_v14 = vsub.f32 %v7578_v56, %v1603_v11  ;;  %v1596_v52 = vsub.f32 %v1589_v44, %v1594_v32  ;;  %v1591_v61 = vpop.f32.mrb[13].mxu0  ;;  %v2004_v32 = vmul.f32 %v1989_v31, %v1989_v31  ;;  %v1996_v11 = vsel %vm352_vm2, %v1989_v31, 0.0 }
 0x5a6   :  { %v1609_v22 = vsub.f32 %v7584_v59, %v1607_v41  ;;  %v1597_v27 = vsub.f32 %v1591_v61, %v1595_v37  ;;  %v1997_v37 = vrot.slane %v1996_v11, 4 }
 0x5a7   :  { %v1598_v35 = vmax.f32 %v1596_v52, 0.0  ;;  %v2011_v36 = vsel %vm352_vm2, %v2004_v32, 0.0 }
 0x5a8   :  { %v1599_v40 = vmax.f32 %v1597_v27, 0.0  ;;  %v2012_v41 = vrot.slane %v2011_v36, 4  ;;  %v1998_v61 = vadd.f32 %v1997_v37, %v1996_v11 }
 0x5a9   :  { %v1610_v42 = vadd.f32 1e-05, %v1598_v35 }
 0x5aa   :  { %v1611_v47 = vadd.f32 1e-05, %v1599_v40  ;;  %v2013_v35 = vadd.f32 %v2012_v41, %v2011_v36 }
 0x5ab   :  { %6896 = vrsqrt.f32 %v1610_v42 }
 0x5ac   :  { %6898 = vrsqrt.f32 %v1611_v47 }
 0x5b5   :  { %v6897_v56 = vpop.eup %6896 }
 0x5b6   :  { %v6899_v60 = vpop.eup %6898  ;;  %v1617_v59 = vrot.slane %v6897_v56, %v7208_v49 }
 0x5b7   :  { %v1621_v16 = vrot.slane %v6899_v60, %v7208_v49 }
 0x5b8   :  { %v1622_v4 = vmul.f32 %v1617_v59, %v1608_v14  ;;  %v1999_v59 = vrot.slane %v1998_v61, 2 }
 0x5b9   :  { %v1623_v8 = vmul.f32 %v1621_v16, %v1609_v22 }
 0x5ba   :  { %v1632_v28 = vmul.f32 %v1627_v63, %v1622_v4 }
 0x5bb   :  { %v1633_v15 = vmul.f32 %v1631_v19, %v1623_v8  ;;  %v2014_v8 = vrot.slane %v2013_v35, 2 }
 0x5bc   :  { %v1642_v18 = vadd.f32 %v1637_v5, %v1632_v28 }
 0x5bd   :  { %v1643_v20 = vadd.f32 %v1641_v45, %v1633_v15  ;;  %v2015_v32 = vadd.f32 %v2014_v8, %v2013_v35  ;;  %v2330_v35 = vld [vmem:[%s7761_s1 + $0x8] sm:$0xff]  ;;  %v2240_v8 = vld [vmem:[%s7756_s27 + $0x20] sm:$0xff] }
 0x5be   :  { %v1644_v29 = vmax.f32 %v1642_v18, 0.0 }
 0x5bf   :  { %v1645_v26 = vmax.f32 %v1643_v20, 0.0  ;;  %v2000_v20 = vadd.f32 %v1999_v59, %v1998_v61  ;;  %v2239_v59 = vld [vmem:[%s7756_s27 + $0x18] sm:$0xff] }
 0x5c1   :  { %4855 = vmatprep.mubr.msk.f32.mxu1 %vm352_vm2, %v1645_v26  ;;  %v2001_v41 = vrot.slane %v2000_v20, 1 }
 0x5c2   :  { %1754 = vmatmul.mubr.f32.vlgmr.msra.gmra.mrb[12].mxu1 %v1644_v29 }
 0x5c3   :  { %6307 = vmatpush1.bf16.msra.mxu1 %v7458_v50 }
 0x5c4   :  { %6309 = vmatprep.subr.bf16.mxu1 %v7460_v51 }
 0x5c7   :  { %6311 = vmatpush1.bf16.msra.mxu1 %v7470_v62 }
 0x5c8   :  { %6313 = vmatprep.subr.bf16.mxu1 %v7474_v2 }
 0x5cb   :  { %6315 = vmatpush1.bf16.msra.mxu1 %v7482_v58 }
 0x5cc   :  { %6317 = vmatprep.subr.bf16.mxu1 %v7486_v34 }
 0x5cf   :  { %6319 = vmatpush1.bf16.msra.mxu1 %v7494_v48 }
 0x5d0   :  { %6321 = vmatprep.subr.bf16.mxu1 %v7498_v53 }
 0x5d3   :  { %6323 = vmatpush1.bf16.msra.mxu1 %v7506_v3 }
 0x5d4   :  { %6325 = vmatprep.subr.bf16.mxu1 %v7510_v46 }
 0x5d7   :  { %6327 = vmatpush1.bf16.msra.mxu1 %v7516_v1 }
 0x5d8   :  { %6329 = vmatprep.subr.bf16.mxu1 %v7524_v7 }
 0x5db   :  { %6331 = vmatpush1.bf16.msra.mxu1 %v7528_v10 }
 0x5dc   :  { %6333 = vmatprep.subr.bf16.mxu1 %v7536_v17 }
 0x5df   :  { %6335 = vmatpush1.bf16.msra.mxu1 %v7540_v23 }
 0x5e0   :  { %6337 = vmatprep.subr.bf16.mxu1 %v7548_v30 }
 0x5e3   :  { %6339 = vmatpush1.bf16.msra.mxu1 %v7557_v33 }
 0x5e4   :  { %6341 = vmatprep.subr.bf16.mxu1 %v7566_v38 }
 0x5e7   :  { %6343 = vmatpush1.bf16.msra.mxu1 %v7569_v43 }
 0x5e8   :  { %6385 = vmatprep.subr.bf16.mxu1 %v7410_v21 }
 0x695   :  { %v7699_v44 = vpop.f32.mrb[12].mxu1 }
 0x696   :  { %v1760_v14 = vmul.f32 %v7699_v44, %v7128_v24  ;;  %v7703_v52 = vpop.f32.mrb[13].mxu1 }
 0x697   :  { %v1761_v21 = vmul.f32 %v7703_v52, %v7128_v24 }
 0x698   :  { %v1762_v22 = vrot.slane %v1760_v14, 4  ;;  %v1775_v27 = vmul.f32 %v1760_v14, %v1760_v14 }
 0x699   :  { %v1768_v40 = vsel %vm352_vm2, %v1761_v21, 0.0  ;;  %v1776_v42 = vmul.f32 %v1761_v21, %v1761_v21 }
 0x69a   :  { %v1763_v47 = vadd.f32 %v1762_v22, %v1760_v14  ;;  %v1777_v56 = vrot.slane %v1775_v27, 4  ;;  %v1769_v60 = vrot.slane %v1768_v40, 4 }
 0x69b   :  { %v1783_v63 = vsel %vm352_vm2, %v1776_v42, 0.0 }
 0x69c   :  { %v1764_v16 = vrot.slane %v1763_v47, 2  ;;  %v1778_v19 = vadd.f32 %v1777_v56, %v1775_v27  ;;  %v1770_v4 = vadd.f32 %v1769_v60, %v1768_v40  ;;  %v1784_v5 = vrot.slane %v1783_v63, 4  ;;  %v2238_v60 = vld [vmem:[%s7756_s27 + $0x10] sm:$0xff] }
 0x69d   :  { %v2016_v40 = vrot.slane %v2015_v32, 1 }
 0x69e   :  { %v1765_v45 = vadd.f32 %v1764_v16, %v1763_v47  ;;  %v1779_v28 = vrot.slane %v1778_v19, 2  ;;  %v1771_v15 = vrot.slane %v1770_v4, 2  ;;  %v1785_v18 = vadd.f32 %v1784_v5, %v1783_v63  ;;  %v2331_v16 = vld [vmem:[%s7761_s1 + $0x10] sm:$0xff] }
 0x69f   :  { %v2002_v47 = vadd.f32 %v2001_v41, %v2000_v20  ;;  %v2017_v61 = vadd.f32 %v2016_v40, %v2015_v32  ;;  %v2245_v41 = vld [vmem:[%s7756_s27 + $0x48] sm:$0xff]  ;;  %v2246_v40 = vld [vmem:[%s7756_s27 + $0x50] sm:$0xff] }
 0x6a0   :  { %v1772_v26 = vadd.f32 %v1771_v15, %v1770_v4  ;;  %v1786_v29 = vrot.slane %v1785_v18, 2  ;;  %v1780_v31 = vadd.f32 %v1779_v28, %v1778_v19  ;;  %v1766_v11 = vrot.slane %v1765_v45, 1  ;;  %v2332_v19 = vld [vmem:[%s7761_s1 + $0x18] sm:$0xff]  ;;  %v2333_v28 = vld [vmem:[%s7761_s1 + $0x20] sm:$0xff] }
 0x6a1   :  { %v6428_v4 = vpack.c.bf16 %v2239_v59, %v2238_v60  ;;  %v6458_v5 = vpack.c.bf16 %v2332_v19, %v2331_v16  ;;  %v2254_v60 = vld [vmem:[%s7756_s27 + $0x90] sm:$0xff]  ;;  %v2255_v59 = vld [vmem:[%s7756_s27 + $0x98] sm:$0xff] }
 0x6a2   :  { %v1773_v36 = vrot.slane %v1772_v26, 1  ;;  %v1787_v37 = vadd.f32 %v1786_v29, %v1785_v18  ;;  %v1781_v14 = vrot.slane %v1780_v31, 1  ;;  %v1767_v27 = vadd.f32 %v1766_v11, %v1765_v45  ;;  %v2241_v45 = vld [vmem:[%s7756_s27 + $0x28] sm:$0xff]  ;;  %v2243_v29 = vld [vmem:[%s7756_s27 + $0x38] sm:$0xff] }
 0x6a3   :  { %v6431_v15 = vpack.c.bf16 %v2241_v45, %v2240_v8  ;;  %v2334_v18 = vld [vmem:[%s7761_s1 + $0x28] sm:$0xff]  ;;  %v2336_v11 = vld [vmem:[%s7761_s1 + $0x38] sm:$0xff]  ;;  %v6452_v19 = vpack.c.bf16 %v2255_v59, %v2254_v60  ;;  %v1981_v60 = vrot.slane %v7660_v54, %v7431_v13 }
 0x6a4   :  { %v1774_v21 = vadd.f32 %v1773_v36, %v1772_v26  ;;  %v1788_v22 = vrot.slane %v1787_v37, 1  ;;  %v1782_v56 = vadd.f32 %v1781_v14, %v1780_v31  ;;  %v6461_v20 = vpack.c.bf16 %v2334_v18, %v2333_v28  ;;  %v2242_v26 = vld [vmem:[%s7756_s27 + $0x30] sm:$0xff]  ;;  %v2337_v14 = vld [vmem:[%s7761_s1 + $0x40] sm:$0xff]  ;;  %v2348_v16 = vld [vmem:[%s7761_s1 + $0x98] sm:$0xff] }
 0x6a5   :  { %v2335_v31 = vld [vmem:[%s7761_s1 + $0x30] sm:$0xff]  ;;  %v6434_v32 = vpack.c.bf16 %v2243_v29, %v2242_v26 }
 0x6a6   :  { %4856 = vmatprep.mubr.msk.f32.mxu0 %vm352_vm2, %v1774_v21  ;;  %v1789_v42 = vadd.f32 %v1788_v22, %v1787_v37  ;;  %v6464_v36 = vpack.c.bf16 %v2336_v11, %v2335_v31  ;;  %v2244_v37 = vld [vmem:[%s7756_s27 + $0x40] sm:$0xff]  ;;  %v2338_v22 = vld [vmem:[%s7761_s1 + $0x48] sm:$0xff] }
 0x6a7   :  { %1858 = vmatmul.mubr.f32.vlgmr.msra.gmra.mrb[14].mxu0 %v1767_v27  ;;  %v6437_v21 = vpack.c.bf16 %v2245_v41, %v2244_v37  ;;  %v6467_v27 = vpack.c.bf16 %v2338_v22, %v2337_v14 }
 0x6a8   :  { %6347 = vmatpush1.bf16.msra.mxu0 %v7458_v50  ;;  %4857 = vmatprep.mubr.msk.f32.mxu1 %vm352_vm2, %v1789_v42  ;;  %v2247_v42 = vld [vmem:[%s7756_s27 + $0x58] sm:$0xff] }
 0x6a9   :  { %4858 = vmatprep.mubr.msk.f32.mxu0 %vm352_vm2, %v2002_v47  ;;  %1932 = vmatmul.mubr.f32.vlgmr.msra.gmra.mrb[14].mxu1 %v1782_v56  ;;  %v2339_v47 = vld [vmem:[%s7761_s1 + $0x50] sm:$0xff]  ;;  %v6440_v56 = vpack.c.bf16 %v2247_v42, %v2246_v40 }
 0x6aa   :  { %6387 = vmatpush1.bf16.msra.mxu1 %v7458_v50  ;;  %6349 = vmatprep.subr.bf16.mxu0 %v7460_v51  ;;  %v1988_v50 = vmul.f32 %v7580_v12, %v7128_v24 }
 0x6ab   :  { %4859 = vmatprep.mubr.msk.f32.mxu1 %vm352_vm2, %v2017_v61  ;;  %6389 = vmatprep.subr.bf16.mxu1 %v7460_v51  ;;  %v2340_v61 = vld [vmem:[%s7761_s1 + $0x58] sm:$0xff] }
 0x6ac   :  { %6351 = vmatpush1.bf16.msra.mxu0 %v7470_v62  ;;  %v2003_v51 = vmul.f32 %v1988_v50, %v1988_v50 }
 0x6ad   :  { %6353 = vmatprep.subr.bf16.mxu0 %v7474_v2 }
 0x6ae   :  { %6391 = vmatpush1.bf16.msra.mxu1 %v7470_v62  ;;  %v1990_v62 = vrot.slane %v1988_v50, 4 }
 0x6af   :  { %6393 = vmatprep.subr.bf16.mxu1 %v7474_v2  ;;  %v2005_v2 = vrot.slane %v2003_v51, 4 }
 0x6b0   :  { %6355 = vmatpush1.bf16.msra.mxu0 %v7482_v58 }
 0x6b1   :  { %6357 = vmatprep.subr.bf16.mxu0 %v7486_v34 }
 0x6b2   :  { %6395 = vmatpush1.bf16.msra.mxu1 %v7482_v58  ;;  %v1991_v58 = vadd.f32 %v1990_v62, %v1988_v50  ;;  %v6470_v50 = vpack.c.bf16 %v2340_v61, %v2339_v47  ;;  %v2249_v62 = vld [vmem:[%s7756_s27 + $0x68] sm:$0xff] }
 0x6b3   :  { %6397 = vmatprep.subr.bf16.mxu1 %v7486_v34  ;;  %v2006_v34 = vadd.f32 %v2005_v2, %v2003_v51  ;;  %v2248_v51 = vld [vmem:[%s7756_s27 + $0x60] sm:$0xff] }
 0x6b4   :  { %6359 = vmatpush1.bf16.msra.mxu0 %v7494_v48  ;;  %v2341_v2 = vld [vmem:[%s7761_s1 + $0x60] sm:$0xff] }
 0x6b5   :  { %6361 = vmatprep.subr.bf16.mxu0 %v7498_v53 }
 0x6b6   :  { %6399 = vmatpush1.bf16.msra.mxu1 %v7494_v48  ;;  %v1992_v48 = vrot.slane %v1991_v58, 2 }
 0x6b7   :  { %6401 = vmatprep.subr.bf16.mxu1 %v7498_v53  ;;  %v2007_v53 = vrot.slane %v2006_v34, 2 }
 0x6b8   :  { %6363 = vmatpush1.bf16.msra.mxu0 %v7506_v3 }
 0x6b9   :  { %6365 = vmatprep.subr.bf16.mxu0 %v7510_v46 }
 0x6ba   :  { %6403 = vmatpush1.bf16.msra.mxu1 %v7506_v3  ;;  %v1993_v3 = vadd.f32 %v1992_v48, %v1991_v58  ;;  %v6443_v58 = vpack.c.bf16 %v2249_v62, %v2248_v51 }
 0x6bb   :  { %6405 = vmatprep.subr.bf16.mxu1 %v7510_v46  ;;  %v2008_v46 = vadd.f32 %v2007_v53, %v2006_v34  ;;  %v2342_v34 = vld [vmem:[%s7761_s1 + $0x68] sm:$0xff]  ;;  %v2250_v53 = vld [vmem:[%s7756_s27 + $0x70] sm:$0xff] }
 0x6bc   :  { %6367 = vmatpush1.bf16.msra.mxu0 %v7516_v1  ;;  %v6473_v48 = vpack.c.bf16 %v2342_v34, %v2341_v2 }
 0x6bd   :  { %6369 = vmatprep.subr.bf16.mxu0 %v7524_v7 }
 0x6be   :  { %6407 = vmatpush1.bf16.msra.mxu1 %v7516_v1  ;;  %v1994_v1 = vrot.slane %v1993_v3, 1 }
 0x6bf   :  { %6409 = vmatprep.subr.bf16.mxu1 %v7524_v7  ;;  %v2009_v7 = vrot.slane %v2008_v46, 1 }
 0x6c0   :  { %6371 = vmatpush1.bf16.msra.mxu0 %v7528_v10 }
 0x6c1   :  { %6373 = vmatprep.subr.bf16.mxu0 %v7536_v17 }
 0x6c2   :  { %6411 = vmatpush1.bf16.msra.mxu1 %v7528_v10  ;;  %v1995_v10 = vadd.f32 %v1994_v1, %v1993_v3  ;;  %v2251_v3 = vld [vmem:[%s7756_s27 + $0x78] sm:$0xff] }
 0x6c3   :  { %6413 = vmatprep.subr.bf16.mxu1 %v7536_v17  ;;  %v2010_v17 = vadd.f32 %v2009_v7, %v2008_v46  ;;  %v2343_v46 = vld [vmem:[%s7761_s1 + $0x70] sm:$0xff]  ;;  %v6446_v1 = vpack.c.bf16 %v2251_v3, %v2250_v53  ;;  %v2344_v7 = vld [vmem:[%s7761_s1 + $0x78] sm:$0xff] }
 0x6c4   :  { %6375 = vmatpush1.bf16.msra.mxu0 %v7540_v23 }
 0x6c5   :  { %6377 = vmatprep.subr.bf16.mxu0 %v7548_v30 }
 0x6c6   :  { %6415 = vmatpush1.bf16.msra.mxu1 %v7540_v23  ;;  %v2236_v23 = vld [vmem:[%s7756_s27] sm:$0xff] }
 0x6c7   :  { %6417 = vmatprep.subr.bf16.mxu1 %v7548_v30  ;;  %v2237_v30 = vld [vmem:[%s7756_s27 + $0x8] sm:$0xff] }
 0x6c8   :  { %6379 = vmatpush1.bf16.msra.mxu0 %v7557_v33 }
 0x6c9   :  { %6381 = vmatprep.subr.bf16.mxu0 %v7566_v38 }
 0x6ca   :  { %6419 = vmatpush1.bf16.msra.mxu1 %v7557_v33  ;;  %v2329_v33 = vld [vmem:[%s7761_s1] sm:$0xff] }
 0x6cb   :  { %6421 = vmatprep.subr.bf16.mxu1 %v7566_v38  ;;  %v6942_v38 = vmov 0.0|0.0   ;;  %v6455_v63 = vpack.c.bf16 %v2330_v35, %v2329_v33  ;;  %v2346_v33 = vld [vmem:[%s7761_s1 + $0x88] sm:$0xff] }
 0x6cc   :  { %6383 = vmatpush1.bf16.msra.mxu0 %v7569_v43 }
 0x6cd   :  { %6424 = vmatprep.subr.bf16.mxu0 %v6942_v38 }
 0x6ce   :  { %6423 = vmatpush1.bf16.msra.mxu1 %v7569_v43  ;;  %v6425_v43 = vpack.c.bf16 %v2237_v30, %v2236_v23  ;;  %v6476_v23 = vpack.c.bf16 %v2344_v7, %v2343_v46  ;;  %v2345_v30 = vld [vmem:[%s7761_s1 + $0x80] sm:$0xff] }
 0x6cf   :  { %2086 = vmatmul.mubr.f32.vlgmr.msra.gmra.mrb[16].mxu0 %v1995_v10  ;;  %6454 = vmatprep.subr.bf16.mxu1 %v6942_v38  ;;  %v2252_v10 = vld [vmem:[%s7756_s27 + $0x80] sm:$0xff]  ;;  %v6479_v35 = vpack.c.bf16 %v2346_v33, %v2345_v30 }
 0x6d0   :  { %6426 = vmatpush1.bf16.msra.mxu0 %v6425_v43 }
 0x6d1   :  { %2160 = vmatmul.mubr.f32.vlgmr.msra.gmra.mrb[16].mxu1 %v2010_v17  ;;  %6427 = vmatprep.subr.bf16.mxu0 %v6942_v38  ;;  %v2253_v17 = vld [vmem:[%s7756_s27 + $0x88] sm:$0xff]  ;;  %s4835_s27 = sld [smem:[%s8464_s0 + %s6957_s24]]  }
 0x6d2   :  { %6456 = vmatpush1.bf16.msra.mxu1 %v6455_v63  ;;  %v6449_v43 = vpack.c.bf16 %v2253_v17, %v2252_v10  ;;  %v2347_v63 = vld [vmem:[%s7761_s1 + $0x90] sm:$0xff]  ;;  %v1971_v10 = vrot.slane %v7660_v54, %v7425_v6  ;;  %s4837_s1 = sld [smem:[%s8464_s0 + %s6958_s28]]  }
 0x6d3   :  { %6457 = vmatprep.subr.bf16.mxu1 %v6942_v38 }
 0x6d4   :  { %6429 = vmatpush1.bf16.msra.mxu0 %v6428_v4  ;;  %v6482_v4 = vpack.c.bf16 %v2348_v16, %v2347_v63  ;;  %v2209_v63 = vrot.slane %v7660_v54, %v7434_v39 }
 0x6d5   :  { %6430 = vmatprep.subr.bf16.mxu0 %v6942_v38 }
 0x6d6   :  { %6459 = vmatpush1.bf16.msra.mxu1 %v6458_v5 }
 0x6d7   :  { %6460 = vmatprep.subr.bf16.mxu1 %v6942_v38 }
 0x6d8   :  { %6432 = vmatpush1.bf16.msra.mxu0 %v6431_v15 }
 0x6d9   :  { %6433 = vmatprep.subr.bf16.mxu0 %v6942_v38 }
 0x6da   :  { %6462 = vmatpush1.bf16.msra.mxu1 %v6461_v20 }
 0x6db   :  { %6463 = vmatprep.subr.bf16.mxu1 %v6942_v38 }
 0x6dc   :  { %6435 = vmatpush1.bf16.msra.mxu0 %v6434_v32 }
 0x6dd   :  { %6436 = vmatprep.subr.bf16.mxu0 %v6942_v38 }
 0x6de   :  { %6465 = vmatpush1.bf16.msra.mxu1 %v6464_v36 }
 0x6df   :  { %6466 = vmatprep.subr.bf16.mxu1 %v6942_v38 }
 0x6e0   :  { %6438 = vmatpush1.bf16.msra.mxu0 %v6437_v21 }
 0x6e1   :  { %6439 = vmatprep.subr.bf16.mxu0 %v6942_v38 }
 0x6e2   :  { %6468 = vmatpush1.bf16.msra.mxu1 %v6467_v27 }
 0x6e3   :  { %6469 = vmatprep.subr.bf16.mxu1 %v6942_v38 }
 0x6e4   :  { %6441 = vmatpush1.bf16.msra.mxu0 %v6440_v56 }
 0x6e5   :  { %6442 = vmatprep.subr.bf16.mxu0 %v6942_v38 }
 0x6e6   :  { %6471 = vmatpush1.bf16.msra.mxu1 %v6470_v50 }
 0x6e7   :  { %6472 = vmatprep.subr.bf16.mxu1 %v6942_v38 }
 0x6e8   :  { %6444 = vmatpush1.bf16.msra.mxu0 %v6443_v58 }
 0x6e9   :  { %6445 = vmatprep.subr.bf16.mxu0 %v6942_v38 }
 0x6ea   :  { %6474 = vmatpush1.bf16.msra.mxu1 %v6473_v48 }
 0x6eb   :  { %6475 = vmatprep.subr.bf16.mxu1 %v6942_v38 }
 0x6ec   :  { %6447 = vmatpush1.bf16.msra.mxu0 %v6446_v1 }
 0x6ed   :  { %6448 = vmatprep.subr.bf16.mxu0 %v6942_v38 }
 0x6ee   :  { %6477 = vmatpush1.bf16.msra.mxu1 %v6476_v23  ;;  %v1975_v23 = vrot.slane %v7662_v57, %v7425_v6 }
 0x6ef   :  { %6478 = vmatprep.subr.bf16.mxu1 %v6942_v38 }
 0x6f0   :  { %6450 = vmatpush1.bf16.msra.mxu0 %v6449_v43  ;;  %v2203_v43 = vrot.slane %v7662_v57, %v7428_v9 }
 0x6f1   :  { %6451 = vmatprep.subr.bf16.mxu0 %v6942_v38 }
 0x6f2   :  { %6480 = vmatpush1.bf16.msra.mxu1 %v6479_v35 }
 0x6f3   :  { %6481 = vmatprep.subr.bf16.mxu1 %v6942_v38 }
 0x6f4   :  { %6453 = vmatpush1.bf16.msra.mxu0 %v6452_v19  ;;  %v1985_v19 = vrot.slane %v7662_v57, %v7431_v13 }
 0x6f5   :  { %6484 = vmatprep.subr.bf16.mxu0 %v6942_v38 }
 0x6f6   :  { %6483 = vmatpush1.bf16.msra.mxu1 %v6482_v4 }
 0x6f7   :  { %6505 = vmatprep.subr.bf16.mxu1 %v6942_v38 }
 0x77a   :  { %v1859_v5 = vpop.f32.mrb[14].mxu0 }
 0x77b   :  { %v1938_v8 = vmul.f32 %v1859_v5, %v1859_v5  ;;  %v1947_v45 = vrot.slane %v1859_v5, %v7208_v49  ;;  %v1861_v28 = vpop.f32.mrb[15].mxu0  ;;  %v2213_v5 = vrot.slane %v7662_v57, %v7434_v39 }
 0x77c   :  { %v1939_v15 = vmul.f32 %v1861_v28, %v1861_v28  ;;  %v1951_v18 = vrot.slane %v1861_v28, %v7208_v49  ;;  %v1933_v20 = vpop.f32.mrb[14].mxu1 }
 0x77d   :  { %v1952_v26 = vsub.f32 %v7699_v44, %v1947_v45  ;;  %v1940_v29 = vsub.f32 %v1933_v20, %v1938_v8  ;;  %v1935_v31 = vpop.f32.mrb[15].mxu1 }
 0x77e   :  { %v1953_v32 = vsub.f32 %v7703_v52, %v1951_v18  ;;  %v1941_v11 = vsub.f32 %v1935_v31, %v1939_v15  ;;  %v2221_v31 = vld [vmem:[%s7845_s5 + $0x8] sm:$0xff] }
 0x77f   :  { %v1942_v36 = vmax.f32 %v1940_v29, 0.0  ;;  %v2220_v29 = vld [vmem:[%s7845_s5] sm:$0xff] }
 0x780   :  { %v1943_v37 = vmax.f32 %v1941_v11, 0.0  ;;  %v7860_v11 = vpack.c.bf16 %v2221_v31, %v2220_v29  ;;  %v2615_v29 = vld [vmem:[%s7960_s9 + $0x38] sm:$0xff] }
 0x781   :  { %v1954_v41 = vadd.f32 1e-05, %v1942_v36 }
 0x782   :  { %v1955_v14 = vadd.f32 1e-05, %v1943_v37  ;;  %v2222_v37 = vld [vmem:[%s7845_s5 + $0x10] sm:$0xff] }
 0x783   :  { %6900 = vrsqrt.f32 %v1954_v41  ;;  %v2223_v41 = vld [vmem:[%s7845_s5 + $0x18] sm:$0xff] }
 0x784   :  { %6902 = vrsqrt.f32 %v1955_v14  ;;  %v7868_v57 = vpack.c.bf16 %v2223_v41, %v2222_v37  ;;  %v2224_v14 = vld [vmem:[%s7845_s5 + $0x20] sm:$0xff]  ;;  %v2618_v37 = vld [vmem:[%s7960_s9 + $0x50] sm:$0xff]  ;;  %v2619_v41 = vld [vmem:[%s7960_s9 + $0x58] sm:$0xff] }
 0x78d   :  { %v6901_v21 = vpop.eup %6900 }
 0x78e   :  { %v6903_v22 = vpop.eup %6902  ;;  %v1961_v27 = vrot.slane %v6901_v21, %v7208_v49  ;;  %v2225_v21 = vld [vmem:[%s7845_s5 + $0x28] sm:$0xff] }
 0x78f   :  { %v1965_v40 = vrot.slane %v6903_v22, %v7208_v49  ;;  %v7876_v22 = vpack.c.bf16 %v2225_v21, %v2224_v14  ;;  %v6542_v14 = vpack.c.bf16 %v2619_v41, %v2618_v37  ;;  %v2620_v21 = vld [vmem:[%s7960_s9 + $0x60] sm:$0xff] }
 0x790   :  { %v1966_v42 = vmul.f32 %v1961_v27, %v1952_v26  ;;  %v2226_v27 = vld [vmem:[%s7845_s5 + $0x30] sm:$0xff] }
 0x791   :  { %v1967_v47 = vmul.f32 %v1965_v40, %v1953_v32  ;;  %v2227_v40 = vld [vmem:[%s7845_s5 + $0x38] sm:$0xff] }
 0x792   :  { %v1976_v35 = vmul.f32 %v1971_v10, %v1966_v42  ;;  %v7884_v42 = vpack.c.bf16 %v2227_v40, %v2226_v27  ;;  %v2621_v27 = vld [vmem:[%s7960_s9 + $0x68] sm:$0xff] }
 0x793   :  { %v1977_v16 = vmul.f32 %v1975_v23, %v1967_v47  ;;  %v2228_v47 = vld [vmem:[%s7845_s5 + $0x40] sm:$0xff]  ;;  %v6545_v40 = vpack.c.bf16 %v2621_v27, %v2620_v21 }
 0x794   :  { %v1986_v28 = vadd.f32 %v1981_v60, %v1976_v35 }
 0x795   :  { %v1987_v18 = vadd.f32 %v1985_v19, %v1977_v16  ;;  %v2608_v19 = vld [vmem:[%s7960_s9] sm:$0xff] }
 0x7a2   :  { %v2087_v44 = vpop.f32.mrb[16].mxu0 }
 0x7a3   :  { %v2166_v56 = vmul.f32 %v2087_v44, %v2087_v44  ;;  %v2175_v61 = vrot.slane %v2087_v44, %v7208_v49  ;;  %v2089_v52 = vpop.f32.mrb[17].mxu0  ;;  %v2229_v44 = vld [vmem:[%s7845_s5 + $0x48] sm:$0xff] }
 0x7a4   :  { %v2167_v50 = vmul.f32 %v2089_v52, %v2089_v52  ;;  %v2179_v51 = vrot.slane %v2089_v52, %v7208_v49  ;;  %v2161_v62 = vpop.f32.mrb[16].mxu1  ;;  %v2231_v52 = vld [vmem:[%s7845_s5 + $0x58] sm:$0xff] }
 0x7a5   :  { %v2180_v2 = vsub.f32 %v7580_v12, %v2175_v61  ;;  %v2168_v58 = vsub.f32 %v2161_v62, %v2166_v56  ;;  %v2163_v34 = vpop.f32.mrb[17].mxu1  ;;  %v7894_v56 = vpack.c.bf16 %v2229_v44, %v2228_v47  ;;  %v2230_v61 = vld [vmem:[%s7845_s5 + $0x50] sm:$0xff]  ;;  %v2233_v62 = vld [vmem:[%s7845_s5 + $0x68] sm:$0xff] }
 0x7a6   :  { %v2181_v48 = vsub.f32 %v7586_v55, %v2179_v51  ;;  %v2169_v53 = vsub.f32 %v2163_v34, %v2167_v50  ;;  %v2199_v55 = vrot.slane %v7660_v54, %v7428_v9  ;;  %v7902_v50 = vpack.c.bf16 %v2231_v52, %v2230_v61  ;;  %v2232_v51 = vld [vmem:[%s7845_s5 + $0x60] sm:$0xff]  ;;  %v2622_v47 = vld [vmem:[%s7960_s9 + $0x70] sm:$0xff] }
 0x7a7   :  { %v2170_v3 = vmax.f32 %v2168_v58, 0.0  ;;  %v7917_v58 = vld [vmem:[%s7845_s5 + $0x70] sm:$0xff] }
 0x7a8   :  { %v2171_v46 = vmax.f32 %v2169_v53, 0.0 }
 0x7a9   :  { %v2182_v1 = vadd.f32 1e-05, %v2170_v3 }
 0x7aa   :  { %v2183_v7 = vadd.f32 1e-05, %v2171_v46 }
 0x7ab   :  { %6904 = vrsqrt.f32 %v2182_v1 }
 0x7ac   :  { %6906 = vrsqrt.f32 %v2183_v7 }
 0x7b5   :  { %v6905_v17 = vpop.eup %6904 }
 0x7b6   :  { %v6907_v30 = vpop.eup %6906  ;;  %v2189_v12 = vrot.slane %v6905_v17, %v7208_v49 }
 0x7b7   :  { %v2193_v33 = vrot.slane %v6907_v30, %v7208_v49 }
 0x7b8   :  { %v2194_v59 = vmul.f32 %v2189_v12, %v2180_v2  ;;  %v7910_v2 = vpack.c.bf16 %v2233_v62, %v2232_v51 }
 0x7b9   :  { %v2195_v4 = vmul.f32 %v2193_v33, %v2181_v48 }
 0x7ba   :  { %v2204_v8 = vmul.f32 %v2199_v55, %v2194_v59 }
 0x7bb   :  { %v2205_v45 = vmul.f32 %v2203_v43, %v2195_v4  ;;  %v2609_v4 = vld [vmem:[%s7960_s9 + $0x8] sm:$0xff] }
 0x7bc   :  { %v2214_v15 = vadd.f32 %v2209_v63, %v2204_v8  ;;  %v2610_v8 = vld [vmem:[%s7960_s9 + $0x10] sm:$0xff] }
 0x7bd   :  { %v2215_v20 = vadd.f32 %v2213_v5, %v2205_v45  ;;  %v6527_v5 = vpack.c.bf16 %v2609_v4, %v2608_v19  ;;  %v2611_v45 = vld [vmem:[%s7960_s9 + $0x18] sm:$0xff] }
 0x7be   :  { %v2216_v26 = vadd.f32 %v2214_v15, %v1986_v28  ;;  %v6530_v28 = vpack.c.bf16 %v2611_v45, %v2610_v8  ;;  %v2612_v15 = vld [vmem:[%s7960_s9 + $0x20] sm:$0xff] }
 0x7bf   :  { %v2217_v54 = vadd.f32 %v2215_v20, %v1987_v18  ;;  %v2613_v18 = vld [vmem:[%s7960_s9 + $0x28] sm:$0xff] }
 0x7c0   :  { %v2218_v36 = vmax.f32 %v2216_v26, 0.0  ;;  %v6533_v20 = vpack.c.bf16 %v2613_v18, %v2612_v15  ;;  %v2614_v26 = vld [vmem:[%s7960_s9 + $0x30] sm:$0xff] }
 0x7c1   :  { %v2219_v32 = vmax.f32 %v2217_v54, 0.0  ;;  %v6536_v31 = vpack.c.bf16 %v2615_v29, %v2614_v26  ;;  %v2616_v54 = vld [vmem:[%s7960_s9 + $0x40] sm:$0xff] }
 0x7c3   :  { %4860 = vmatprep.mubr.msk.f32.mxu0 %vm352_vm2, %v2219_v32  ;;  %4861 = vmatprep.mubr.msk.f32.mxu1 %vm352_vm2, %v2219_v32  ;;  %v2617_v32 = vld [vmem:[%s7960_s9 + $0x48] sm:$0xff] }
 0x7c4   :  { %2324 = vmatmul.mubr.f32.vlgmr.msra.gmra.mrb[18].mxu0 %v2218_v36  ;;  %2414 = vmatmul.mubr.f32.vlgmr.msra.gmra.mrb[18].mxu1 %v2218_v36  ;;  %v6539_v36 = vpack.c.bf16 %v2617_v32, %v2616_v54 }
 0x7c5   :  { %6486 = vmatpush3.bf16.msra.mxu0 %v7860_v11  ;;  %6507 = vmatpush3.bf16.msra.mxu1 %v7860_v11 }
 0x7c6   :  { %6487 = vmatprep.subr.bf16.mxu0 %v6942_v38  ;;  %6508 = vmatprep.subr.bf16.mxu1 %v6942_v38 }
 0x7c7   :  { %5206 = vmatprep.mubr.msk.f32.mxu0 %vm6944_vm3, %v6927_v0  ;;  %5239 = vmatprep.mubr.msk.f32.mxu1 %vm6944_vm3, %v6927_v0 }
 0x7c9   :  { %6489 = vmatpush3.bf16.msra.mxu0 %v7868_v57  ;;  %6510 = vmatpush3.bf16.msra.mxu1 %v7868_v57 }
 0x7ca   :  { %6490 = vmatprep.subr.bf16.mxu0 %v6942_v38  ;;  %6511 = vmatprep.subr.bf16.mxu1 %v6942_v38 }
 0x7cd   :  { %6492 = vmatpush3.bf16.msra.mxu0 %v7876_v22  ;;  %6513 = vmatpush3.bf16.msra.mxu1 %v7876_v22 }
 0x7ce   :  { %6493 = vmatprep.subr.bf16.mxu0 %v6942_v38  ;;  %6514 = vmatprep.subr.bf16.mxu1 %v6942_v38 }
 0x7d1   :  { %6495 = vmatpush3.bf16.msra.mxu0 %v7884_v42  ;;  %6516 = vmatpush3.bf16.msra.mxu1 %v7884_v42 }
 0x7d2   :  { %6496 = vmatprep.subr.bf16.mxu0 %v6942_v38  ;;  %6517 = vmatprep.subr.bf16.mxu1 %v6942_v38 }
 0x7d5   :  { %6498 = vmatpush3.bf16.msra.mxu0 %v7894_v56  ;;  %6519 = vmatpush3.bf16.msra.mxu1 %v7894_v56 }
 0x7d6   :  { %6499 = vmatprep.subr.bf16.mxu0 %v6942_v38  ;;  %6520 = vmatprep.subr.bf16.mxu1 %v6942_v38 }
 0x7d9   :  { %6501 = vmatpush3.bf16.msra.mxu0 %v7902_v50  ;;  %6522 = vmatpush3.bf16.msra.mxu1 %v7902_v50 }
 0x7da   :  { %6502 = vmatprep.subr.bf16.mxu0 %v6942_v38  ;;  %6523 = vmatprep.subr.bf16.mxu1 %v6942_v38 }
 0x7dd   :  { %6504 = vmatpush3.bf16.msra.mxu0 %v7910_v2  ;;  %6525 = vmatpush3.bf16.msra.mxu1 %v7910_v2 }
 0x7de   :  { %5204 = vmatprep.subr.mxu0 %v6927_v0  ;;  %5237 = vmatprep.subr.mxu1 %v6927_v0 }
 0x7e1   :  { %5205 = vmatpush3.msra.mxu0 %v7917_v58  ;;  %5238 = vmatpush3.msra.mxu1 %v7917_v58 }
 0x7e2   :  { %6526 = vmatprep.subr.bf16.mxu0 %v6942_v38  ;;  %6547 = vmatprep.subr.bf16.mxu1 %v6942_v38 }
 0x897   :  { %v7927_v34 = vpop.f32.mrb[18].mxu0  ;;  %v7929_v48 = vpop.f32.mrb[18].mxu1 }
 0x898   :  { %v2419_v53 = vmul.f32 %v7927_v34, %v7128_v24  ;;  %v2327_v3 = vpop.f32.mrb[19].mxu0  ;;  %v2417_v46 = vpop.f32.mrb[19].mxu1  ;;  %v2883_v54 = vmul.f32 %v7929_v48, %v7128_v24 }
 0x89a   :  { %v2421_v1 = vsel %vm2420_vm4, %v2419_v53, 0.0  ;;  %v2428_v7 = vmul.f32 %v2419_v53, %v2419_v53  ;;  %v2884_v37 = vsel %vm2420_vm4, %v2883_v54, 0.0 }
 0x89b   :  { %v2422_v10 = vrot.slane %v2421_v1, 4 }
 0x89c   :  { %v2429_v17 = vsel %vm2420_vm4, %v2428_v7, 0.0 }
 0x89d   :  { %v2423_v23 = vadd.f32 %v2422_v10, %v2421_v1  ;;  %v2430_v30 = vrot.slane %v2429_v17, 4  ;;  %v7990_v10 = vld [vmem:[%s4824_s13] sm:$0x3f] }
 0x89f   :  { %v2424_v12 = vrot.slane %v2423_v23, 2  ;;  %v2431_v55 = vadd.f32 %v2430_v30, %v2429_v17  ;;  %v2600_v30 = vrot.slane %v7990_v10, %v7208_v49 }
 0x8a1   :  { %v2425_v33 = vadd.f32 %v2424_v12, %v2423_v23  ;;  %v2432_v43 = vrot.slane %v2431_v55, 2 }
 0x8a3   :  { %v2426_v35 = vrot.slane %v2425_v33, 1  ;;  %v2433_v60 = vadd.f32 %v2432_v43, %v2431_v55 }
 0x8a5   :  { %v2427_v59 = vadd.f32 %v2426_v35, %v2425_v33  ;;  %v2434_v63 = vrot.slane %v2433_v60, 1 }
 0x8a7   :  { %v2435_v16 = vadd.f32 %v2434_v63, %v2433_v60  ;;  %5207 = vmatmul.mubr.msk.f32.vlgmr.msra.gmra.mrb[20].mxu0 %vm2420_vm4, %v2427_v59 }
 0x8a8   :  { %5272 = vmatprep.mubr.msk.f32.mxu0 %vm6944_vm3, %v6927_v0  ;;  %6528 = vmatpush3.bf16.msra.mxu0 %v6527_v5 }
 0x8a9   :  { %5240 = vmatmul.mubr.msk.f32.vlgmr.msra.gmra.mrb[20].mxu1 %vm2420_vm4, %v2435_v16  ;;  %6529 = vmatprep.subr.bf16.mxu0 %v6942_v38 }
 0x8aa   :  { %6549 = vmatpush3.bf16.msra.mxu1 %v7860_v11  ;;  %5305 = vmatprep.mubr.msk.f32.mxu1 %vm6944_vm3, %v6927_v0 }
 0x8ab   :  { %6550 = vmatprep.subr.bf16.mxu1 %v6942_v38 }
 0x8ac   :  { %6531 = vmatpush3.bf16.msra.mxu0 %v6530_v28 }
 0x8ad   :  { %6532 = vmatprep.subr.bf16.mxu0 %v6942_v38 }
 0x8ae   :  { %6552 = vmatpush3.bf16.msra.mxu1 %v7868_v57 }
 0x8af   :  { %6553 = vmatprep.subr.bf16.mxu1 %v6942_v38 }
 0x8b0   :  { %6534 = vmatpush3.bf16.msra.mxu0 %v6533_v20 }
 0x8b1   :  { %6535 = vmatprep.subr.bf16.mxu0 %v6942_v38 }
 0x8b2   :  { %6555 = vmatpush3.bf16.msra.mxu1 %v7876_v22 }
 0x8b3   :  { %6556 = vmatprep.subr.bf16.mxu1 %v6942_v38 }
 0x8b4   :  { %6537 = vmatpush3.bf16.msra.mxu0 %v6536_v31 }
 0x8b5   :  { %6538 = vmatprep.subr.bf16.mxu0 %v6942_v38 }
 0x8b6   :  { %6558 = vmatpush3.bf16.msra.mxu1 %v7884_v42 }
 0x8b7   :  { %6559 = vmatprep.subr.bf16.mxu1 %v6942_v38 }
 0x8b8   :  { %6540 = vmatpush3.bf16.msra.mxu0 %v6539_v36  ;;  %v2891_v36 = vmul.f32 %v2883_v54, %v2883_v54  ;;  %v3095_v54 = vld [vmem:[%s8073_s17 + $0x60] sm:$0xff] }
 0x8b9   :  { %6541 = vmatprep.subr.bf16.mxu0 %v6942_v38 }
 0x8ba   :  { %6561 = vmatpush3.bf16.msra.mxu1 %v7894_v56  ;;  %v2892_v41 = vsel %vm2420_vm4, %v2891_v36, 0.0 }
 0x8bb   :  { %6562 = vmatprep.subr.bf16.mxu1 %v6942_v38 }
 0x8bc   :  { %6543 = vmatpush3.bf16.msra.mxu0 %v6542_v14  ;;  %v2885_v14 = vrot.slane %v2884_v37, 4 }
 0x8bd   :  { %6544 = vmatprep.subr.bf16.mxu0 %v6942_v38 }
 0x8be   :  { %6564 = vmatpush3.bf16.msra.mxu1 %v7902_v50  ;;  %v2886_v21 = vadd.f32 %v2885_v14, %v2884_v37  ;;  %v3183_v37 = vld [vmem:[%s8078_s21 + $0x60] sm:$0xff] }
 0x8bf   :  { %6565 = vmatprep.subr.bf16.mxu1 %v6942_v38 }
 0x8c0   :  { %6546 = vmatpush3.bf16.msra.mxu0 %v6545_v40 }
 0x8c1   :  { %5270 = vmatprep.subr.mxu0 %v6927_v0 }
 0x8c2   :  { %6567 = vmatpush3.bf16.msra.mxu1 %v7910_v2 }
 0x8c3   :  { %5303 = vmatprep.subr.mxu1 %v6927_v0 }
 0x8c4   :  { %5271 = vmatpush3.msra.mxu0 %v2622_v47 }
 0x8c5   :  { %6568 = vmatprep.subr.bf16.mxu0 %v6942_v38 }
 0x8c6   :  { %5304 = vmatpush3.msra.mxu1 %v7917_v58 }
 0x8c7   :  { %6589 = vmatprep.subr.bf16.mxu1 %v6942_v38 }
 0x97a   :  { %v2505_v44 = vpop.f32.mrb[20].mxu0 }
 0x97b   :  { %v2582_v61 = vmul.f32 %v2505_v44, %v2505_v44  ;;  %v2588_v52 = vrot.slane %v2505_v44, %v7208_v49  ;;  %v5208_v51 = vpop.f32.mrb[21].mxu0 }
 0x97c   :  { %v2578_v62 = vpop.f32.mrb[20].mxu1  ;;  %v3172_v51 = vld [vmem:[%s8078_s21 + $0x8] sm:$0xff] }
 0x97d   :  { %v2589_v53 = vsub.f32 %v7927_v34, %v2588_v52  ;;  %v2583_v3 = vsub.f32 %v2578_v62, %v2582_v61  ;;  %v5241_v46 = vpop.f32.mrb[21].mxu1  ;;  %v2605_v34 = vrot.slane %v7990_v10, %v7222_v25 }
 0x97e   :  { %v3173_v46 = vld [vmem:[%s8078_s21 + $0x10] sm:$0xff] }
 0x97f   :  { %v2584_v1 = vmax.f32 %v2583_v3, 0.0  ;;  %v3086_v3 = vld [vmem:[%s8073_s17 + $0x18] sm:$0xff] }
 0x981   :  { %v2590_v7 = vadd.f32 1e-05, %v2584_v1 }
 0x983   :  { %6908 = vrsqrt.f32 %v2590_v7  ;;  %v3174_v7 = vld [vmem:[%s8078_s21 + $0x18] sm:$0xff] }
 0x98d   :  { %v6909_v17 = vpop.eup %6908 }
 0x98e   :  { %v2595_v23 = vrot.slane %v6909_v17, %v7208_v49  ;;  %v6656_v17 = vpack.c.bf16 %v3174_v7, %v3173_v46 }
 0x990   :  { %v2596_v12 = vmul.f32 %v2595_v23, %v2589_v53  ;;  %v3085_v53 = vld [vmem:[%s8073_s17 + $0x10] sm:$0xff]  ;;  %v3087_v23 = vld [vmem:[%s8073_s17 + $0x20] sm:$0xff] }
 0x991   :  { %v6635_v1 = vpack.c.bf16 %v3086_v3, %v3085_v53 }
 0x992   :  { %v2601_v55 = vmul.f32 %v2600_v30, %v2596_v12  ;;  %v3088_v30 = vld [vmem:[%s8073_s17 + $0x28] sm:$0xff]  ;;  %v3175_v12 = vld [vmem:[%s8078_s21 + $0x20] sm:$0xff] }
 0x994   :  { %v2606_v33 = vadd.f32 %v2605_v34, %v2601_v55  ;;  %v6638_v34 = vpack.c.bf16 %v3088_v30, %v3087_v23  ;;  %v3176_v55 = vld [vmem:[%s8078_s21 + $0x28] sm:$0xff] }
 0x996   :  { %v2607_v43 = vmax.f32 %v2606_v33, 0.0  ;;  %v6659_v33 = vpack.c.bf16 %v3176_v55, %v3175_v12  ;;  %v2876_v12 = vrot.slane %v7990_v10, %v7425_v6 }
 0x998   :  { %5273 = vmatmul.mubr.msk.f32.vlgmr.msra.gmra.mrb[22].mxu0 %vm2420_vm4, %v2607_v43  ;;  %v3089_v43 = vld [vmem:[%s8073_s17 + $0x30] sm:$0xff] }
 0x999   :  { %6570 = vmatpush3.bf16.msra.mxu0 %v7860_v11  ;;  %5338 = vmatprep.mubr.msk.f32.mxu0 %vm6944_vm3, %v6927_v0 }
 0x99a   :  { %6571 = vmatprep.subr.bf16.mxu0 %v6942_v38 }
 0x99d   :  { %6573 = vmatpush3.bf16.msra.mxu0 %v7868_v57 }
 0x99e   :  { %6574 = vmatprep.subr.bf16.mxu0 %v6942_v38 }
 0x9a1   :  { %6576 = vmatpush3.bf16.msra.mxu0 %v7876_v22 }
 0x9a2   :  { %6577 = vmatprep.subr.bf16.mxu0 %v6942_v38 }
 0x9a5   :  { %6579 = vmatpush3.bf16.msra.mxu0 %v7884_v42 }
 0x9a6   :  { %6580 = vmatprep.subr.bf16.mxu0 %v6942_v38 }
 0x9a9   :  { %6582 = vmatpush3.bf16.msra.mxu0 %v7894_v56 }
 0x9aa   :  { %6583 = vmatprep.subr.bf16.mxu0 %v6942_v38 }
 0x9ad   :  { %6585 = vmatpush3.bf16.msra.mxu0 %v7902_v50 }
 0x9ae   :  { %6586 = vmatprep.subr.bf16.mxu0 %v6942_v38 }
 0x9b1   :  { %6588 = vmatpush3.bf16.msra.mxu0 %v7910_v2 }
 0x9b2   :  { %5336 = vmatprep.subr.mxu0 %v6927_v0 }
 0x9b5   :  { %5337 = vmatpush3.msra.mxu0 %v7917_v58 }
 0x9b6   :  { %6610 = vmatprep.subr.bf16.mxu0 %v6942_v38 }
 0xa6b   :  { %v8016_v35 = vpop.f32.mrb[22].mxu0 }
 0xa6c   :  { %v2696_v60 = vmul.f32 %v8016_v35, %v7128_v24  ;;  %v5274_v59 = vpop.f32.mrb[23].mxu0 }
 0xa6d   :  { %v3177_v59 = vld [vmem:[%s8078_s21 + $0x30] sm:$0xff] }
 0xa6e   :  { %v2697_v63 = vsel %vm2420_vm4, %v2696_v60, 0.0  ;;  %v2704_v16 = vmul.f32 %v2696_v60, %v2696_v60  ;;  %v3090_v60 = vld [vmem:[%s8073_s17 + $0x38] sm:$0xff] }
 0xa6f   :  { %v2698_v19 = vrot.slane %v2697_v63, 4 }
 0xa70   :  { %v2705_v4 = vsel %vm2420_vm4, %v2704_v16, 0.0  ;;  %v3178_v16 = vld [vmem:[%s8078_s21 + $0x38] sm:$0xff] }
 0xa71   :  { %v2699_v5 = vadd.f32 %v2698_v19, %v2697_v63  ;;  %v2706_v8 = vrot.slane %v2705_v4, 4  ;;  %v6641_v63 = vpack.c.bf16 %v3090_v60, %v3089_v43  ;;  %v6662_v19 = vpack.c.bf16 %v3178_v16, %v3177_v59 }
 0xa72   :  { %v2881_v60 = vrot.slane %v7990_v10, %v7431_v13  ;;  %v3068_v59 = vrot.slane %v7990_v10, %v7434_v39 }
 0xa73   :  { %v2700_v45 = vrot.slane %v2699_v5, 2  ;;  %v2707_v28 = vadd.f32 %v2706_v8, %v2705_v4  ;;  %v3091_v4 = vld [vmem:[%s8073_s17 + $0x40] sm:$0xff] }
 0xa74   :  { %v3179_v8 = vld [vmem:[%s8078_s21 + $0x40] sm:$0xff] }
 0xa75   :  { %v2701_v15 = vadd.f32 %v2700_v45, %v2699_v5  ;;  %v2708_v18 = vrot.slane %v2707_v28, 2  ;;  %v3092_v5 = vld [vmem:[%s8073_s17 + $0x48] sm:$0xff] }
 0xa76   :  { %v6644_v45 = vpack.c.bf16 %v3092_v5, %v3091_v4  ;;  %v3072_v4 = vld [vmem:[%s8136_s25] sm:$0xff]  ;;  %v3073_v5 = vld [vmem:[%s8136_s25 + $0x8] sm:$0xff] }
 0xa77   :  { %v2702_v20 = vrot.slane %v2701_v15, 1  ;;  %v2709_v26 = vadd.f32 %v2708_v18, %v2707_v28  ;;  %v3180_v28 = vld [vmem:[%s8078_s21 + $0x48] sm:$0xff]  ;;  %v3093_v18 = vld [vmem:[%s8073_s17 + $0x50] sm:$0xff] }
 0xa79   :  { %v2703_v29 = vadd.f32 %v2702_v20, %v2701_v15  ;;  %v2710_v31 = vrot.slane %v2709_v26, 1  ;;  %v6665_v15 = vpack.c.bf16 %v3180_v28, %v3179_v8  ;;  %v3094_v20 = vld [vmem:[%s8073_s17 + $0x58] sm:$0xff] }
 0xa7b   :  { %v2711_v32 = vadd.f32 %v2710_v31, %v2709_v26  ;;  %5306 = vmatmul.mubr.msk.f32.vlgmr.msra.gmra.mrb[22].mxu1 %vm2420_vm4, %v2703_v29  ;;  %v3181_v26 = vld [vmem:[%s8078_s21 + $0x50] sm:$0xff]  ;;  %v6647_v29 = vpack.c.bf16 %v3094_v20, %v3093_v18  ;;  %v3182_v31 = vld [vmem:[%s8078_s21 + $0x58] sm:$0xff]  ;;  %v3076_v20 = vld [vmem:[%s8136_s25 + $0x20] sm:$0xff] }
 0xa7c   :  { %6591 = vmatpush3.bf16.msra.mxu1 %v7860_v11  ;;  %5371 = vmatprep.mubr.msk.f32.mxu1 %vm6944_vm3, %v6927_v0  ;;  %v6668_v36 = vpack.c.bf16 %v3182_v31, %v3181_v26  ;;  %v3077_v26 = vld [vmem:[%s8136_s25 + $0x28] sm:$0xff]  ;;  %v3078_v31 = vld [vmem:[%s8136_s25 + $0x30] sm:$0xff] }
 0xa7d   :  { %5339 = vmatmul.mubr.msk.f32.vlgmr.msra.gmra.mrb[24].mxu0 %vm2420_vm4, %v2711_v32  ;;  %6592 = vmatprep.subr.bf16.mxu1 %v6942_v38  ;;  %v3096_v32 = vld [vmem:[%s8073_s17 + $0x68] sm:$0xff] }
 0xa7e   :  { %6612 = vmatpush3.bf16.msra.mxu0 %v7860_v11  ;;  %5404 = vmatprep.mubr.msk.f32.mxu0 %vm6944_vm3, %v6927_v0  ;;  %v2893_v11 = vrot.slane %v2892_v41, 4  ;;  %v6650_v14 = vpack.c.bf16 %v3096_v32, %v3095_v54  ;;  %v3079_v54 = vld [vmem:[%s8136_s25 + $0x38] sm:$0xff] }
 0xa7f   :  { %6613 = vmatprep.subr.bf16.mxu0 %v6942_v38  ;;  %v8171_v32 = vpack.c.bf16 %v3079_v54, %v3078_v31 }
 0xa80   :  { %6594 = vmatpush3.bf16.msra.mxu1 %v7868_v57  ;;  %v2894_v27 = vadd.f32 %v2893_v11, %v2892_v41  ;;  %v3184_v41 = vld [vmem:[%s8078_s21 + $0x68] sm:$0xff] }
 0xa81   :  { %6595 = vmatprep.subr.bf16.mxu1 %v6942_v38  ;;  %v6671_v11 = vpack.c.bf16 %v3184_v41, %v3183_v37  ;;  %v3081_v37 = vld [vmem:[%s8136_s25 + $0x48] sm:$0xff] }
 0xa82   :  { %6615 = vmatpush3.bf16.msra.mxu0 %v7868_v57  ;;  %v2887_v57 = vrot.slane %v2886_v21, 2  ;;  %v2895_v40 = vrot.slane %v2894_v27, 2 }
 0xa83   :  { %6616 = vmatprep.subr.bf16.mxu0 %v6942_v38 }
 0xa84   :  { %6597 = vmatpush3.bf16.msra.mxu1 %v7876_v22  ;;  %v2896_v47 = vadd.f32 %v2895_v40, %v2894_v27  ;;  %v3185_v27 = vld [vmem:[%s8078_s21 + $0x70] sm:$0xff] }
 0xa85   :  { %6598 = vmatprep.subr.bf16.mxu1 %v6942_v38 }
 0xa86   :  { %6618 = vmatpush3.bf16.msra.mxu0 %v7876_v22  ;;  %v2888_v22 = vadd.f32 %v2887_v57, %v2886_v21  ;;  %v2897_v44 = vrot.slane %v2896_v47, 1  ;;  %v3097_v21 = vld [vmem:[%s8073_s17 + $0x70] sm:$0xff] }
 0xa87   :  { %6619 = vmatprep.subr.bf16.mxu0 %v6942_v38 }
 0xa88   :  { %6600 = vmatpush3.bf16.msra.mxu1 %v7884_v42  ;;  %v2898_v61 = vadd.f32 %v2897_v44, %v2896_v47 }
 0xa89   :  { %6601 = vmatprep.subr.bf16.mxu1 %v6942_v38 }
 0xa8a   :  { %6621 = vmatpush3.bf16.msra.mxu0 %v7884_v42  ;;  %v2889_v42 = vrot.slane %v2888_v22, 1 }
 0xa8b   :  { %6622 = vmatprep.subr.bf16.mxu0 %v6942_v38 }
 0xa8c   :  { %6603 = vmatpush3.bf16.msra.mxu1 %v7894_v56 }
 0xa8d   :  { %6604 = vmatprep.subr.bf16.mxu1 %v6942_v38 }
 0xa8e   :  { %6624 = vmatpush3.bf16.msra.mxu0 %v7894_v56  ;;  %v2890_v56 = vadd.f32 %v2889_v42, %v2888_v22 }
 0xa8f   :  { %6625 = vmatprep.subr.bf16.mxu0 %v6942_v38 }
 0xa90   :  { %6606 = vmatpush3.bf16.msra.mxu1 %v7902_v50 }
 0xa91   :  { %6607 = vmatprep.subr.bf16.mxu1 %v6942_v38 }
 0xa92   :  { %6627 = vmatpush3.bf16.msra.mxu0 %v7902_v50  ;;  %v3083_v50 = vld [vmem:[%s8073_s17] sm:$0xff] }
 0xa93   :  { %6628 = vmatprep.subr.bf16.mxu0 %v6942_v38 }
 0xa94   :  { %6609 = vmatpush3.bf16.msra.mxu1 %v7910_v2 }
 0xa95   :  { %5369 = vmatprep.subr.mxu1 %v6927_v0 }
 0xa96   :  { %6630 = vmatpush3.bf16.msra.mxu0 %v7910_v2  ;;  %v3084_v2 = vld [vmem:[%s8073_s17 + $0x8] sm:$0xff] }
 0xa97   :  { %5402 = vmatprep.subr.mxu0 %v6927_v0  ;;  %v6632_v52 = vpack.c.bf16 %v3084_v2, %v3083_v50 }
 0xa98   :  { %5370 = vmatpush3.msra.mxu1 %v7917_v58 }
 0xa99   :  { %5372 = vmatmul.mubr.msk.f32.vlgmr.msra.gmra.mrb[24].mxu1 %vm2420_vm4, %v2890_v56  ;;  %6631 = vmatprep.subr.bf16.mxu1 %v6942_v38 }
 0xa9a   :  { %5403 = vmatpush3.msra.mxu0 %v7917_v58  ;;  %5437 = vmatprep.mubr.msk.f32.mxu1 %vm6944_vm3, %v6927_v0  ;;  %v3171_v58 = vld [vmem:[%s8078_s21] sm:$0xff] }
 0xa9b   :  { %5405 = vmatmul.mubr.msk.f32.vlgmr.msra.gmra.mrb[26].mxu0 %vm2420_vm4, %v2898_v61  ;;  %6652 = vmatprep.subr.bf16.mxu0 %v6942_v38  ;;  %v6653_v62 = vpack.c.bf16 %v3172_v51, %v3171_v58 }
 0xa9c   :  { %5470 = vmatprep.mubr.msk.f32.mxu0 %vm6944_vm3, %v6927_v0  ;;  %6633 = vmatpush3.bf16.msra.mxu1 %v6632_v52 }
 0xa9d   :  { %6654 = vmatpush3.bf16.msra.mxu0 %v6653_v62  ;;  %6634 = vmatprep.subr.bf16.mxu1 %v6942_v38 }
 0xa9e   :  { %6655 = vmatprep.subr.bf16.mxu0 %v6942_v38 }
 0xaa0   :  { %6636 = vmatpush3.bf16.msra.mxu1 %v6635_v1 }
 0xaa1   :  { %6657 = vmatpush3.bf16.msra.mxu0 %v6656_v17  ;;  %6637 = vmatprep.subr.bf16.mxu1 %v6942_v38 }
 0xaa2   :  { %6658 = vmatprep.subr.bf16.mxu0 %v6942_v38 }
 0xaa4   :  { %6639 = vmatpush3.bf16.msra.mxu1 %v6638_v34 }
 0xaa5   :  { %6660 = vmatpush3.bf16.msra.mxu0 %v6659_v33  ;;  %6640 = vmatprep.subr.bf16.mxu1 %v6942_v38 }
 0xaa6   :  { %6661 = vmatprep.subr.bf16.mxu0 %v6942_v38 }
 0xaa8   :  { %6642 = vmatpush3.bf16.msra.mxu1 %v6641_v63 }
 0xaa9   :  { %6663 = vmatpush3.bf16.msra.mxu0 %v6662_v19  ;;  %6643 = vmatprep.subr.bf16.mxu1 %v6942_v38 }
 0xaaa   :  { %6664 = vmatprep.subr.bf16.mxu0 %v6942_v38 }
 0xaac   :  { %6645 = vmatpush3.bf16.msra.mxu1 %v6644_v45  ;;  %v8147_v45 = vpack.c.bf16 %v3073_v5, %v3072_v4 }
 0xaad   :  { %6666 = vmatpush3.bf16.msra.mxu0 %v6665_v15  ;;  %6646 = vmatprep.subr.bf16.mxu1 %v6942_v38  ;;  %v3075_v15 = vld [vmem:[%s8136_s25 + $0x18] sm:$0xff] }
 0xaae   :  { %6667 = vmatprep.subr.bf16.mxu0 %v6942_v38 }
 0xab0   :  { %6648 = vmatpush3.bf16.msra.mxu1 %v6647_v29  ;;  %v8165_v29 = vpack.c.bf16 %v3077_v26, %v3076_v20  ;;  %v8228_v26 = vld [vmem:[%s4829_s3] sm:$0x3f] }
 0xab1   :  { %6669 = vmatpush3.bf16.msra.mxu0 %v6668_v36  ;;  %6649 = vmatprep.subr.bf16.mxu1 %v6942_v38  ;;  %v3080_v36 = vld [vmem:[%s8136_s25 + $0x40] sm:$0xff] }
 0xab2   :  { %6670 = vmatprep.subr.bf16.mxu0 %v6942_v38  ;;  %v8177_v41 = vpack.c.bf16 %v3081_v37, %v3080_v36  ;;  %v3437_v36 = vrot.slane %v8228_v26, %v7208_v49 }
 0xab4   :  { %6651 = vmatpush3.bf16.msra.mxu1 %v6650_v14 }
 0xab5   :  { %6672 = vmatpush3.bf16.msra.mxu0 %v6671_v11  ;;  %5435 = vmatprep.subr.mxu1 %v6927_v0 }
 0xab6   :  { %5468 = vmatprep.subr.mxu0 %v6927_v0 }
 0xab8   :  { %5436 = vmatpush3.msra.mxu1 %v3097_v21 }
 0xab9   :  { %5469 = vmatpush3.msra.mxu0 %v3185_v27  ;;  %6673 = vmatprep.subr.bf16.mxu1 %v6942_v38 }
 0xaba   :  { %6703 = vmatprep.subr.bf16.mxu0 %v6942_v38 }
 0xb4e   :  { %v2781_v57 = vpop.f32.mrb[22].mxu1 }
 0xb4f   :  { %v2858_v40 = vmul.f32 %v2781_v57, %v2781_v57  ;;  %v2864_v22 = vrot.slane %v2781_v57, %v7208_v49  ;;  %v5307_v47 = vpop.f32.mrb[23].mxu1 }
 0xb50   :  { %v2854_v42 = vpop.f32.mrb[24].mxu0 }
 0xb51   :  { %v2865_v44 = vsub.f32 %v8016_v35, %v2864_v22  ;;  %v2859_v56 = vsub.f32 %v2854_v42, %v2858_v40  ;;  %v5340_v61 = vpop.f32.mrb[25].mxu0 }
 0xb53   :  { %v2860_v50 = vmax.f32 %v2859_v56, 0.0 }
 0xb55   :  { %v2866_v2 = vadd.f32 1e-05, %v2860_v50 }
 0xb57   :  { %6910 = vrsqrt.f32 %v2866_v2 }
 0xb61   :  { %v6911_v58 = vpop.eup %6910 }
 0xb62   :  { %v2871_v52 = vrot.slane %v6911_v58, %v7208_v49 }
 0xb64   :  { %v2872_v51 = vmul.f32 %v2871_v52, %v2865_v44 }
 0xb66   :  { %v2877_v43 = vmul.f32 %v2876_v12, %v2872_v51  ;;  %v3450_v12 = vld [vmem:[%s4826_s29 + $0x28] sm:$0xff] }
 0xb68   :  { %v2882_v16 = vadd.f32 %v2881_v60, %v2877_v43  ;;  %v3453_v43 = vld [vmem:[%s4826_s29 + $0x40] sm:$0xff]  ;;  %v3454_v60 = vld [vmem:[%s4826_s29 + $0x48] sm:$0xff] }
 0xb6c   :  { %v2968_v62 = vpop.f32.mrb[24].mxu1 }
 0xb6d   :  { %v3045_v53 = vmul.f32 %v2968_v62, %v2968_v62  ;;  %v3051_v3 = vrot.slane %v2968_v62, %v7208_v49  ;;  %v5373_v46 = vpop.f32.mrb[25].mxu1 }
 0xb6e   :  { %v3041_v1 = vpop.f32.mrb[26].mxu0  ;;  %v3445_v46 = vld [vmem:[%s4826_s29] sm:$0xff] }
 0xb6f   :  { %v3052_v7 = vsub.f32 %v7929_v48, %v3051_v3  ;;  %v3046_v17 = vsub.f32 %v3041_v1, %v3045_v53  ;;  %v5406_v23 = vpop.f32.mrb[27].mxu0  ;;  %v3063_v48 = vrot.slane %v7990_v10, %v7428_v9  ;;  %v3074_v10 = vld [vmem:[%s8136_s25 + $0x10] sm:$0xff]  ;;  %v3446_v1 = vld [vmem:[%s4826_s29 + $0x8] sm:$0xff] }
 0xb70   :  { %v8159_v18 = vpack.c.bf16 %v3075_v15, %v3074_v10  ;;  %v3448_v23 = vld [vmem:[%s4826_s29 + $0x18] sm:$0xff] }
 0xb71   :  { %v3047_v35 = vmax.f32 %v3046_v17, 0.0  ;;  %v3447_v17 = vld [vmem:[%s4826_s29 + $0x10] sm:$0xff] }
 0xb73   :  { %v3053_v30 = vadd.f32 1e-05, %v3047_v35  ;;  %v6707_v35 = vpack.c.bf16 %v3448_v23, %v3447_v17 }
 0xb75   :  { %6912 = vrsqrt.f32 %v3053_v30  ;;  %v3449_v30 = vld [vmem:[%s4826_s29 + $0x20] sm:$0xff] }
 0xb7f   :  { %v6913_v34 = vpop.eup %6912 }
 0xb80   :  { %v3058_v55 = vrot.slane %v6913_v34, %v7208_v49  ;;  %v6710_v34 = vpack.c.bf16 %v3450_v12, %v3449_v30 }
 0xb82   :  { %v3059_v33 = vmul.f32 %v3058_v55, %v3052_v7  ;;  %v6704_v7 = vpack.c.bf16 %v3446_v1, %v3445_v46  ;;  %v3451_v55 = vld [vmem:[%s4826_s29 + $0x30] sm:$0xff] }
 0xb84   :  { %v3064_v63 = vmul.f32 %v3063_v48, %v3059_v33  ;;  %v3452_v48 = vld [vmem:[%s4826_s29 + $0x38] sm:$0xff] }
 0xb85   :  { %v6713_v33 = vpack.c.bf16 %v3452_v48, %v3451_v55 }
 0xb86   :  { %v3069_v19 = vadd.f32 %v3068_v59, %v3064_v63  ;;  %v6716_v59 = vpack.c.bf16 %v3454_v60, %v3453_v43 }
 0xb88   :  { %v3070_v8 = vadd.f32 %v3069_v19, %v2882_v16 }
 0xb8a   :  { %v3071_v28 = vmax.f32 %v3070_v8, 0.0 }
 0xb8c   :  { %5438 = vmatmul.mubr.msk.f32.vlgmr.msra.gmra.mrb[26].mxu1 %vm2420_vm4, %v3071_v28  ;;  %5471 = vmatmul.mubr.msk.f32.vlgmr.msra.gmra.mrb[28].mxu0 %vm2420_vm4, %v3071_v28 }
 0xb8d   :  { %6675 = vmatpush3.bf16.msra.mxu1 %v8147_v45  ;;  %5493 = vmatprep.mubr.msk.f32.mxu1 %vm6944_vm3, %v6927_v0 }
 0xb8e   :  { %6676 = vmatprep.subr.bf16.mxu1 %v6942_v38  ;;  %5539 = vmatprep.mubr.msk.f32.mxu0 %vm6944_vm3, %v6927_v0 }
 0xb8f   :  { %6705 = vmatpush3.bf16.msra.mxu0 %v6704_v7 }
 0xb90   :  { %6706 = vmatprep.subr.bf16.mxu0 %v6942_v38 }
 0xb91   :  { %6678 = vmatpush3.bf16.msra.mxu1 %v8159_v18 }
 0xb92   :  { %6679 = vmatprep.subr.bf16.mxu1 %v6942_v38 }
 0xb93   :  { %6708 = vmatpush3.bf16.msra.mxu0 %v6707_v35 }
 0xb94   :  { %6709 = vmatprep.subr.bf16.mxu0 %v6942_v38 }
 0xb95   :  { %6681 = vmatpush3.bf16.msra.mxu1 %v8165_v29 }
 0xb96   :  { %6682 = vmatprep.subr.bf16.mxu1 %v6942_v38 }
 0xb97   :  { %6711 = vmatpush3.bf16.msra.mxu0 %v6710_v34 }
 0xb98   :  { %6712 = vmatprep.subr.bf16.mxu0 %v6942_v38 }
 0xb99   :  { %6684 = vmatpush3.bf16.msra.mxu1 %v8171_v32 }
 0xb9a   :  { %6685 = vmatprep.subr.bf16.mxu1 %v6942_v38 }
 0xb9b   :  { %6714 = vmatpush3.bf16.msra.mxu0 %v6713_v33 }
 0xb9c   :  { %6715 = vmatprep.subr.bf16.mxu0 %v6942_v38 }
 0xb9d   :  { %6687 = vmatpush3.bf16.msra.mxu1 %v8177_v41 }
 0xb9e   :  { %6688 = vmatprep.subr.bf16.mxu1 %v6942_v38 }
 0xb9f   :  { %6717 = vmatpush3.bf16.msra.mxu0 %v6716_v59 }
 0xba0   :  { %6733 = vmatprep.subr.bf16.mxu0 %v6942_v38 }
 0xc5f   :  { %v8181_v14 = vpop.f32.mrb[26].mxu1  ;;  %v8183_v11 = vpop.f32.mrb[28].mxu0 }
 0xc60   :  { %v3256_v21 = vmul.f32 %v8181_v14, %v7128_v24  ;;  %v5439_v27 = vpop.f32.mrb[27].mxu1  ;;  %v5472_v57 = vpop.f32.mrb[29].mxu0 }
 0xc62   :  { %v3258_v40 = vsel %vm3257_vm5, %v3256_v21, 0.0  ;;  %v3265_v42 = vmul.f32 %v3256_v21, %v3256_v21 }
 0xc63   :  { %v3259_v22 = vrot.slane %v3258_v40, 4 }
 0xc64   :  { %v3266_v61 = vsel %vm3257_vm5, %v3265_v42, 0.0 }
 0xc65   :  { %v3260_v47 = vadd.f32 %v3259_v22, %v3258_v40  ;;  %v3267_v58 = vrot.slane %v3266_v61, 4 }
 0xc67   :  { %v3261_v44 = vrot.slane %v3260_v47, 2  ;;  %v3268_v52 = vadd.f32 %v3267_v58, %v3266_v61  ;;  %v3715_v61 = vmul.f32 %v8183_v11, %v7128_v24 }
 0xc69   :  { %v3262_v56 = vadd.f32 %v3261_v44, %v3260_v47  ;;  %v3269_v51 = vrot.slane %v3268_v52, 2  ;;  %v3716_v46 = vsel %vm3257_vm5, %v3715_v61, 0.0 }
 0xc6a   :  { %v3717_v23 = vrot.slane %v3716_v46, 4 }
 0xc6b   :  { %v3263_v50 = vrot.slane %v3262_v56, 1  ;;  %v3270_v62 = vadd.f32 %v3269_v51, %v3268_v52 }
 0xc6c   :  { %v3718_v55 = vadd.f32 %v3717_v23, %v3716_v46 }
 0xc6d   :  { %v3264_v2 = vadd.f32 %v3263_v50, %v3262_v56  ;;  %v3271_v53 = vrot.slane %v3270_v62, 1 }
 0xc6e   :  { %v3719_v33 = vrot.slane %v3718_v55, 2 }
 0xc6f   :  { %5494 = vmatmul.mubr.msk.f32.vlgmr.msra.gmra.mrb[28].mxu1 %vm3257_vm5, %v3264_v2  ;;  %v3272_v3 = vadd.f32 %v3271_v53, %v3270_v62  ;;  %v3723_v62 = vmul.f32 %v3715_v61, %v3715_v61  ;;  %v3919_v61 = vld [vmem:[%s8293_s7 + $0x48] sm:$0xff] }
 0xc70   :  { %6690 = vmatpush3.bf16.msra.mxu1 %v8147_v45  ;;  %5516 = vmatprep.mubr.msk.f32.mxu1 %vm6944_vm3, %v6927_v0  ;;  %v3720_v60 = vadd.f32 %v3719_v33, %v3718_v55 }
 0xc71   :  { %6691 = vmatprep.subr.bf16.mxu1 %v6942_v38  ;;  %v3724_v17 = vsel %vm3257_vm5, %v3723_v62, 0.0 }
 0xc72   :  { %v3725_v12 = vrot.slane %v3724_v17, 4  ;;  %v3721_v59 = vrot.slane %v3720_v60, 1 }
 0xc74   :  { %6693 = vmatpush3.bf16.msra.mxu1 %v8159_v18  ;;  %v3726_v48 = vadd.f32 %v3725_v12, %v3724_v17 }
 0xc75   :  { %6694 = vmatprep.subr.bf16.mxu1 %v6942_v38 }
 0xc76   :  { %v3727_v43 = vrot.slane %v3726_v48, 2 }
 0xc78   :  { %6696 = vmatpush3.bf16.msra.mxu1 %v8165_v29 }
 0xc79   :  { %6697 = vmatprep.subr.bf16.mxu1 %v6942_v38 }
 0xc7c   :  { %6699 = vmatpush3.bf16.msra.mxu1 %v8171_v32 }
 0xc7d   :  { %6700 = vmatprep.subr.bf16.mxu1 %v6942_v38 }
 0xc80   :  { %6702 = vmatpush3.bf16.msra.mxu1 %v8177_v41 }
 0xc81   :  { %6718 = vmatprep.subr.bf16.mxu1 %v6942_v38 }
 0xc83   :  { %5517 = vmatmul.mubr.msk.f32.vlgmr.msra.gmra.mrb[30].mxu1 %vm3257_vm5, %v3272_v3 }
 0xc84   :  { %6720 = vmatpush3.bf16.msra.mxu1 %v8147_v45  ;;  %5562 = vmatprep.mubr.msk.f32.mxu1 %vm6944_vm3, %v6927_v0 }
 0xc85   :  { %6721 = vmatprep.subr.bf16.mxu1 %v6942_v38 }
 0xc88   :  { %6723 = vmatpush3.bf16.msra.mxu1 %v8159_v18 }
 0xc89   :  { %6724 = vmatprep.subr.bf16.mxu1 %v6942_v38 }
 0xc8c   :  { %6726 = vmatpush3.bf16.msra.mxu1 %v8165_v29 }
 0xc8d   :  { %6727 = vmatprep.subr.bf16.mxu1 %v6942_v38 }
 0xc90   :  { %6729 = vmatpush3.bf16.msra.mxu1 %v8171_v32 }
 0xc91   :  { %6730 = vmatprep.subr.bf16.mxu1 %v6942_v38 }
 0xc94   :  { %6732 = vmatpush3.bf16.msra.mxu1 %v8177_v41 }
 0xc95   :  { %6748 = vmatprep.subr.bf16.mxu1 %v6942_v38 }
 0xd42   :  { %v3342_v63 = vpop.f32.mrb[28].mxu1 }
 0xd43   :  { %v3425_v16 = vrot.slane %v3342_v63, %v7208_v49  ;;  %v5495_v19 = vpop.f32.mrb[29].mxu1  ;;  %v3419_v5 = vmul.f32 %v3342_v63, %v3342_v63  ;;  %v3722_v63 = vadd.f32 %v3721_v59, %v3720_v60 }
 0xd45   :  { %v3426_v4 = vsub.f32 %v8181_v14, %v3425_v16  ;;  %v3442_v14 = vrot.slane %v8228_v26, %v7222_v25  ;;  %v3993_v16 = vld [vmem:[%s8298_s11] sm:$0xff] }
 0xd56   :  { %v3415_v8 = vpop.f32.mrb[30].mxu1 }
 0xd57   :  { %v3420_v28 = vsub.f32 %v3415_v8, %v3419_v5  ;;  %v5518_v10 = vpop.f32.mrb[31].mxu1  ;;  %v3912_v8 = vld [vmem:[%s8293_s7 + $0x10] sm:$0xff] }
 0xd58   :  { %v3995_v10 = vld [vmem:[%s8298_s11 + $0x10] sm:$0xff] }
 0xd59   :  { %v3421_v15 = vmax.f32 %v3420_v28, 0.0  ;;  %v3913_v28 = vld [vmem:[%s8293_s7 + $0x18] sm:$0xff] }
 0xd5b   :  { %v3427_v20 = vadd.f32 1e-05, %v3421_v15  ;;  %v6782_v15 = vpack.c.bf16 %v3913_v28, %v3912_v8  ;;  %v3713_v8 = vrot.slane %v8228_v26, %v7431_v13 }
 0xd5d   :  { %6914 = vrsqrt.f32 %v3427_v20  ;;  %v3996_v20 = vld [vmem:[%s8298_s11 + $0x18] sm:$0xff] }
 0xd67   :  { %v6915_v31 = vpop.eup %6914 }
 0xd68   :  { %v3432_v54 = vrot.slane %v6915_v31, %v7208_v49  ;;  %v6797_v31 = vpack.c.bf16 %v3996_v20, %v3995_v10 }
 0xd6a   :  { %v3433_v37 = vmul.f32 %v3432_v54, %v3426_v4  ;;  %v3994_v4 = vld [vmem:[%s8298_s11 + $0x8] sm:$0xff]  ;;  %v3914_v54 = vld [vmem:[%s8293_s7 + $0x20] sm:$0xff] }
 0xd6b   :  { %v6794_v5 = vpack.c.bf16 %v3994_v4, %v3993_v16 }
 0xd6c   :  { %v3438_v21 = vmul.f32 %v3437_v36, %v3433_v37  ;;  %v3915_v36 = vld [vmem:[%s8293_s7 + $0x28] sm:$0xff]  ;;  %v3997_v37 = vld [vmem:[%s8298_s11 + $0x20] sm:$0xff] }
 0xd6e   :  { %v3443_v27 = vadd.f32 %v3442_v14, %v3438_v21  ;;  %v6785_v14 = vpack.c.bf16 %v3915_v36, %v3914_v54  ;;  %v3998_v21 = vld [vmem:[%s8298_s11 + $0x28] sm:$0xff] }
 0xd6f   :  { %v3905_v54 = vld [vmem:[%s4833_s15 + $0x8] sm:$0xff] }
 0xd70   :  { %v3444_v57 = vmax.f32 %v3443_v27, 0.0  ;;  %v6800_v27 = vpack.c.bf16 %v3998_v21, %v3997_v37  ;;  %v3906_v37 = vld [vmem:[%s4833_s15 + $0x10] sm:$0xff] }
 0xd72   :  { %5540 = vmatmul.mubr.msk.f32.vlgmr.msra.gmra.mrb[30].mxu0 %vm3257_vm5, %v3444_v57  ;;  %v3916_v57 = vld [vmem:[%s8293_s7 + $0x30] sm:$0xff] }
 0xd73   :  { %6735 = vmatpush3.bf16.msra.mxu0 %v8147_v45  ;;  %5585 = vmatprep.mubr.msk.f32.mxu0 %vm6944_vm3, %v6927_v0 }
 0xd74   :  { %6736 = vmatprep.subr.bf16.mxu0 %v6942_v38 }
 0xd77   :  { %6738 = vmatpush3.bf16.msra.mxu0 %v8159_v18 }
 0xd78   :  { %6739 = vmatprep.subr.bf16.mxu0 %v6942_v38 }
 0xd7b   :  { %6741 = vmatpush3.bf16.msra.mxu0 %v8165_v29 }
 0xd7c   :  { %6742 = vmatprep.subr.bf16.mxu0 %v6942_v38 }
 0xd7f   :  { %6744 = vmatpush3.bf16.msra.mxu0 %v8171_v32 }
 0xd80   :  { %6745 = vmatprep.subr.bf16.mxu0 %v6942_v38 }
 0xd83   :  { %6747 = vmatpush3.bf16.msra.mxu0 %v8177_v41 }
 0xd84   :  { %6763 = vmatprep.subr.bf16.mxu0 %v6942_v38 }
 0xe45   :  { %v8248_v40 = vpop.f32.mrb[30].mxu0 }
 0xe46   :  { %v3528_v22 = vmul.f32 %v8248_v40, %v7128_v24  ;;  %v5541_v47 = vpop.f32.mrb[31].mxu0 }
 0xe47   :  { %v3999_v47 = vld [vmem:[%s8298_s11 + $0x30] sm:$0xff] }
 0xe48   :  { %v3529_v42 = vsel %vm3257_vm5, %v3528_v22, 0.0  ;;  %v3536_v44 = vmul.f32 %v3528_v22, %v3528_v22  ;;  %v3917_v22 = vld [vmem:[%s8293_s7 + $0x38] sm:$0xff] }
 0xe49   :  { %v3530_v56 = vrot.slane %v3529_v42, 4 }
 0xe4a   :  { %v3537_v50 = vsel %vm3257_vm5, %v3536_v44, 0.0  ;;  %v4000_v44 = vld [vmem:[%s8298_s11 + $0x38] sm:$0xff] }
 0xe4b   :  { %v3531_v2 = vadd.f32 %v3530_v56, %v3529_v42  ;;  %v3538_v58 = vrot.slane %v3537_v50, 4  ;;  %v6788_v42 = vpack.c.bf16 %v3917_v22, %v3916_v57  ;;  %v3918_v56 = vld [vmem:[%s8293_s7 + $0x40] sm:$0xff] }
 0xe4d   :  { %v3532_v52 = vrot.slane %v3531_v2, 2  ;;  %v3539_v51 = vadd.f32 %v3538_v58, %v3537_v50  ;;  %v6803_v50 = vpack.c.bf16 %v4000_v44, %v3999_v47  ;;  %v4002_v58 = vld [vmem:[%s8298_s11 + $0x48] sm:$0xff] }
 0xe4f   :  { %v3533_v53 = vadd.f32 %v3532_v52, %v3531_v2  ;;  %v3540_v3 = vrot.slane %v3539_v51, 2  ;;  %v4001_v2 = vld [vmem:[%s8298_s11 + $0x40] sm:$0xff]  ;;  %v6791_v52 = vpack.c.bf16 %v3919_v61, %v3918_v56 }
 0xe51   :  { %v3534_v1 = vrot.slane %v3533_v53, 1  ;;  %v3541_v7 = vadd.f32 %v3540_v3, %v3539_v51  ;;  %v6806_v51 = vpack.c.bf16 %v4002_v58, %v4001_v2 }
 0xe53   :  { %v3535_v35 = vadd.f32 %v3534_v1, %v3533_v53  ;;  %v3542_v30 = vrot.slane %v3541_v7, 1 }
 0xe55   :  { %v3543_v34 = vadd.f32 %v3542_v30, %v3541_v7  ;;  %5563 = vmatmul.mubr.msk.f32.vlgmr.msra.gmra.mrb[32].mxu1 %vm3257_vm5, %v3535_v35 }
 0xe56   :  { %6750 = vmatpush3.bf16.msra.mxu1 %v8147_v45  ;;  %5608 = vmatprep.mubr.msk.f32.mxu1 %vm6944_vm3, %v6927_v0 }
 0xe57   :  { %5586 = vmatmul.mubr.msk.f32.vlgmr.msra.gmra.mrb[32].mxu0 %vm3257_vm5, %v3543_v34  ;;  %6751 = vmatprep.subr.bf16.mxu1 %v6942_v38 }
 0xe58   :  { %6765 = vmatpush3.bf16.msra.mxu0 %v8147_v45  ;;  %5631 = vmatprep.mubr.msk.f32.mxu0 %vm6944_vm3, %v6927_v0  ;;  %v3728_v45 = vadd.f32 %v3727_v43, %v3726_v48 }
 0xe59   :  { %6766 = vmatprep.subr.bf16.mxu0 %v6942_v38 }
 0xe5a   :  { %6753 = vmatpush3.bf16.msra.mxu1 %v8159_v18 }
 0xe5b   :  { %6754 = vmatprep.subr.bf16.mxu1 %v6942_v38 }
 0xe5c   :  { %6768 = vmatpush3.bf16.msra.mxu0 %v8159_v18  ;;  %v3729_v18 = vrot.slane %v3728_v45, 1 }
 0xe5d   :  { %6769 = vmatprep.subr.bf16.mxu0 %v6942_v38 }
 0xe5e   :  { %6756 = vmatpush3.bf16.msra.mxu1 %v8165_v29 }
 0xe5f   :  { %6757 = vmatprep.subr.bf16.mxu1 %v6942_v38 }
 0xe60   :  { %6771 = vmatpush3.bf16.msra.mxu0 %v8165_v29  ;;  %v3730_v29 = vadd.f32 %v3729_v18, %v3728_v45 }
 0xe61   :  { %6772 = vmatprep.subr.bf16.mxu0 %v6942_v38 }
 0xe62   :  { %6759 = vmatpush3.bf16.msra.mxu1 %v8171_v32 }
 0xe63   :  { %6760 = vmatprep.subr.bf16.mxu1 %v6942_v38 }
 0xe64   :  { %6774 = vmatpush3.bf16.msra.mxu0 %v8171_v32  ;;  %v3910_v32 = vld [vmem:[%s8293_s7] sm:$0xff] }
 0xe65   :  { %6775 = vmatprep.subr.bf16.mxu0 %v6942_v38 }
 0xe66   :  { %6762 = vmatpush3.bf16.msra.mxu1 %v8177_v41 }
 0xe67   :  { %6778 = vmatprep.subr.bf16.mxu1 %v6942_v38 }
 0xe68   :  { %6777 = vmatpush3.bf16.msra.mxu0 %v8177_v41  ;;  %v3911_v41 = vld [vmem:[%s8293_s7 + $0x8] sm:$0xff] }
 0xe69   :  { %5609 = vmatmul.mubr.msk.f32.vlgmr.msra.gmra.mrb[34].mxu1 %vm3257_vm5, %v3722_v63  ;;  %6793 = vmatprep.subr.bf16.mxu0 %v6942_v38  ;;  %v6779_v19 = vpack.c.bf16 %v3911_v41, %v3910_v32  ;;  %v3708_v32 = vrot.slane %v8228_v26, %v7425_v6 }
 0xe6a   :  { %5654 = vmatprep.mubr.msk.f32.mxu1 %vm6944_vm3, %v6927_v0 }
 0xe6b   :  { %5632 = vmatmul.mubr.msk.f32.vlgmr.msra.gmra.mrb[34].mxu0 %vm3257_vm5, %v3730_v29  ;;  %6780 = vmatpush3.bf16.msra.mxu1 %v6779_v19  ;;  %v3895_v19 = vrot.slane %v8228_v26, %v7428_v9 }
 0xe6c   :  { %5677 = vmatprep.mubr.msk.f32.mxu0 %vm6944_vm3, %v6927_v0  ;;  %6795 = vmatpush3.bf16.msra.mxu0 %v6794_v5 }
 0xe6d   :  { %6781 = vmatprep.subr.bf16.mxu1 %v6942_v38  ;;  %6796 = vmatprep.subr.bf16.mxu0 %v6942_v38 }
 0xe6f   :  { %6783 = vmatpush3.bf16.msra.mxu1 %v6782_v15 }
 0xe70   :  { %6798 = vmatpush3.bf16.msra.mxu0 %v6797_v31  ;;  %6784 = vmatprep.subr.bf16.mxu1 %v6942_v38 }
 0xe71   :  { %6799 = vmatprep.subr.bf16.mxu0 %v6942_v38 }
 0xe73   :  { %6786 = vmatpush3.bf16.msra.mxu1 %v6785_v14  ;;  %v3907_v14 = vld [vmem:[%s4833_s15 + $0x18] sm:$0xff] }
 0xe74   :  { %6801 = vmatpush3.bf16.msra.mxu0 %v6800_v27  ;;  %6787 = vmatprep.subr.bf16.mxu1 %v6942_v38  ;;  %v8359_v21 = vpack.c.bf16 %v3907_v14, %v3906_v37  ;;  %v8365_v27 = vld [vmem:[%s4833_s15 + $0x20] sm:$0xff] }
 0xe75   :  { %6802 = vmatprep.subr.bf16.mxu0 %v6942_v38 }
 0xe77   :  { %6789 = vmatpush3.bf16.msra.mxu1 %v6788_v42 }
 0xe78   :  { %6804 = vmatpush3.bf16.msra.mxu0 %v6803_v50  ;;  %6790 = vmatprep.subr.bf16.mxu1 %v6942_v38 }
 0xe79   :  { %6805 = vmatprep.subr.bf16.mxu0 %v6942_v38 }
 0xe7b   :  { %6792 = vmatpush3.bf16.msra.mxu1 %v6791_v52 }
 0xe7c   :  { %6807 = vmatpush3.bf16.msra.mxu0 %v6806_v51  ;;  %6808 = vmatprep.subr.bf16.mxu1 %v6942_v38 }
 0xe7d   :  { %6814 = vmatprep.subr.bf16.mxu0 %v6942_v38 }
 0xf28   :  { %v3613_v62 = vpop.f32.mrb[32].mxu1 }
 0xf29   :  { %v3690_v53 = vmul.f32 %v3613_v62, %v3613_v62  ;;  %v3696_v3 = vrot.slane %v3613_v62, %v7208_v49  ;;  %v5564_v46 = vpop.f32.mrb[33].mxu1 }
 0xf2a   :  { %v3686_v1 = vpop.f32.mrb[32].mxu0 }
 0xf2b   :  { %v3697_v7 = vsub.f32 %v8248_v40, %v3696_v3  ;;  %v3691_v17 = vsub.f32 %v3686_v1, %v3690_v53  ;;  %v5587_v23 = vpop.f32.mrb[33].mxu0 }
 0xf2d   :  { %v3692_v35 = vmax.f32 %v3691_v17, 0.0 }
 0xf2f   :  { %v3698_v30 = vadd.f32 1e-05, %v3692_v35  ;;  %v4262_v35 = vld [vmem:[%s4831_s19] sm:$0xff] }
 0xf31   :  { %6916 = vrsqrt.f32 %v3698_v30  ;;  %v4263_v30 = vld [vmem:[%s4831_s19 + $0x8] sm:$0xff] }
 0xf3b   :  { %v6917_v12 = vpop.eup %6916 }
 0xf3c   :  { %v3703_v34 = vrot.slane %v6917_v12, %v7208_v49  ;;  %v3800_v55 = vpop.f32.mrb[34].mxu1  ;;  %v6821_v12 = vpack.c.bf16 %v4263_v30, %v4262_v35 }
 0xf3d   :  { %v3877_v48 = vmul.f32 %v3800_v55, %v3800_v55  ;;  %v3883_v33 = vrot.slane %v3800_v55, %v7208_v49  ;;  %v5610_v43 = vpop.f32.mrb[35].mxu1  ;;  %v4265_v55 = vld [vmem:[%s4831_s19 + $0x18] sm:$0xff] }
 0xf3e   :  { %v3704_v60 = vmul.f32 %v3703_v34, %v3697_v7  ;;  %v3873_v45 = vpop.f32.mrb[34].mxu0  ;;  %v4264_v34 = vld [vmem:[%s4831_s19 + $0x10] sm:$0xff] }
 0xf3f   :  { %v3884_v59 = vsub.f32 %v8183_v11, %v3883_v33  ;;  %v3878_v18 = vsub.f32 %v3873_v45, %v3877_v48  ;;  %v5633_v63 = vpop.f32.mrb[35].mxu0  ;;  %v3900_v11 = vrot.slane %v8228_v26, %v7434_v39  ;;  %v3904_v26 = vld [vmem:[%s4833_s15] sm:$0xff]  ;;  %v6824_v48 = vpack.c.bf16 %v4265_v55, %v4264_v34 }
 0xf40   :  { %v3709_v5 = vmul.f32 %v3708_v32, %v3704_v60  ;;  %v8353_v36 = vpack.c.bf16 %v3905_v54, %v3904_v26  ;;  %v4266_v33 = vld [vmem:[%s4831_s19 + $0x20] sm:$0xff] }
 0xf41   :  { %v3879_v40 = vmax.f32 %v3878_v18, 0.0 }
 0xf42   :  { %v3714_v10 = vadd.f32 %v3713_v8, %v3709_v5 }
 0xf43   :  { %v3885_v29 = vadd.f32 1e-05, %v3879_v40 }
 0xf45   :  { %6918 = vrsqrt.f32 %v3885_v29 }
 0xf4f   :  { %v6919_v41 = vpop.eup %6918 }
 0xf50   :  { %v3890_v16 = vrot.slane %v6919_v41, %v7208_v49 }
 0xf52   :  { %v3891_v4 = vmul.f32 %v3890_v16, %v3884_v59  ;;  %v8398_v16 = vld [vmem:[%s4834_s23] sm:$0x3f] }
 0xf53   :  { %v4254_v5 = vrot.slane %v8398_v16, %v7208_v49 }
 0xf54   :  { %v3896_v28 = vmul.f32 %v3895_v19, %v3891_v4 }
 0xf56   :  { %v3901_v15 = vadd.f32 %v3900_v11, %v3896_v28  ;;  %v4259_v11 = vrot.slane %v8398_v16, %v7222_v25 }
 0xf58   :  { %v3902_v20 = vadd.f32 %v3901_v15, %v3714_v10 }
 0xf5a   :  { %v3903_v31 = vmax.f32 %v3902_v20, 0.0 }
 0xf5c   :  { %5655 = vmatmul.mubr.msk.f32.vlgmr.msra.gmra.mrb[36].mxu1 %vm3257_vm5, %v3903_v31  ;;  %5678 = vmatmul.mubr.msk.f32.vlgmr.msra.gmra.mrb[36].mxu0 %vm3257_vm5, %v3903_v31 }
 0xf5d   :  { %5690 = vmatprep.mubr.msk.f32.mxu1 %vm6944_vm3, %v6927_v0  ;;  %5703 = vmatprep.mubr.msk.f32.mxu0 %vm6944_vm3, %v6927_v0 }
 0xf5e   :  { %6810 = vmatpush3.bf16.msra.mxu1 %v8353_v36  ;;  %6816 = vmatpush3.bf16.msra.mxu0 %v8353_v36 }
 0xf5f   :  { %6811 = vmatprep.subr.bf16.mxu1 %v6942_v38  ;;  %6817 = vmatprep.subr.bf16.mxu0 %v6942_v38 }
 0xf62   :  { %6813 = vmatpush3.bf16.msra.mxu1 %v8359_v21  ;;  %6819 = vmatpush3.bf16.msra.mxu0 %v8359_v21 }
 0xf63   :  { %5688 = vmatprep.subr.mxu1 %v6927_v0  ;;  %5701 = vmatprep.subr.mxu0 %v6927_v0 }
 0xf66   :  { %5689 = vmatpush3.msra.mxu1 %v8365_v27  ;;  %5702 = vmatpush3.msra.mxu0 %v8365_v27 }
 0xf67   :  { %6820 = vmatprep.subr.bf16.mxu1 %v6942_v38  ;;  %6826 = vmatprep.subr.bf16.mxu0 %v6942_v38 }
0x102f   :  { %v3989_v57 = vpop.f32.mrb[36].mxu1  ;;  %v8371_v22 = vpop.f32.mrb[36].mxu0 }
0x1030   :  { %v4073_v47 = vmul.f32 %v3989_v57, %v7128_v24  ;;  %v5656_v42 = vpop.f32.mrb[37].mxu1  ;;  %v5679_v44 = vpop.f32.mrb[37].mxu0  ;;  %v4527_v25 = vmul.f32 %v8371_v22, %v7128_v24 }
0x1032   :  { %v4075_v56 = vsel %vm4074_vm6, %v4073_v47, 0.0  ;;  %v4082_v61 = vmul.f32 %v4073_v47, %v4073_v47  ;;  %v4535_v20 = vmul.f32 %v4527_v25, %v4527_v25  ;;  %v4528_v26 = vsel %vm4074_vm6, %v4527_v25, 0.0 }
0x1033   :  { %v4076_v50 = vrot.slane %v4075_v56, 4  ;;  %v4529_v42 = vrot.slane %v4528_v26, 4  ;;  %v4520_v25 = vrot.slane %v8398_v16, %v7425_v6 }
0x1034   :  { %v4083_v2 = vsel %vm4074_vm6, %v4082_v61, 0.0  ;;  %v4536_v14 = vsel %vm4074_vm6, %v4535_v20, 0.0 }
0x1035   :  { %v4077_v58 = vadd.f32 %v4076_v50, %v4075_v56  ;;  %v4084_v52 = vrot.slane %v4083_v2, 4  ;;  %v4537_v61 = vrot.slane %v4536_v14, 4 }
0x1037   :  { %v4078_v51 = vrot.slane %v4077_v58, 2  ;;  %v4085_v62 = vadd.f32 %v4084_v52, %v4083_v2 }
0x1039   :  { %v4079_v53 = vadd.f32 %v4078_v51, %v4077_v58  ;;  %v4086_v3 = vrot.slane %v4085_v62, 2  ;;  %v4530_v58 = vadd.f32 %v4529_v42, %v4528_v26  ;;  %v4707_v26 = vrot.slane %v8398_v16, %v7428_v9  ;;  %v4716_v9 = vld [vmem:[%s4835_s27] sm:$0x1] }
0x103b   :  { %v4080_v46 = vrot.slane %v4079_v53, 1  ;;  %v4087_v1 = vadd.f32 %v4086_v3, %v4085_v62  ;;  %v4538_v62 = vadd.f32 %v4537_v61, %v4536_v14  ;;  %v4712_v14 = vrot.slane %v8398_v16, %v7434_v39 }
0x103d   :  { %v4081_v7 = vadd.f32 %v4080_v46, %v4079_v53  ;;  %v4088_v17 = vrot.slane %v4087_v1, 1 }
0x103f   :  { %v4089_v23 = vadd.f32 %v4088_v17, %v4087_v1  ;;  %5691 = vmatmul.mubr.msk.f32.vlgmr.msra.gmra.mrb[38].mxu1 %vm4074_vm6, %v4081_v7  ;;  %v4539_v7 = vrot.slane %v4538_v62, 2 }
0x1040   :  { %5716 = vmatprep.mubr.msk.f32.mxu1 %vm6944_vm3, %v6927_v0  ;;  %6822 = vmatpush3.bf16.msra.mxu1 %v6821_v12 }
0x1041   :  { %5704 = vmatmul.mubr.msk.f32.vlgmr.msra.gmra.mrb[38].mxu0 %vm4074_vm6, %v4089_v23  ;;  %6823 = vmatprep.subr.bf16.mxu1 %v6942_v38  ;;  %v4540_v12 = vadd.f32 %v4539_v7, %v4538_v62 }
0x1042   :  { %6828 = vmatpush3.bf16.msra.mxu0 %v8353_v36  ;;  %5729 = vmatprep.mubr.msk.f32.mxu0 %vm6944_vm3, %v6927_v0 }
0x1043   :  { %6829 = vmatprep.subr.bf16.mxu0 %v6942_v38  ;;  %v4541_v55 = vrot.slane %v4540_v12, 1 }
0x1044   :  { %6825 = vmatpush3.bf16.msra.mxu1 %v6824_v48 }
0x1045   :  { %5714 = vmatprep.subr.mxu1 %v6927_v0 }
0x1046   :  { %6831 = vmatpush3.bf16.msra.mxu0 %v8359_v21 }
0x1047   :  { %5727 = vmatprep.subr.mxu0 %v6927_v0 }
0x1048   :  { %5715 = vmatpush3.msra.mxu1 %v4266_v33  ;;  %v4542_v33 = vadd.f32 %v4541_v55, %v4540_v12 }
0x1049   :  { %6832 = vmatprep.subr.bf16.mxu1 %v6942_v38 }
0x104a   :  { %5728 = vmatpush3.msra.mxu0 %v8365_v27 }
0x104b   :  { %6838 = vmatprep.subr.bf16.mxu0 %v6942_v38 }
0x1112   :  { %v4159_v43 = vpop.f32.mrb[38].mxu1 }
0x1113   :  { %v4236_v60 = vmul.f32 %v4159_v43, %v4159_v43  ;;  %v4242_v45 = vrot.slane %v4159_v43, %v7208_v49  ;;  %v5692_v59 = vpop.f32.mrb[39].mxu1 }
0x1114   :  { %v4232_v18 = vpop.f32.mrb[38].mxu0 }
0x1115   :  { %v4243_v63 = vsub.f32 %v3989_v57, %v4242_v45  ;;  %v4237_v40 = vsub.f32 %v4232_v18, %v4236_v60  ;;  %v5705_v29 = vpop.f32.mrb[39].mxu0 }
0x1117   :  { %v4238_v32 = vmax.f32 %v4237_v40, 0.0 }
0x1119   :  { %v4244_v41 = vadd.f32 1e-05, %v4238_v32 }
0x111b   :  { %6920 = vrsqrt.f32 %v4244_v41 }
0x1125   :  { %v6921_v19 = vpop.eup %6920 }
0x1126   :  { %v4249_v4 = vrot.slane %v6921_v19, %v7208_v49 }
0x1128   :  { %v4250_v8 = vmul.f32 %v4249_v4, %v4243_v63 }
0x112a   :  { %v4255_v28 = vmul.f32 %v4254_v5, %v4250_v8 }
0x112c   :  { %v4260_v10 = vadd.f32 %v4259_v11, %v4255_v28 }
0x112e   :  { %v4261_v15 = vmax.f32 %v4260_v10, 0.0 }
0x1130   :  { %5717 = vmatmul.mubr.msk.f32.vlgmr.msra.gmra.mrb[40].mxu1 %vm4074_vm6, %v4261_v15 }
0x1131   :  { %6834 = vmatpush3.bf16.msra.mxu1 %v8353_v36  ;;  %5742 = vmatprep.mubr.msk.f32.mxu1 %vm6944_vm3, %v6927_v0 }
0x1132   :  { %6835 = vmatprep.subr.bf16.mxu1 %v6942_v38 }
0x1135   :  { %6837 = vmatpush3.bf16.msra.mxu1 %v8359_v21 }
0x1136   :  { %5740 = vmatprep.subr.mxu1 %v6927_v0 }
0x1139   :  { %5741 = vmatpush3.msra.mxu1 %v8365_v27 }
0x113a   :  { %6844 = vmatprep.subr.bf16.mxu1 %v6942_v38 }
0x1203   :  { %v4336_v31 = vpop.f32.mrb[40].mxu1 }
0x1204   :  { %v4340_v54 = vmul.f32 %v4336_v31, %v7128_v24  ;;  %v5718_v37 = vpop.f32.mrb[41].mxu1  ;;  %v4531_v24 = vrot.slane %v4530_v58, 2 }
0x1205   :  { %v4525_v37 = vrot.slane %v8398_v16, %v7431_v13  ;;  %v4721_v13 = vpop.permute.xlu0 %4720 }
0x1206   :  { %v4341_v57 = vsel %vm4074_vm6, %v4340_v54, 0.0  ;;  %v4348_v47 = vmul.f32 %v4340_v54, %v4340_v54  ;;  %v4532_v35 = vadd.f32 %v4531_v24, %v4530_v58  ;;  %v4726_v39 = vrot.slane %v4721_v13, %v7208_v49 }
0x1207   :  { %v4342_v44 = vrot.slane %v4341_v57, 4 }
0x1208   :  { %v4349_v56 = vsel %vm4074_vm6, %v4348_v47, 0.0  ;;  %v4533_v34 = vrot.slane %v4532_v35, 1 }
0x1209   :  { %v4343_v50 = vadd.f32 %v4342_v44, %v4341_v57  ;;  %v4350_v2 = vrot.slane %v4349_v56, 4 }
0x120a   :  { %v4534_v48 = vadd.f32 %v4533_v34, %v4532_v35 }
0x120b   :  { %v4344_v52 = vrot.slane %v4343_v50, 2  ;;  %v4351_v51 = vadd.f32 %v4350_v2, %v4349_v56 }
0x120d   :  { %v4345_v53 = vadd.f32 %v4344_v52, %v4343_v50  ;;  %v4352_v3 = vrot.slane %v4351_v51, 2 }
0x120f   :  { %v4346_v46 = vrot.slane %v4345_v53, 1  ;;  %v4353_v1 = vadd.f32 %v4352_v3, %v4351_v51 }
0x1211   :  { %v4347_v17 = vadd.f32 %v4346_v46, %v4345_v53  ;;  %v4354_v23 = vrot.slane %v4353_v1, 1 }
0x1213   :  { %v4355_v30 = vadd.f32 %v4354_v23, %v4353_v1  ;;  %5730 = vmatmul.mubr.msk.f32.vlgmr.msra.gmra.mrb[40].mxu0 %vm4074_vm6, %v4347_v17 }
0x1214   :  { %6840 = vmatpush3.bf16.msra.mxu0 %v8353_v36  ;;  %5755 = vmatprep.mubr.msk.f32.mxu0 %vm6944_vm3, %v6927_v0 }
0x1215   :  { %5743 = vmatmul.mubr.msk.f32.vlgmr.msra.gmra.mrb[42].mxu1 %vm4074_vm6, %v4355_v30  ;;  %6841 = vmatprep.subr.bf16.mxu0 %v6942_v38 }
0x1216   :  { %6846 = vmatpush3.bf16.msra.mxu1 %v8353_v36  ;;  %5768 = vmatprep.mubr.msk.f32.mxu1 %vm6944_vm3, %v6927_v0 }
0x1217   :  { %6847 = vmatprep.subr.bf16.mxu1 %v6942_v38 }
0x1218   :  { %6843 = vmatpush3.bf16.msra.mxu0 %v8359_v21 }
0x1219   :  { %5753 = vmatprep.subr.mxu0 %v6927_v0 }
0x121a   :  { %6849 = vmatpush3.bf16.msra.mxu1 %v8359_v21 }
0x121b   :  { %5766 = vmatprep.subr.mxu1 %v6927_v0 }
0x121c   :  { %5754 = vmatpush3.msra.mxu0 %v8365_v27 }
0x121d   :  { %5756 = vmatmul.mubr.msk.f32.vlgmr.msra.gmra.mrb[42].mxu0 %vm4074_vm6, %v4534_v48  ;;  %5771 = vmatprep.subr.mxu0 %v6927_v0 }
0x121e   :  { %5767 = vmatpush3.msra.mxu1 %v8365_v27  ;;  %5773 = vmatprep.mubr.msk.f32.mxu0 %vm6944_vm3, %v6927_v0 }
0x121f   :  { %5769 = vmatmul.mubr.msk.f32.vlgmr.msra.gmra.mrb[44].mxu1 %vm4074_vm6, %v4542_v33 }
0x12e6   :  { %v4425_v38 = vpop.f32.mrb[40].mxu0 }
0x12e7   :  { %v4502_v36 = vmul.f32 %v4425_v38, %v4425_v38  ;;  %v4508_v21 = vrot.slane %v4425_v38, %v7208_v49  ;;  %v5731_v43 = vpop.f32.mrb[41].mxu0 }
0x12e8   :  { %v4498_v60 = vpop.f32.mrb[42].mxu1 }
0x12e9   :  { %v4509_v45 = vsub.f32 %v4336_v31, %v4508_v21  ;;  %v4503_v59 = vsub.f32 %v4498_v60, %v4502_v36  ;;  %v5744_v18 = vpop.f32.mrb[43].mxu1 }
0x12eb   :  { %v4504_v63 = vmax.f32 %v4503_v59, 0.0 }
0x12ed   :  { %v4510_v40 = vadd.f32 1e-05, %v4504_v63 }
0x12ef   :  { %6922 = vrsqrt.f32 %v4510_v40 }
0x12f0   :  { %v4612_v29 = vpop.f32.mrb[42].mxu0 }
0x12f1   :  { %v4689_v32 = vmul.f32 %v4612_v29, %v4612_v29  ;;  %v4695_v27 = vrot.slane %v4612_v29, %v7208_v49  ;;  %v5757_v41 = vpop.f32.mrb[43].mxu0 }
0x12f2   :  { %v4685_v0 = vpop.f32.mrb[44].mxu1 }
0x12f3   :  { %v4696_v19 = vsub.f32 %v8371_v22, %v4695_v27  ;;  %v4690_v4 = vsub.f32 %v4685_v0, %v4689_v32  ;;  %v5770_v5 = vpop.f32.mrb[45].mxu1 }
0x12f5   :  { %v4691_v8 = vmax.f32 %v4690_v4, 0.0 }
0x12f7   :  { %v4697_v11 = vadd.f32 1e-05, %v4691_v8 }
0x12f9   :  { %v6923_v28 = vpop.eup %6922  ;;  %6924 = vrsqrt.f32 %v4697_v11 }
0x12fa   :  { %v4515_v10 = vrot.slane %v6923_v28, %v7208_v49 }
0x12fc   :  { %v4516_v15 = vmul.f32 %v4515_v10, %v4509_v45 }
0x12fe   :  { %v4521_v22 = vmul.f32 %v4520_v25, %v4516_v15 }
0x1300   :  { %v4526_v6 = vadd.f32 %v4525_v37, %v4521_v22 }
0x1303   :  { %v6925_v20 = vpop.eup %6924 }
0x1304   :  { %v4702_v31 = vrot.slane %v6925_v20, %v7208_v49 }
0x1306   :  { %v4703_v54 = vmul.f32 %v4702_v31, %v4696_v19 }
0x1308   :  { %v4708_v57 = vmul.f32 %v4707_v26, %v4703_v54 }
0x130a   :  { %v4713_v47 = vadd.f32 %v4712_v14, %v4708_v57 }
0x130c   :  { %v4714_v42 = vadd.f32 %v4713_v47, %v4526_v6 }
0x130e   :  { %v4715_v44 = vmax.f32 %v4714_v42, 0.0 }
0x1310   :  { %5772 = vmatpush3.xpose.msk.msra.mxu0 %vm4074_vm6, %v4715_v44 }
0x1313   :  { %5774 = vmatmul.mubr.msk.f32.vlgmr.msra.gmra.mrb[44].mxu0 %vm4074_vm6, %v4716_v9 }
0x13e6   :  { %v4799_v16 = vpop.f32.mrb[44].mxu0 }
0x13e7   :  { %v4800_v56 = vadd.f32 %v4799_v16, %v4726_v39  ;;  %v5775_v61 = vpop.f32.mrb[45].mxu0 }
0x13e9   :  { %4804 = vst.msk [vmem:[%s4837_s1] sm:$0x1] %vm4803_vm7, %v4800_v56 }

</bundles_post_ra>
